<compile_context>
chip_gen: v6e
topology: v6e:2x2x1
jax: 0.10.0
libtpu: 0.0.40
codegen_flags: <defaults>
</compile_context>

<pallas_src>
import functools

import jax
import jax.numpy as jnp
from jax import lax
from jax.experimental import pallas as pl
from jax.experimental.pallas import tpu as pltpu

EPS_GMM = 1e-15   # PyG GMMConv EPS
BN_EPS = 1e-5     # nn.BatchNorm1d default eps


def _round_up(x, m):
    return (x + m - 1) // m * m


# --------------------------------------------------------------------------------
# Fused kernel: GMMConv messages + mean scatter + root + bias + BatchNorm(train)
#               + LeakyReLU.
# grid = (edge_tiles,)  -- "arbitrary" reduction with a resident (n_pad, M) VMEM
# accumulator; everything node-sized stays in VMEM for the whole call.
# --------------------------------------------------------------------------------
def fused_gmm_bn_act_kernel(dst_ref, x_ref, xs_ref, quad_ref, a_ref, b_ref,
                            g_ref, root_ref, bias_ref, inv_deg_ref,
                            gamma_ref, beta_ref, o_ref, acc_ref,
                            *, kernel_size, n_out, n_pad, n_real, alpha):
    j = pl.program_id(0)          # edge-tile index ("arbitrary" reduction axis)

    @pl.when(j == 0)
    def _():
        acc_ref[...] = jnp.zeros_like(acc_ref)

    # ---- per-edge work: done exactly once per edge tile ----
    # x_j @ g on the MXU : (tE, F_in) @ (F_in, K*M)
    xg = jnp.dot(xs_ref[...], g_ref[...], preferred_element_type=jnp.float32)
    # Gaussian-mixture logits as one small matmul: [ea^2 | ea] @ A + b -> (tE, K)
    logits = jnp.dot(quad_ref[...], a_ref[...],
                     preferred_element_type=jnp.float32) + b_ref[...]
    gauss = jnp.exp(logits)                                     # EUP slot

    # Weighted sum over the K gaussian kernels -> per-edge messages (tE, M).
    # K is small & static; static lane slices keep the layout intact.
    msg = gauss[:, 0:1] * xg[:, 0:n_out]
    for k in range(1, kernel_size):
        msg = msg + gauss[:, k:k + 1] * xg[:, k * n_out:(k + 1) * n_out]

    # ---- scatter-add into the resident accumulator with one MXU matmul ----
    # one_hot built on the fly from dst indices (padded edges carry dst = -1, so
    # they contribute exactly 0); contraction depth = tile_e (multiple of 256).
    tile_e = xs_ref.shape[0]
    row_ids = lax.broadcasted_iota(jnp.int32, (n_pad, tile_e), 0)
    one_hot = (row_ids == dst_ref[...]).astype(jnp.float32)     # (n_pad, tE)
    # TODO(synk): cast one_hot/msg to bf16 (2-4x MXU rate) if accuracy budget allows.
    acc_ref[...] += jnp.dot(one_hot, msg, preferred_element_type=jnp.float32)

    # ---- finalize: mean aggregation + root + bias, then BN(train) + LeakyReLU ----
    @pl.when(j == pl.num_programs(0) - 1)
    def _():
        h = (acc_ref[...] * inv_deg_ref[...]          # 'mean' aggr via 1/deg multiply
             + jnp.dot(x_ref[...], root_ref[...],
                       preferred_element_type=jnp.float32)
             + bias_ref[...])

        cnt = jnp.float32(n_real)
        if n_real == n_pad:                           # static (trace-time) branch
            mean = jnp.sum(h, axis=0, keepdims=True) / cnt
            cent = h - mean
        else:
            # Padded node rows equal `bias`; exclude them from the batch statistics.
            valid = lax.broadcasted_iota(jnp.int32, h.shape, 0) < n_real
            mean = jnp.sum(jnp.where(valid, h, 0.0), axis=0, keepdims=True) / cnt
            cent = jnp.where(valid, h - mean, 0.0)

        # Centered (two-pass) biased variance: no E[x^2]-E[x]^2 cancellation.
        var = jnp.sum(cent * cent, axis=0, keepdims=True) / cnt
        rstd = lax.rsqrt(var + BN_EPS)
        hn = (h - mean) * rstd * gamma_ref[...] + beta_ref[...]
        o_ref[...] = jnp.where(hn >= 0, hn, alpha * hn)         # LeakyReLU


# --------------------------------------------------------------------------------
# Wrapper
# --------------------------------------------------------------------------------
def gmm_conv_layer(x, edge_idx, edge_attr, params, *, kernel_size,
                   alpha=0.01, tile_e=512):
    N, f_in = x.shape
    E, D = edge_attr.shape
    M = params["bias"].shape[-1]
    K = kernel_size
    src, dst = edge_idx[0], edge_idx[1]

    # Edge tile: a multiple of 256 fills the 256-deep v6e/v7x MXU contraction of the
    # one_hot @ msg scatter matmul (v5e's 128-deep MXU is automatically satisfied).
    tile_e = max(256, _round_up(min(tile_e, E), 256))
    e_pad = _round_up(E, tile_e)
    n_pad = _round_up(N, 8)

    # TODO(synk): this fused path keeps a full (n_pad, M) accumulator and an
    # (n_pad, tile_e) one-hot tile resident in VMEM (fine up to ~100K nodes at M=32).
    # For larger graphs switch to a node-tiled grid ("parallel" for v7x megacore)
    # with sorted-dst scalar-prefetch edge ranges instead of the dense scatter.
    assert n_pad * (M + tile_e) * 4 < 24 * 1024 * 1024, "graph too large for fused path"

    # ---- cheap O(E)/O(N) glue in plain JAX (gather + degree count + reparam) ----
    # TODO(synk): the row gather x[src] and degree scatter-add stay as XLA glue;
    # a Pallas DMA-gather is not worth it at F_in=8.
    x_src = x[src].astype(jnp.float32)                                    # (E, F_in)
    deg = jnp.zeros((N,), jnp.float32).at[dst].add(1.0)
    inv_deg = 1.0 / jnp.maximum(deg, 1.0)                                 # 'mean'
    quad = jnp.concatenate([edge_attr * edge_attr, edge_attr], axis=1)    # (E, 2D)

    # Gaussian reparameterization:  -0.5*(e-mu)^2/(eps+sig^2)
    #   = e^2 * (-0.5*inv) + e * (mu*inv) + (-0.5*mu^2*inv)
    mu_t = params["mu"].T.astype(jnp.float32)                             # (D, K)
    inv = 1.0 / (EPS_GMM + params["sigma"].T.astype(jnp.float32) ** 2)    # (D, K)
    a_mat = jnp.concatenate([-0.5 * inv, mu_t * inv], axis=0)             # (2D, K)
    b_vec = jnp.sum(-0.5 * mu_t * mu_t * inv, axis=0, keepdims=True)      # (1, K)

    # ---- pad N/E (padded edges: dst=-1 & zero features => contribute nothing;
    #      padded nodes: zero features & inv_deg=1 => h=bias, masked from BN stats,
    #      sliced off below) ----
    x_p = jnp.zeros((n_pad, f_in), jnp.float32).at[:N].set(x)
    invdeg_p = jnp.ones((n_pad, 1), jnp.float32).at[:N, 0].set(inv_deg)
    xs_p = jnp.zeros((e_pad, f_in), jnp.float32).at[:E].set(x_src)
    quad_p = jnp.zeros((e_pad, 2 * D), jnp.float32).at[:E].set(quad)
    dst_p = jnp.full((1, e_pad), -1, jnp.int32).at[0, :E].set(dst.astype(jnp.int32))

    e_tiles = e_pad // tile_e
    full = lambda j: (0, 0)

    kernel = functools.partial(fused_gmm_bn_act_kernel, kernel_size=K, n_out=M,
                               n_pad=n_pad, n_real=N, alpha=alpha)

    flops = (2 * e_pad * f_in * K * M          # x_j @ g
             + 2 * e_pad * 2 * D * K           # [ea^2|ea] @ A
             + 3 * e_pad * K * M               # gaussian-weighted mix
             + 2 * n_pad * e_pad * M           # one-hot scatter matmul
             + 2 * n_pad * f_in * M            # root transform
             + 12 * n_pad * M)                 # mean-div + BN + LeakyReLU
    cost = pl.CostEstimate(
        flops=flops,
        transcendentals=e_pad * K + M,
        bytes_accessed=4 * (e_pad * (f_in + 2 * D + 1)
                            + n_pad * (f_in + 1 + M)
                            + f_in * K * M + f_in * M + 2 * D * K + 4 * M + K))

    out_pad = pl.pallas_call(
        kernel,
        out_shape=jax.ShapeDtypeStruct((n_pad, M), jnp.float32),
        grid_spec=pltpu.PrefetchScalarGridSpec(
            num_scalar_prefetch=0,
            grid=(e_tiles,),
            in_specs=[
                pl.BlockSpec((1, tile_e), lambda j: (0, j)),       # dst indices
                pl.BlockSpec((n_pad, f_in), full),                 # x (root path)
                pl.BlockSpec((tile_e, f_in), lambda j: (j, 0)),    # x[src]
                pl.BlockSpec((tile_e, 2 * D), lambda j: (j, 0)),   # [ea^2 | ea]
                pl.BlockSpec((2 * D, K), full),                    # A
                pl.BlockSpec((1, K), full),                        # b
                pl.BlockSpec((f_in, K * M), full),                 # g
                pl.BlockSpec((f_in, M), full),                     # root
                pl.BlockSpec((1, M), full),                        # bias
                pl.BlockSpec((n_pad, 1), full),                    # 1/deg
                pl.BlockSpec((1, M), full),                        # BN gamma
                pl.BlockSpec((1, M), full),                        # BN beta
            ],
            out_specs=pl.BlockSpec((n_pad, M), full),
            scratch_shapes=[pltpu.VMEM((n_pad, M), jnp.float32)]),
        compiler_params=pltpu.CompilerParams(
            dimension_semantics=("arbitrary",),
            vmem_limit_bytes=32 * 1024 * 1024),     # safe on v5e/v6e/v7x (64 MiB/TC)
        cost_estimate=cost,
    )(dst_p, x_p, xs_p, quad_p, a_mat, b_vec,
      params["g"].astype(jnp.float32), params["root"].astype(jnp.float32),
      params["bias"].astype(jnp.float32), invdeg_p,
      params["gamma"].astype(jnp.float32), params["beta"].astype(jnp.float32))

    return out_pad[:N]


# --------------------------------------------------------------------------------
# Pure-JAX reference matching PyG GMMConv + BatchNorm1d(train) + LeakyReLU
# --------------------------------------------------------------------------------
def reference(x, edge_idx, edge_attr, params, *, kernel_size, alpha=0.01):
    N = x.shape[0]
    M = params["bias"].shape[-1]
    K = kernel_size
    src, dst = edge_idx[0], edge_idx[1]
    xg = x @ params["g"]                                                # (N, K*M)
    diff = edge_attr[:, None, :] - params["mu"][None, :, :]             # (E, K, D)
    gauss = jnp.exp(jnp.sum(-0.5 * diff * diff /
                            (EPS_GMM + params["sigma"][None] ** 2), axis=-1))
    msg = jnp.sum(xg[src].reshape(-1, K, M) * gauss[:, :, None], axis=1)
    agg_sum = jnp.zeros((N, M), jnp.float32).at[dst].add(msg)
    deg = jnp.zeros((N,), jnp.float32).at[dst].add(1.0)
    agg = agg_sum / jnp.maximum(deg, 1.0)[:, None]
    h = agg + x @ params["root"] + params["bias"]
    mean = jnp.mean(h, axis=0, keepdims=True)
    var = jnp.mean((h - mean) ** 2, axis=0, keepdims=True)
    hn = (h - mean) / jnp.sqrt(var + BN_EPS) * params["gamma"] + params["beta"]
    return jnp.where(hn >= 0, hn, alpha * hn)


if __name__ == "__main__":
    # Module hyperparameters (GMMConvLayer(n_dims_in, dim, n_dims_out, kernel_size))
    n_dims_in, dim, n_dims_out, kernel_size = 8, 2, 32, 8
    N, E = 64, 256

    key = jax.random.PRNGKey(0)
    ks = jax.random.split(key, 8)
    x = jax.random.normal(ks[0], (N, n_dims_in), jnp.float32)
    src = jax.random.randint(ks[1], (E,), 0, N, dtype=jnp.int32)
    dst = jax.random.randint(ks[2], (E,), 0, N, dtype=jnp.int32)
    edge_idx = jnp.stack([src, dst])                                    # (2, E)
    edge_attr = jax.random.uniform(ks[3], (E, dim), jnp.float32)

    # Deterministic parameter init (shapes per PyG GMMConv + BatchNorm1d defaults)
    params = {
        "g": 0.1 * jax.random.normal(ks[4], (n_dims_in, kernel_size * n_dims_out),
                                     jnp.float32),
        "mu": jax.random.normal(ks[5], (kernel_size, dim), jnp.float32),
        "sigma": jnp.ones((kernel_size, dim), jnp.float32),
        "root": 0.1 * jax.random.normal(ks[6], (n_dims_in, n_dims_out), jnp.float32),
        "bias": jnp.zeros((1, n_dims_out), jnp.float32),
        "gamma": jnp.ones((1, n_dims_out), jnp.float32),   # BatchNorm weight
        "beta": jnp.zeros((1, n_dims_out), jnp.float32),   # BatchNorm bias
    }

    out = gmm_conv_layer(x, edge_idx, edge_attr, params, kernel_size=kernel_size)
    out = jax.block_until_ready(out)

    ref = reference(x, edge_idx, edge_attr, params, kernel_size=kernel_size)
    assert out.shape == (N, n_dims_out)
    assert jnp.allclose(out, ref, atol=2e-4, rtol=2e-4), "mismatch vs reference"
    print("KERNEL_OK")
</pallas_src>

<mosaic_0001>
module attributes {stable_mosaic.version = 11 : i64} {
  func.func @fused_gmm_bn_act_kernel(%arg0: i32, %arg1: memref<1x256xi32, #tpu.memory_space<vmem>>, %arg2: memref<64x8xf32, #tpu.memory_space<vmem>>, %arg3: memref<256x8xf32, #tpu.memory_space<vmem>>, %arg4: memref<256x4xf32, #tpu.memory_space<vmem>>, %arg5: memref<4x8xf32, #tpu.memory_space<vmem>>, %arg6: memref<1x8xf32, #tpu.memory_space<vmem>>, %arg7: memref<8x256xf32, #tpu.memory_space<vmem>>, %arg8: memref<8x32xf32, #tpu.memory_space<vmem>>, %arg9: memref<1x32xf32, #tpu.memory_space<vmem>>, %arg10: memref<64x1xf32, #tpu.memory_space<vmem>>, %arg11: memref<1x32xf32, #tpu.memory_space<vmem>>, %arg12: memref<1x32xf32, #tpu.memory_space<vmem>>, %arg13: memref<64x32xf32, #tpu.memory_space<vmem>>, %arg14: memref<64x32xf32, #tpu.memory_space<vmem>>) attributes {dimension_semantics = [#tpu.dimension_semantics<arbitrary>], iteration_bounds = array<i64: 1>, scalar_prefetch = 0 : i64, scratch_operands = 1 : i64, tpu.core_type = #tpu.core_type<tc>, window_params = [{transform_indices = @transform_0, window_bounds = array<i64: 1, 256>}, {pipeline_mode = #tpu.pipeline_mode<synchronous>, transform_indices = @transform_1, window_bounds = array<i64: 64, 8>}, {transform_indices = @transform_2, window_bounds = array<i64: 256, 8>}, {transform_indices = @transform_3, window_bounds = array<i64: 256, 4>}, {pipeline_mode = #tpu.pipeline_mode<synchronous>, transform_indices = @transform_4, window_bounds = array<i64: 4, 8>}, {pipeline_mode = #tpu.pipeline_mode<synchronous>, transform_indices = @transform_5, window_bounds = array<i64: 1, 8>}, {pipeline_mode = #tpu.pipeline_mode<synchronous>, transform_indices = @transform_6, window_bounds = array<i64: 8, 256>}, {pipeline_mode = #tpu.pipeline_mode<synchronous>, transform_indices = @transform_7, window_bounds = array<i64: 8, 32>}, {pipeline_mode = #tpu.pipeline_mode<synchronous>, transform_indices = @transform_8, window_bounds = array<i64: 1, 32>}, {pipeline_mode = #tpu.pipeline_mode<synchronous>, transform_indices = @transform_9, window_bounds = array<i64: 64, 1>}, {pipeline_mode = #tpu.pipeline_mode<synchronous>, transform_indices = @transform_10, window_bounds = array<i64: 1, 32>}, {pipeline_mode = #tpu.pipeline_mode<synchronous>, transform_indices = @transform_11, window_bounds = array<i64: 1, 32>}, {pipeline_mode = #tpu.pipeline_mode<synchronous>, transform_indices = @transform_12, window_bounds = array<i64: 64, 32>}]} {
    %c0_i32 = arith.constant 0 : i32
    %0 = arith.cmpi eq, %arg0, %c0_i32 : i32
    %1 = arith.extui %0 : i1 to i32
    %c0_i32_0 = arith.constant 0 : i32
    %2 = arith.cmpi ne, %1, %c0_i32_0 : i32
    scf.if %2 {
      %cst_20 = arith.constant 0.000000e+00 : f32
      %65 = vector.broadcast %cst_20 : f32 to vector<64x32xf32>
      %c0_21 = arith.constant 0 : index
      %c0_22 = arith.constant 0 : index
      %66 = vector.load %arg14[%c0_21, %c0_22] : memref<64x32xf32, #tpu.memory_space<vmem>>, vector<64x32xf32>
      tpu.vector_store %arg14[%c0_21, %c0_22], %65 {strides = array<i32>} : memref<64x32xf32, #tpu.memory_space<vmem>>, vector<64x32xf32>,
    } else {
    }
    %c0 = arith.constant 0 : index
    %c0_1 = arith.constant 0 : index
    %3 = vector.load %arg3[%c0, %c0_1] : memref<256x8xf32, #tpu.memory_space<vmem>>, vector<256x8xf32>
    %c0_2 = arith.constant 0 : index
    %c0_3 = arith.constant 0 : index
    %4 = vector.load %arg7[%c0_2, %c0_3] : memref<8x256xf32, #tpu.memory_space<vmem>>, vector<8x256xf32>
    %cst = arith.constant dense<0.000000e+00> : vector<256x256xf32>
    %5 = tpu.matmul %3, %4, %cst {dimension_numbers = #tpu.dot_dimension_numbers<[1], [0], [0], [1], [0, 0, 1, 1], [], []>} : vector<256x8xf32>, vector<8x256xf32>, vector<256x256xf32> -> vector<256x256xf32>
    %c0_4 = arith.constant 0 : index
    %c0_5 = arith.constant 0 : index
    %6 = vector.load %arg4[%c0_4, %c0_5] : memref<256x4xf32, #tpu.memory_space<vmem>>, vector<256x4xf32>
    %c0_6 = arith.constant 0 : index
    %c0_7 = arith.constant 0 : index
    %7 = vector.load %arg5[%c0_6, %c0_7] : memref<4x8xf32, #tpu.memory_space<vmem>>, vector<4x8xf32>
    %cst_8 = arith.constant dense<0.000000e+00> : vector<256x8xf32>
    %8 = tpu.matmul %6, %7, %cst_8 {dimension_numbers = #tpu.dot_dimension_numbers<[1], [0], [0], [1], [0, 0, 1, 1], [], []>} : vector<256x4xf32>, vector<4x8xf32>, vector<256x8xf32> -> vector<256x8xf32>
    %c0_9 = arith.constant 0 : index
    %c0_10 = arith.constant 0 : index
    %9 = vector.load %arg6[%c0_9, %c0_10] : memref<1x8xf32, #tpu.memory_space<vmem>>, vector<1x8xf32>
    %10 = vector.broadcast %9 : vector<1x8xf32> to vector<256x8xf32>
    %11 = arith.addf %8, %10 : vector<256x8xf32>
    %12 = math.exp %11 : vector<256x8xf32>
    %13 = vector.extract_strided_slice %12 {offsets = [0, 0], sizes = [256, 1], strides = [1, 1]} : vector<256x8xf32> to vector<256x1xf32>
    %14 = vector.extract_strided_slice %5 {offsets = [0, 0], sizes = [256, 32], strides = [1, 1]} : vector<256x256xf32> to vector<256x32xf32>
    %15 = vector.broadcast %13 : vector<256x1xf32> to vector<256x32xf32>
    %16 = arith.mulf %15, %14 : vector<256x32xf32>
    %17 = vector.extract_strided_slice %12 {offsets = [0, 1], sizes = [256, 1], strides = [1, 1]} : vector<256x8xf32> to vector<256x1xf32>
    %18 = vector.extract_strided_slice %5 {offsets = [0, 32], sizes = [256, 32], strides = [1, 1]} : vector<256x256xf32> to vector<256x32xf32>
    %19 = vector.broadcast %17 : vector<256x1xf32> to vector<256x32xf32>
    %20 = arith.mulf %19, %18 : vector<256x32xf32>
    %21 = arith.addf %16, %20 : vector<256x32xf32>
    %22 = vector.extract_strided_slice %12 {offsets = [0, 2], sizes = [256, 1], strides = [1, 1]} : vector<256x8xf32> to vector<256x1xf32>
    %23 = vector.extract_strided_slice %5 {offsets = [0, 64], sizes = [256, 32], strides = [1, 1]} : vector<256x256xf32> to vector<256x32xf32>
    %24 = vector.broadcast %22 : vector<256x1xf32> to vector<256x32xf32>
    %25 = arith.mulf %24, %23 : vector<256x32xf32>
    %26 = arith.addf %21, %25 : vector<256x32xf32>
    %27 = vector.extract_strided_slice %12 {offsets = [0, 3], sizes = [256, 1], strides = [1, 1]} : vector<256x8xf32> to vector<256x1xf32>
    %28 = vector.extract_strided_slice %5 {offsets = [0, 96], sizes = [256, 32], strides = [1, 1]} : vector<256x256xf32> to vector<256x32xf32>
    %29 = vector.broadcast %27 : vector<256x1xf32> to vector<256x32xf32>
    %30 = arith.mulf %29, %28 : vector<256x32xf32>
    %31 = arith.addf %26, %30 : vector<256x32xf32>
    %32 = vector.extract_strided_slice %12 {offsets = [0, 4], sizes = [256, 1], strides = [1, 1]} : vector<256x8xf32> to vector<256x1xf32>
    %33 = vector.extract_strided_slice %5 {offsets = [0, 128], sizes = [256, 32], strides = [1, 1]} : vector<256x256xf32> to vector<256x32xf32>
    %34 = vector.broadcast %32 : vector<256x1xf32> to vector<256x32xf32>
    %35 = arith.mulf %34, %33 : vector<256x32xf32>
    %36 = arith.addf %31, %35 : vector<256x32xf32>
    %37 = vector.extract_strided_slice %12 {offsets = [0, 5], sizes = [256, 1], strides = [1, 1]} : vector<256x8xf32> to vector<256x1xf32>
    %38 = vector.extract_strided_slice %5 {offsets = [0, 160], sizes = [256, 32], strides = [1, 1]} : vector<256x256xf32> to vector<256x32xf32>
    %39 = vector.broadcast %37 : vector<256x1xf32> to vector<256x32xf32>
    %40 = arith.mulf %39, %38 : vector<256x32xf32>
    %41 = arith.addf %36, %40 : vector<256x32xf32>
    %42 = vector.extract_strided_slice %12 {offsets = [0, 6], sizes = [256, 1], strides = [1, 1]} : vector<256x8xf32> to vector<256x1xf32>
    %43 = vector.extract_strided_slice %5 {offsets = [0, 192], sizes = [256, 32], strides = [1, 1]} : vector<256x256xf32> to vector<256x32xf32>
    %44 = vector.broadcast %42 : vector<256x1xf32> to vector<256x32xf32>
    %45 = arith.mulf %44, %43 : vector<256x32xf32>
    %46 = arith.addf %41, %45 : vector<256x32xf32>
    %47 = vector.extract_strided_slice %12 {offsets = [0, 7], sizes = [256, 1], strides = [1, 1]} : vector<256x8xf32> to vector<256x1xf32>
    %48 = vector.extract_strided_slice %5 {offsets = [0, 224], sizes = [256, 32], strides = [1, 1]} : vector<256x256xf32> to vector<256x32xf32>
    %49 = vector.broadcast %47 : vector<256x1xf32> to vector<256x32xf32>
    %50 = arith.mulf %49, %48 : vector<256x32xf32>
    %51 = arith.addf %46, %50 : vector<256x32xf32>
    %52 = tpu.iota {dimensions = array<i32: 0>} : vector<64x256xi32>
    %c0_11 = arith.constant 0 : index
    %c0_12 = arith.constant 0 : index
    %53 = vector.load %arg1[%c0_11, %c0_12] : memref<1x256xi32, #tpu.memory_space<vmem>>, vector<1x256xi32>
    %54 = vector.broadcast %53 : vector<1x256xi32> to vector<64x256xi32>
    %55 = arith.cmpi eq, %52, %54 : vector<64x256xi32>
    %56 = arith.extui %55 : vector<64x256xi1> to vector<64x256xi32>
    %57 = arith.sitofp %56 : vector<64x256xi32> to vector<64x256xf32>
    %c0_13 = arith.constant 0 : index
    %c0_14 = arith.constant 0 : index
    %58 = vector.load %arg14[%c0_13, %c0_14] : memref<64x32xf32, #tpu.memory_space<vmem>>, vector<64x32xf32>
    %cst_15 = arith.constant dense<0.000000e+00> : vector<64x32xf32>
    %59 = tpu.matmul %57, %51, %cst_15 {dimension_numbers = #tpu.dot_dimension_numbers<[1], [0], [0], [1], [0, 0, 1, 1], [], []>} : vector<64x256xf32>, vector<256x32xf32>, vector<64x32xf32> -> vector<64x32xf32>
    %60 = arith.addf %58, %59 : vector<64x32xf32>
    %c0_16 = arith.constant 0 : index
    %c0_17 = arith.constant 0 : index
    %61 = vector.load %arg14[%c0_16, %c0_17] : memref<64x32xf32, #tpu.memory_space<vmem>>, vector<64x32xf32>
    tpu.vector_store %arg14[%c0_16, %c0_17], %60 {strides = array<i32>} : memref<64x32xf32, #tpu.memory_space<vmem>>, vector<64x32xf32>,
    %c0_i32_18 = arith.constant 0 : i32
    %62 = arith.cmpi eq, %arg0, %c0_i32_18 : i32
    %63 = arith.extui %62 : i1 to i32
    %c0_i32_19 = arith.constant 0 : i32
    %64 = arith.cmpi ne, %63, %c0_i32_19 : i32
    scf.if %64 {
      %c0_20 = arith.constant 0 : index
      %c0_21 = arith.constant 0 : index
      %65 = vector.load %arg14[%c0_20, %c0_21] : memref<64x32xf32, #tpu.memory_space<vmem>>, vector<64x32xf32>
      %c0_22 = arith.constant 0 : index
      %c0_23 = arith.constant 0 : index
      %66 = vector.load %arg10[%c0_22, %c0_23] : memref<64x1xf32, #tpu.memory_space<vmem>>, vector<64x1xf32>
      %67 = vector.broadcast %66 : vector<64x1xf32> to vector<64x32xf32>
      %68 = arith.mulf %65, %67 : vector<64x32xf32>
      %c0_24 = arith.constant 0 : index
      %c0_25 = arith.constant 0 : index
      %69 = vector.load %arg2[%c0_24, %c0_25] : memref<64x8xf32, #tpu.memory_space<vmem>>, vector<64x8xf32>
      %c0_26 = arith.constant 0 : index
      %c0_27 = arith.constant 0 : index
      %70 = vector.load %arg8[%c0_26, %c0_27] : memref<8x32xf32, #tpu.memory_space<vmem>>, vector<8x32xf32>
      %cst_28 = arith.constant dense<0.000000e+00> : vector<64x32xf32>
      %71 = tpu.matmul %69, %70, %cst_28 {dimension_numbers = #tpu.dot_dimension_numbers<[1], [0], [0], [1], [0, 0, 1, 1], [], []>} : vector<64x8xf32>, vector<8x32xf32>, vector<64x32xf32> -> vector<64x32xf32>
      %72 = arith.addf %68, %71 : vector<64x32xf32>
      %c0_29 = arith.constant 0 : index
      %c0_30 = arith.constant 0 : index
      %73 = vector.load %arg9[%c0_29, %c0_30] : memref<1x32xf32, #tpu.memory_space<vmem>>, vector<1x32xf32>
      %74 = vector.broadcast %73 : vector<1x32xf32> to vector<64x32xf32>
      %75 = arith.addf %72, %74 : vector<64x32xf32>
      %cst_31 = arith.constant dense<0.000000e+00> : vector<32xf32>
      %76 = vector.multi_reduction <add>, %75, %cst_31 [0] : vector<64x32xf32> to vector<32xf32>
      %77 = vector.shape_cast %76 : vector<32xf32> to vector<1x32xf32>
      %cst_32 = arith.constant 6.400000e+01 : f32
      %78 = vector.broadcast %cst_32 : f32 to vector<1x32xf32>
      %79 = arith.divf %77, %78 : vector<1x32xf32>
      %80 = vector.broadcast %79 : vector<1x32xf32> to vector<64x32xf32>
      %81 = arith.subf %75, %80 : vector<64x32xf32>
      %82 = arith.mulf %81, %81 : vector<64x32xf32>
      %cst_33 = arith.constant dense<0.000000e+00> : vector<32xf32>
      %83 = vector.multi_reduction <add>, %82, %cst_33 [0] : vector<64x32xf32> to vector<32xf32>
      %84 = vector.shape_cast %83 : vector<32xf32> to vector<1x32xf32>
      %cst_34 = arith.constant 6.400000e+01 : f32
      %85 = vector.broadcast %cst_34 : f32 to vector<1x32xf32>
      %86 = arith.divf %84, %85 : vector<1x32xf32>
      %cst_35 = arith.constant 9.99999974E-6 : f32
      %87 = vector.broadcast %cst_35 : f32 to vector<1x32xf32>
      %88 = arith.addf %86, %87 : vector<1x32xf32>
      %89 = math.rsqrt %88 : vector<1x32xf32>
      %90 = vector.broadcast %79 : vector<1x32xf32> to vector<64x32xf32>
      %91 = arith.subf %75, %90 : vector<64x32xf32>
      %92 = vector.broadcast %89 : vector<1x32xf32> to vector<64x32xf32>
      %93 = arith.mulf %91, %92 : vector<64x32xf32>
      %c0_36 = arith.constant 0 : index
      %c0_37 = arith.constant 0 : index
      %94 = vector.load %arg11[%c0_36, %c0_37] : memref<1x32xf32, #tpu.memory_space<vmem>>, vector<1x32xf32>
      %95 = vector.broadcast %94 : vector<1x32xf32> to vector<64x32xf32>
      %96 = arith.mulf %93, %95 : vector<64x32xf32>
      %c0_38 = arith.constant 0 : index
      %c0_39 = arith.constant 0 : index
      %97 = vector.load %arg12[%c0_38, %c0_39] : memref<1x32xf32, #tpu.memory_space<vmem>>, vector<1x32xf32>
      %98 = vector.broadcast %97 : vector<1x32xf32> to vector<64x32xf32>
      %99 = arith.addf %96, %98 : vector<64x32xf32>
      %cst_40 = arith.constant 0.000000e+00 : f32
      %100 = vector.broadcast %cst_40 : f32 to vector<64x32xf32>
      %101 = arith.cmpf oge, %99, %100 : vector<64x32xf32>
      %cst_41 = arith.constant 0.00999999977 : f32
      %102 = vector.broadcast %cst_41 : f32 to vector<64x32xf32>
      %103 = arith.mulf %102, %99 : vector<64x32xf32>
      %104 = arith.select %101, %99, %103 : vector<64x32xi1>, vector<64x32xf32>
      %c0_42 = arith.constant 0 : index
      %c0_43 = arith.constant 0 : index
      %105 = vector.load %arg13[%c0_42, %c0_43] : memref<64x32xf32, #tpu.memory_space<vmem>>, vector<64x32xf32>
      tpu.vector_store %arg13[%c0_42, %c0_43], %104 {strides = array<i32>} : memref<64x32xf32, #tpu.memory_space<vmem>>, vector<64x32xf32>,
    } else {
    }
    return
  }
  func.func @transform_0(%arg0: i32) -> (i32, i32) {
    %c0_i32 = arith.constant 0 : i32
    %c0_i32_0 = arith.constant 0 : i32
    return %c0_i32, %arg0 : i32, i32
  }
  func.func @transform_1(%arg0: i32) -> (i32, i32) {
    %c0_i32 = arith.constant 0 : i32
    %c0_i32_0 = arith.constant 0 : i32
    %c0_i32_1 = arith.constant 0 : i32
    return %c0_i32, %c0_i32_0 : i32, i32
  }
  func.func @transform_2(%arg0: i32) -> (i32, i32) {
    %c0_i32 = arith.constant 0 : i32
    %c0_i32_0 = arith.constant 0 : i32
    return %arg0, %c0_i32 : i32, i32
  }
  func.func @transform_3(%arg0: i32) -> (i32, i32) {
    %c0_i32 = arith.constant 0 : i32
    %c0_i32_0 = arith.constant 0 : i32
    return %arg0, %c0_i32 : i32, i32
  }
  func.func @transform_4(%arg0: i32) -> (i32, i32) {
    %c0_i32 = arith.constant 0 : i32
    %c0_i32_0 = arith.constant 0 : i32
    %c0_i32_1 = arith.constant 0 : i32
    return %c0_i32, %c0_i32_0 : i32, i32
  }
  func.func @transform_5(%arg0: i32) -> (i32, i32) {
    %c0_i32 = arith.constant 0 : i32
    %c0_i32_0 = arith.constant 0 : i32
    %c0_i32_1 = arith.constant 0 : i32
    return %c0_i32, %c0_i32_0 : i32, i32
  }
  func.func @transform_6(%arg0: i32) -> (i32, i32) {
    %c0_i32 = arith.constant 0 : i32
    %c0_i32_0 = arith.constant 0 : i32
    %c0_i32_1 = arith.constant 0 : i32
    return %c0_i32, %c0_i32_0 : i32, i32
  }
  func.func @transform_7(%arg0: i32) -> (i32, i32) {
    %c0_i32 = arith.constant 0 : i32
    %c0_i32_0 = arith.constant 0 : i32
    %c0_i32_1 = arith.constant 0 : i32
    return %c0_i32, %c0_i32_0 : i32, i32
  }
  func.func @transform_8(%arg0: i32) -> (i32, i32) {
    %c0_i32 = arith.constant 0 : i32
    %c0_i32_0 = arith.constant 0 : i32
    %c0_i32_1 = arith.constant 0 : i32
    return %c0_i32, %c0_i32_0 : i32, i32
  }
  func.func @transform_9(%arg0: i32) -> (i32, i32) {
    %c0_i32 = arith.constant 0 : i32
    %c0_i32_0 = arith.constant 0 : i32
    %c0_i32_1 = arith.constant 0 : i32
    return %c0_i32, %c0_i32_0 : i32, i32
  }
  func.func @transform_10(%arg0: i32) -> (i32, i32) {
    %c0_i32 = arith.constant 0 : i32
    %c0_i32_0 = arith.constant 0 : i32
    %c0_i32_1 = arith.constant 0 : i32
    return %c0_i32, %c0_i32_0 : i32, i32
  }
  func.func @transform_11(%arg0: i32) -> (i32, i32) {
    %c0_i32 = arith.constant 0 : i32
    %c0_i32_0 = arith.constant 0 : i32
    %c0_i32_1 = arith.constant 0 : i32
    return %c0_i32, %c0_i32_0 : i32, i32
  }
  func.func @transform_12(%arg0: i32) -> (i32, i32) {
    %c0_i32 = arith.constant 0 : i32
    %c0_i32_0 = arith.constant 0 : i32
    %c0_i32_1 = arith.constant 0 : i32
    return %c0_i32, %c0_i32_0 : i32, i32
  }
}

</mosaic_0001>

<bundles_post_ra>
// kernel: tpu_custom_call.1
= control target key start
LH: loop header
LB: loop body
LE: loop exit
PB: predicated region body
PF: predicated region fallthrough
CT: control target
= control target key end

     0   :  { %v7053_v2 = vmov 0.0   ;;  %vm88_vm0 = vcmask 64512   ;;  %vm579_vm1 = vcmask 1043456   ;;  %vm482_vm2 = vcmask 31744   ;;  %s4235_s14 = smov 32   ;;  %s7040_s6 = inlined_call_operand.vmem [shape: f32[8,256], index: 6, kind: input, shape index: {}]   ;;  %s7041_s2 = inlined_call_operand.vmem [shape: f32[256,8], index: 2, kind: input, shape index: {}]   ;;  %s7042_s4 = inlined_call_operand.vmem [shape: f32[4,8], index: 4, kind: input, shape index: {}]   ;;  %s7043_s3 = inlined_call_operand.vmem [shape: f32[256,4], index: 3, kind: input, shape index: {}]   ;;  %s7044_s5 = inlined_call_operand.vmem [shape: f32[1,8], index: 5, kind: input, shape index: {}]   ;;  %s7045_s9 = inlined_call_operand.vmem [shape: f32[64,1], index: 9, kind: input, shape index: {}]   ;;  %s7046_s0 = inlined_call_operand.vmem [shape: s32[1,256], index: 0, kind: input, shape index: {}]   ;;  %s7047_s7 = inlined_call_operand.vmem [shape: f32[8,32], index: 7, kind: input, shape index: {}]   ;;  %s7048_s1 = inlined_call_operand.vmem [shape: f32[64,8], index: 1, kind: input, shape index: {}]   ;;  %s7049_s8 = inlined_call_operand.vmem [shape: f32[1,32], index: 8, kind: input, shape index: {}]   ;;  %s7050_s10 = inlined_call_operand.vmem [shape: f32[1,32], index: 10, kind: input, shape index: {}]   ;;  %s7051_s11 = inlined_call_operand.vmem [shape: f32[1,32], index: 11, kind: input, shape index: {}]   ;;  %s7052_s12 = inlined_call_operand.vmem [shape: f32[64,32], index: 12, kind: output, shape index: {}]  }
   0x1   :  { %v87_v0 = vld [vmem:[%s7040_s6 + $0x8] sm:$0xff]  ;;  %v86_v1 = vld [vmem:[%s7040_s6] sm:$0xff]  ;;  %429 = vmatprep.mubr.f32.mxu1 %v7053_v2  ;;  %v84_v3 = vld [vmem:[%s7041_s2 + $0xf0] sm:$0xff]  ;;  %249 = vmatprep.mubr.f32.mxu0 %v7053_v2  ;;  %v7061_v44 = vmov 2   ;;  %v7059_v45 = vmov 1  }
   0x2   :  { %4008 = vmatprep.subr.mxu1 %v87_v0  ;;  %v474_v4 = vld [vmem:[%s7042_s4] sm:$0xf]  ;;  %215 = vmatprep.subr.mxu0 %v87_v0  ;;  %v85_v5 = vld [vmem:[%s7041_s2 + $0xf8] sm:$0xff]  ;;  %v443_v7 = vld [vmem:[%s7043_s3 + $0x8] sm:$0xff] }
   0x3   :  { %4009 = vmatpush1.msra.mxu1 %v86_v1  ;;  %216 = vmatpush1.msra.mxu0 %v86_v1  ;;  %v442_v6 = vld [vmem:[%s7043_s3] sm:$0xff]  ;;  %v444_v9 = vld [vmem:[%s7043_s3 + $0x10] sm:$0xff]  ;;  %v55_v10 = vld [vmem:[%s7041_s2 + $0x8] sm:$0xff] }
   0x4   :  { %3767 = vmatmul.mubr.msk.f32.vlgmr.msra.gmra.mxu1 %vm88_vm0, %v84_v3  ;;  %3944 = vmatprep.subr.msk.mxu1 %vm579_vm1, %v474_v4  ;;  %v54_v8 = vld [vmem:[%s7041_s2] sm:$0xff]  ;;  %v445_v11 = vld [vmem:[%s7043_s3 + $0x18] sm:$0xff]  ;;  %v56_v13 = vld [vmem:[%s7041_s2 + $0x10] sm:$0xff] }
   0x5   :  { %435 = vmatprep.mubr.f32.mxu1 %v7053_v2  ;;  %3945 = vmatpush3.msk.msra.mxu1 %vm579_vm1, %v474_v4  ;;  %v446_v12 = vld [vmem:[%s7043_s3 + $0x20] sm:$0xff]  ;;  %v447_v14 = vld [vmem:[%s7043_s3 + $0x28] sm:$0xff]  ;;  %v448_v15 = vld [vmem:[%s7043_s3 + $0x30] sm:$0xff] }
   0x6   :  { %3737 = vmatmul.mubr.msk.f32.vlgmr.msra.gmra.mxu0 %vm88_vm0, %v54_v8  ;;  %v57_v16 = vld [vmem:[%s7041_s2 + $0x18] sm:$0xff]  ;;  %v450_v18 = vld [vmem:[%s7043_s3 + $0x40] sm:$0xff]  ;;  %v451_v20 = vld [vmem:[%s7043_s3 + $0x48] sm:$0xff]  ;;  %4024 = vset.pattern.permute.xlu0 %v7061_v44 }
   0x7   :  { %255 = vmatprep.mubr.f32.mxu0 %v7053_v2  ;;  %v449_v17 = vld [vmem:[%s7043_s3 + $0x38] sm:$0xff]  ;;  %v58_v19 = vld [vmem:[%s7041_s2 + $0x20] sm:$0xff]  ;;  %v452_v21 = vld [vmem:[%s7043_s3 + $0x50] sm:$0xff]  ;;  %4023 = vset.pattern.permute.xlu1 %v7059_v45 }
   0x8   :  { %3768 = vmatmul.mubr.msk.f32.gmra.mxu1 %vm88_vm0, %v85_v5  ;;  %v453_v22 = vld [vmem:[%s7043_s3 + $0x58] sm:$0xff]  ;;  %v454_v23 = vld [vmem:[%s7043_s3 + $0x60] sm:$0xff]  ;;  %v455_v24 = vld [vmem:[%s7043_s3 + $0x68] sm:$0xff] }
   0x9   :  { %3946 = vmatprep.mubr.msk.f32.mxu1 %vm482_vm2, %v442_v6  ;;  %v456_v25 = vld [vmem:[%s7043_s3 + $0x70] sm:$0xff]  ;;  %v457_v26 = vld [vmem:[%s7043_s3 + $0x78] sm:$0xff]  ;;  %v458_v27 = vld [vmem:[%s7043_s3 + $0x80] sm:$0xff] }
   0xa   :  { %3738 = vmatmul.mubr.msk.f32.gmra.mxu0 %vm88_vm0, %v55_v10  ;;  %v459_v28 = vld [vmem:[%s7043_s3 + $0x88] sm:$0xff]  ;;  %v460_v29 = vld [vmem:[%s7043_s3 + $0x90] sm:$0xff]  ;;  %v461_v30 = vld [vmem:[%s7043_s3 + $0x98] sm:$0xff] }
   0xb   :  { %261 = vmatprep.mubr.f32.mxu0 %v7053_v2  ;;  %v462_v31 = vld [vmem:[%s7043_s3 + $0xa0] sm:$0xff]  ;;  %v463_v32 = vld [vmem:[%s7043_s3 + $0xa8] sm:$0xff]  ;;  %v464_v33 = vld [vmem:[%s7043_s3 + $0xb0] sm:$0xff] }
   0xc   :  { %3947 = vmatmul.mubr.msk.f32.vlgmr.msra.gmra.mxu1 %vm482_vm2, %v443_v7  ;;  %v465_v34 = vld [vmem:[%s7043_s3 + $0xb8] sm:$0xff]  ;;  %v466_v35 = vld [vmem:[%s7043_s3 + $0xc0] sm:$0xff]  ;;  %v467_v36 = vld [vmem:[%s7043_s3 + $0xc8] sm:$0xff] }
   0xd   :  { %3949 = vmatprep.mubr.msk.f32.mxu1 %vm482_vm2, %v444_v9  ;;  %v59_v37 = vld [vmem:[%s7041_s2 + $0x28] sm:$0xff]  ;;  %v468_v38 = vld [vmem:[%s7043_s3 + $0xd0] sm:$0xff]  ;;  %v469_v39 = vld [vmem:[%s7043_s3 + $0xd8] sm:$0xff] }
   0xe   :  { %3739 = vmatmul.mubr.msk.f32.gmra.mxu0 %vm88_vm0, %v56_v13  ;;  %v60_v40 = vld [vmem:[%s7041_s2 + $0x30] sm:$0xff]  ;;  %v470_v41 = vld [vmem:[%s7043_s3 + $0xe0] sm:$0xff]  ;;  %v471_v42 = vld [vmem:[%s7043_s3 + $0xe8] sm:$0xff] }
   0xf   :  { %267 = vmatprep.mubr.f32.mxu0 %v7053_v2  ;;  %v61_v43 = vld [vmem:[%s7041_s2 + $0x38] sm:$0xff]  ;;  %v472_v46 = vld [vmem:[%s7043_s3 + $0xf0] sm:$0xff]  ;;  %v62_v48 = vld [vmem:[%s7041_s2 + $0x40] sm:$0xff] }
  0x10   :  { %3950 = vmatmul.mubr.msk.f32.gmra.mxu1 %vm482_vm2, %v445_v11  ;;  %v473_v47 = vld [vmem:[%s7043_s3 + $0xf8] sm:$0xff]  ;;  %v63_v49 = vld [vmem:[%s7041_s2 + $0x48] sm:$0xff]  ;;  %v64_v50 = vld [vmem:[%s7041_s2 + $0x50] sm:$0xff]  ;;  %s4236_s3 = smov 64  }
  0x11   :  { %3952 = vmatprep.mubr.msk.f32.mxu1 %vm482_vm2, %v446_v12  ;;  %v65_v51 = vld [vmem:[%s7041_s2 + $0x58] sm:$0xff]  ;;  %v66_v52 = vld [vmem:[%s7041_s2 + $0x60] sm:$0xff]  ;;  %v67_v53 = vld [vmem:[%s7041_s2 + $0x68] sm:$0xff] }
  0x12   :  { %3740 = vmatmul.mubr.msk.f32.gmra.mxu0 %vm88_vm0, %v57_v16  ;;  %v68_v54 = vld [vmem:[%s7041_s2 + $0x70] sm:$0xff]  ;;  %v69_v55 = vld [vmem:[%s7041_s2 + $0x78] sm:$0xff]  ;;  %v70_v56 = vld [vmem:[%s7041_s2 + $0x80] sm:$0xff] }
  0x13   :  { %273 = vmatprep.mubr.f32.mxu0 %v7053_v2  ;;  %v71_v57 = vld [vmem:[%s7041_s2 + $0x88] sm:$0xff]  ;;  %v72_v58 = vld [vmem:[%s7041_s2 + $0x90] sm:$0xff]  ;;  %v73_v59 = vld [vmem:[%s7041_s2 + $0x98] sm:$0xff] }
  0x14   :  { %3953 = vmatmul.mubr.msk.f32.gmra.mxu1 %vm482_vm2, %v447_v14  ;;  %v74_v63 = vld [vmem:[%s7041_s2 + $0xa0] sm:$0xff]  ;;  %v75_v5 = vld [vmem:[%s7041_s2 + $0xa8] sm:$0xff]  ;;  %v76_v12 = vld [vmem:[%s7041_s2 + $0xb0] sm:$0xff] }
  0x15   :  { %3955 = vmatprep.mubr.msk.f32.mxu1 %vm482_vm2, %v448_v15  ;;  %v4572_v1 = vld [vmem:[%s7044_s5] ss:$0 sm:$0xff]  ;;  %v77_v15 = vld [vmem:[%s7041_s2 + $0xb8] sm:$0xff] }
  0x16   :  { %3741 = vmatmul.mubr.msk.f32.gmra.mxu0 %vm88_vm0, %v58_v19 }
  0x17   :  { %279 = vmatprep.mubr.f32.mxu0 %v7053_v2 }
  0x18   :  { %3956 = vmatmul.mubr.msk.f32.gmra.mxu1 %vm482_vm2, %v449_v17 }
  0x19   :  { %3958 = vmatprep.mubr.msk.f32.mxu1 %vm482_vm2, %v450_v18 }
  0x1a   :  { %3742 = vmatmul.mubr.msk.f32.gmra.mxu0 %vm88_vm0, %v59_v37  ;;  %v80_v37 = vld [vmem:[%s7041_s2 + $0xd0] sm:$0xff] }
  0x1b   :  { %285 = vmatprep.mubr.f32.mxu0 %v7053_v2 }
  0x1c   :  { %3959 = vmatmul.mubr.msk.f32.gmra.mxu1 %vm482_vm2, %v451_v20 }
  0x1d   :  { %3961 = vmatprep.mubr.msk.f32.mxu1 %vm482_vm2, %v452_v21  ;;  %v7057_v21 = vmov 3  }
  0x1e   :  { %3743 = vmatmul.mubr.msk.f32.gmra.mxu0 %vm88_vm0, %v60_v40  ;;  %v81_v40 = vld [vmem:[%s7041_s2 + $0xd8] sm:$0xff] }
  0x1f   :  { %291 = vmatprep.mubr.f32.mxu0 %v7053_v2 }
  0x20   :  { %3962 = vmatmul.mubr.msk.f32.gmra.mxu1 %vm482_vm2, %v453_v22 }
  0x21   :  { %3964 = vmatprep.mubr.msk.f32.mxu1 %vm482_vm2, %v454_v23 }
  0x22   :  { %3744 = vmatmul.mubr.msk.f32.gmra.mxu0 %vm88_vm0, %v61_v43 }
  0x23   :  { %297 = vmatprep.mubr.f32.mxu0 %v7053_v2 }
  0x24   :  { %3965 = vmatmul.mubr.msk.f32.gmra.mxu1 %vm482_vm2, %v455_v24 }
  0x25   :  { %3967 = vmatprep.mubr.msk.f32.mxu1 %vm482_vm2, %v456_v25  ;;  %v78_v25 = vld [vmem:[%s7041_s2 + $0xc0] sm:$0xff] }
  0x26   :  { %3745 = vmatmul.mubr.msk.f32.gmra.mxu0 %vm88_vm0, %v62_v48 }
  0x27   :  { %303 = vmatprep.mubr.f32.mxu0 %v7053_v2 }
  0x28   :  { %3968 = vmatmul.mubr.msk.f32.gmra.mxu1 %vm482_vm2, %v457_v26 }
  0x29   :  { %3970 = vmatprep.mubr.msk.f32.mxu1 %vm482_vm2, %v458_v27 }
  0x2a   :  { %3746 = vmatmul.mubr.msk.f32.gmra.mxu0 %vm88_vm0, %v63_v49  ;;  %v82_v49 = vld [vmem:[%s7041_s2 + $0xe0] sm:$0xff] }
  0x2b   :  { %309 = vmatprep.mubr.f32.mxu0 %v7053_v2 }
  0x2c   :  { %3971 = vmatmul.mubr.msk.f32.gmra.mxu1 %vm482_vm2, %v459_v28 }
  0x2d   :  { %3973 = vmatprep.mubr.msk.f32.mxu1 %vm482_vm2, %v460_v29  ;;  %v79_v29 = vld [vmem:[%s7041_s2 + $0xc8] sm:$0xff] }
  0x2e   :  { %3747 = vmatmul.mubr.msk.f32.gmra.mxu0 %vm88_vm0, %v64_v50 }
  0x2f   :  { %315 = vmatprep.mubr.f32.mxu0 %v7053_v2 }
  0x30   :  { %3974 = vmatmul.mubr.msk.f32.gmra.mxu1 %vm482_vm2, %v461_v30  ;;  %v7055_v30 = vmov 0  }
  0x31   :  { %3976 = vmatprep.mubr.msk.f32.mxu1 %vm482_vm2, %v462_v31 }
  0x32   :  { %3748 = vmatmul.mubr.msk.f32.gmra.mxu0 %vm88_vm0, %v65_v51 }
  0x33   :  { %321 = vmatprep.mubr.f32.mxu0 %v7053_v2 }
  0x34   :  { %3977 = vmatmul.mubr.msk.f32.gmra.mxu1 %vm482_vm2, %v463_v32 }
  0x35   :  { %3979 = vmatprep.mubr.msk.f32.mxu1 %vm482_vm2, %v464_v33 }
  0x36   :  { %3749 = vmatmul.mubr.msk.f32.gmra.mxu0 %vm88_vm0, %v66_v52  ;;  %v83_v52 = vld [vmem:[%s7041_s2 + $0xe8] sm:$0xff]  ;;  %s4234_s2 = smov 96  }
  0x37   :  { %327 = vmatprep.mubr.f32.mxu0 %v7053_v2 }
  0x38   :  { %3980 = vmatmul.mubr.msk.f32.gmra.mxu1 %vm482_vm2, %v465_v34 }
  0x39   :  { %3982 = vmatprep.mubr.msk.f32.mxu1 %vm482_vm2, %v466_v35 }
  0x3a   :  { %3750 = vmatmul.mubr.msk.f32.gmra.mxu0 %vm88_vm0, %v67_v53 }
  0x3b   :  { %333 = vmatprep.mubr.f32.mxu0 %v7053_v2 }
  0x3c   :  { %3983 = vmatmul.mubr.msk.f32.gmra.mxu1 %vm482_vm2, %v467_v36 }
  0x3d   :  { %3985 = vmatprep.mubr.msk.f32.mxu1 %vm482_vm2, %v468_v38 }
  0x3e   :  { %3751 = vmatmul.mubr.msk.f32.gmra.mxu0 %vm88_vm0, %v68_v54 }
  0x3f   :  { %339 = vmatprep.mubr.f32.mxu0 %v7053_v2 }
  0x40   :  { %3986 = vmatmul.mubr.msk.f32.gmra.mxu1 %vm482_vm2, %v469_v39 }
  0x41   :  { %3988 = vmatprep.mubr.msk.f32.mxu1 %vm482_vm2, %v470_v41 }
  0x42   :  { %3752 = vmatmul.mubr.msk.f32.gmra.mxu0 %vm88_vm0, %v69_v55 }
  0x43   :  { %345 = vmatprep.mubr.f32.mxu0 %v7053_v2 }
  0x44   :  { %3989 = vmatmul.mubr.msk.f32.gmra.mxu1 %vm482_vm2, %v471_v42 }
  0x45   :  { %3991 = vmatprep.mubr.msk.f32.mxu1 %vm482_vm2, %v472_v46 }
  0x46   :  { %3753 = vmatmul.mubr.msk.f32.gmra.mxu0 %vm88_vm0, %v70_v56 }
  0x47   :  { %351 = vmatprep.mubr.f32.mxu0 %v7053_v2 }
  0x48   :  { %3992 = vmatmul.mubr.msk.f32.gmra.mxu1 %vm482_vm2, %v473_v47 }
  0x4a   :  { %3754 = vmatmul.mubr.msk.f32.gmra.mxu0 %vm88_vm0, %v71_v57 }
  0x4b   :  { %357 = vmatprep.mubr.f32.mxu0 %v7053_v2 }
  0x4e   :  { %3755 = vmatmul.mubr.msk.f32.gmra.mxu0 %vm88_vm0, %v72_v58 }
  0x4f   :  { %363 = vmatprep.mubr.f32.mxu0 %v7053_v2 }
  0x52   :  { %3756 = vmatmul.mubr.msk.f32.gmra.mxu0 %vm88_vm0, %v73_v59 }
  0x53   :  { %369 = vmatprep.mubr.f32.mxu0 %v7053_v2 }
  0x56   :  { %3757 = vmatmul.mubr.msk.f32.gmra.mxu0 %vm88_vm0, %v74_v63 }
  0x57   :  { %375 = vmatprep.mubr.f32.mxu0 %v7053_v2 }
  0x5a   :  { %3758 = vmatmul.mubr.msk.f32.gmra.mxu0 %vm88_vm0, %v75_v5 }
  0x5b   :  { %381 = vmatprep.mubr.f32.mxu0 %v7053_v2 }
  0x5e   :  { %3759 = vmatmul.mubr.msk.f32.gmra.mxu0 %vm88_vm0, %v76_v12 }
  0x5f   :  { %387 = vmatprep.mubr.f32.mxu0 %v7053_v2 }
  0x62   :  { %3760 = vmatmul.mubr.msk.f32.gmra.mxu0 %vm88_vm0, %v77_v15 }
  0x63   :  { %393 = vmatprep.mubr.f32.mxu0 %v7053_v2 }
  0x66   :  { %3761 = vmatmul.mubr.msk.f32.gmra.mxu0 %vm88_vm0, %v78_v25 }
  0x67   :  { %399 = vmatprep.mubr.f32.mxu0 %v7053_v2 }
  0x6a   :  { %3762 = vmatmul.mubr.msk.f32.gmra.mxu0 %vm88_vm0, %v79_v29 }
  0x6b   :  { %405 = vmatprep.mubr.f32.mxu0 %v7053_v2 }
  0x6e   :  { %3763 = vmatmul.mubr.msk.f32.gmra.mxu0 %vm88_vm0, %v80_v37 }
  0x6f   :  { %411 = vmatprep.mubr.f32.mxu0 %v7053_v2 }
  0x72   :  { %3764 = vmatmul.mubr.msk.f32.gmra.mxu0 %vm88_vm0, %v81_v40 }
  0x73   :  { %417 = vmatprep.mubr.f32.mxu0 %v7053_v2 }
  0x76   :  { %3765 = vmatmul.mubr.msk.f32.gmra.mxu0 %vm88_vm0, %v82_v49 }
  0x77   :  { %423 = vmatprep.mubr.f32.mxu0 %v7053_v2 }
  0x7a   :  { %3766 = vmatmul.mubr.msk.f32.gmra.mxu0 %vm88_vm0, %v83_v52 }
  0xc4   :  { %v4557_v60 = vpop.f32.mrf.mxu1 }
  0xc5   :  { %7199 = vst [vmem:[#allocation3_spill] sm:$0xff] %v4557_v60 }
  0xc6   :  { %v4559_v61 = vpop.f32.mrf.mxu1 }
  0xc7   :  { %7200 = vst [vmem:[#allocation4_spill] sm:$0xff] %v4559_v61 }
  0xc8   :  { %v4561_v62 = vpop.f32.mrf.mxu1 }
  0xc9   :  { %7201 = vst [vmem:[#allocation5_spill] sm:$0xff] %v4561_v62 }
  0xca   :  { %v4567_v0 = vpop.f32.mrf.mxu1 }
  0xcb   :  { %7202 = vst [vmem:[#allocation6_spill] sm:$0xff] %v4567_v0 }
  0xcc   :  { %v3948_v3 = vpop.f32.mrf.mxu1 }
  0xcd   :  { %v655_v4 = vadd.f32 %v3948_v3, %v4572_v1 }
  0xce   :  { %v649_v6 = vpop.f32.mrf.mxu1 }
  0xcf   :  { %v810_v7 = vmul.f32 1.442695, %v655_v4  ;;  %v650_v8 = vadd.f32 %v4572_v1, %v649_v6 }
  0xd0   :  { %v3951_v10 = vpop.f32.mrf.mxu1 }
  0xd1   :  { %4163 = vpow2.f32 %v810_v7  ;;  %v808_v9 = vmul.f32 1.442695, %v650_v8  ;;  %v665_v11 = vadd.f32 %v3951_v10, %v4572_v1 }
  0xd2   :  { %v659_v14 = vpop.f32.mrf.mxu1 }
  0xd3   :  { %4165 = vpow2.f32 %v808_v9  ;;  %v814_v13 = vmul.f32 1.442695, %v665_v11  ;;  %v660_v19 = vadd.f32 %v4572_v1, %v659_v14 }
  0xd4   :  { %v3954_v16 = vpop.f32.mrf.mxu1 }
  0xd5   :  { %4167 = vpow2.f32 %v814_v13  ;;  %v675_v18 = vadd.f32 %v3954_v16, %v4572_v1  ;;  %v812_v23 = vmul.f32 1.442695, %v660_v19 }
  0xd6   :  { %v669_v24 = vpop.f32.mrf.mxu1 }
  0xd7   :  { %v818_v22 = vmul.f32 1.442695, %v675_v18  ;;  %v670_v26 = vadd.f32 %v4572_v1, %v669_v24 }
  0xd8   :  { %v3957_v28 = vpop.f32.mrf.mxu1 }
  0xd9   :  { %4169 = vpow2.f32 %v818_v22  ;;  %v816_v31 = vmul.f32 1.442695, %v670_v26  ;;  %v685_v32 = vadd.f32 %v3957_v28, %v4572_v1 }
  0xda   :  { %4171 = vpow2.f32 %v812_v23  ;;  %v679_v35 = vpop.f32.mrf.mxu1 }
  0xdb   :  { %4173 = vpow2.f32 %v816_v31  ;;  %v822_v33 = vmul.f32 1.442695, %v685_v32  ;;  %v680_v38 = vadd.f32 %v4572_v1, %v679_v35 }
  0xdc   :  { %v3960_v39 = vpop.f32.mrf.mxu1 }
  0xdd   :  { %4175 = vpow2.f32 %v822_v33  ;;  %v820_v41 = vmul.f32 1.442695, %v680_v38  ;;  %v695_v42 = vadd.f32 %v3960_v39, %v4572_v1 }
  0xde   :  { %v4591_v17 = vpop.eup %4163  ;;  %v689_v48 = vpop.f32.mrf.mxu1 }
  0xdf   :  { %7203 = vst [vmem:[#allocation7_spill] sm:$0xff] %v4591_v17  ;;  %1389 = vperm.xlu0 %4024, %v4591_v17   ;;  %1069 = vperm.xlu1 %4023, %v4591_v17   ;;  %4177 = vpow2.f32 %v820_v41  ;;  %v826_v46 = vmul.f32 1.442695, %v695_v42  ;;  %v690_v50 = vadd.f32 %v4572_v1, %v689_v48 }
  0xe0   :  { %v4599_v20 = vpop.eup %4165  ;;  %v3963_v51 = vpop.f32.mrf.mxu1 }
  0xe1   :  { %7204 = vst [vmem:[#allocation8_spill] sm:$0xff] %v4599_v20  ;;  %4179 = vpow2.f32 %v826_v46  ;;  %v824_v53 = vmul.f32 1.442695, %v690_v50  ;;  %v705_v54 = vadd.f32 %v3963_v51, %v4572_v1 }
  0xe2   :  { %v4614_v27 = vpop.eup %4167  ;;  %v699_v58 = vpop.f32.mrf.mxu1 }
  0xe3   :  { %4026 = vset.pattern.permute.xlu0 %v7059_v45  ;;  %4025 = vset.pattern.permute.xlu1 %v7057_v21  ;;  %7205 = vst [vmem:[#allocation9_spill] sm:$0xff] %v4614_v27  ;;  %4181 = vpow2.f32 %v824_v53  ;;  %v830_v56 = vmul.f32 1.442695, %v705_v54  ;;  %v700_v59 = vadd.f32 %v4572_v1, %v699_v58 }
  0xe4   :  { %1709 = vperm.xlu1 %4025, %v4591_v17   ;;  %1065 = vperm.xlu0 %4026, %v4599_v20   ;;  %v3966_v63 = vpop.f32.mrf.mxu1 }
  0xe5   :  { %4183 = vpow2.f32 %v830_v56  ;;  %v828_v3 = vmul.f32 1.442695, %v700_v59  ;;  %v715_v4 = vadd.f32 %v3966_v63, %v4572_v1 }
  0xe6   :  { %v4631_v34 = vpop.eup %4169  ;;  %v709_v8 = vpop.f32.mrf.mxu1 }
  0xe7   :  { %7206 = vst [vmem:[#allocation10_spill] sm:$0xff] %v4631_v34  ;;  %v4633_v36 = vpop.eup %4171  ;;  %4185 = vpow2.f32 %v828_v3  ;;  %v834_v6 = vmul.f32 1.442695, %v715_v4  ;;  %v710_v9 = vadd.f32 %v4572_v1, %v709_v8 }
  0xe8   :  { %4027 = vset.pattern.permute.xlu1 %v7061_v44  ;;  %4028 = vset.pattern.permute.xlu0 %v7057_v21  ;;  %7207 = vst [vmem:[#allocation11_spill] sm:$0xff] %v4633_v36  ;;  %v4654_v43 = vpop.eup %4173  ;;  %v3969_v10 = vpop.f32.mrf.mxu1 }
  0xe9   :  { %1385 = vperm.xlu1 %4027, %v4599_v20   ;;  %1705 = vperm.xlu0 %4028, %v4599_v20   ;;  %7208 = vst [vmem:[#allocation12_spill] sm:$0xff] %v4654_v43  ;;  %4187 = vpow2.f32 %v834_v6  ;;  %v832_v11 = vmul.f32 1.442695, %v710_v9  ;;  %v725_v12 = vadd.f32 %v3969_v10, %v4572_v1 }
  0xea   :  { %v4661_v47 = vpop.eup %4175  ;;  %v719_v16 = vpop.f32.mrf.mxu1 }
  0xeb   :  { %7209 = vst [vmem:[#allocation13_spill] sm:$0xff] %v4661_v47  ;;  %4189 = vpow2.f32 %v832_v11  ;;  %v838_v14 = vmul.f32 1.442695, %v725_v12  ;;  %v720_v18 = vadd.f32 %v4572_v1, %v719_v16 }
  0xec   :  { %v4682_v55 = vpop.eup %4177  ;;  %v3972_v19 = vpop.f32.mrf.mxu1 }
  0xed   :  { %4029 = vset.pattern.permute.xlu1 %v7055_v30  ;;  %4030 = vset.pattern.permute.xlu0 %v7059_v45  ;;  %7210 = vst [vmem:[#allocation14_spill] sm:$0xff] %v4682_v55  ;;  %4191 = vpow2.f32 %v838_v14  ;;  %v836_v22 = vmul.f32 1.442695, %v720_v18  ;;  %v735_v23 = vadd.f32 %v3972_v19, %v4572_v1 }
  0xee   :  { %889 = vperm.xlu1 %4029, %v4614_v27   ;;  %1077 = vperm.xlu0 %4030, %v4614_v27   ;;  %v4688_v57 = vpop.eup %4179  ;;  %v729_v28 = vpop.f32.mrf.mxu1 }
  0xef   :  { %7211 = vst [vmem:[#allocation15_spill] sm:$0xff] %v4688_v57  ;;  %4193 = vpow2.f32 %v836_v22  ;;  %v842_v25 = vmul.f32 1.442695, %v735_v23  ;;  %v730_v29 = vadd.f32 %v4572_v1, %v729_v28  ;;  %v4823_v22 = vpop.f32.mrf.mxu0 }
  0xf0   :  { %v4700_v5 = vpop.eup %4181  ;;  %v3975_v31 = vpop.f32.mrf.mxu1  ;;  %7225 = vst [vmem:[#allocation29_spill] sm:$0xff] %v4823_v22 }
  0xf1   :  { %7212 = vst [vmem:[#allocation16_spill] sm:$0xff] %v4700_v5  ;;  %4195 = vpow2.f32 %v842_v25  ;;  %v840_v32 = vmul.f32 1.442695, %v730_v29  ;;  %v745_v33 = vadd.f32 %v3975_v31, %v4572_v1  ;;  %v4833_v31 = vpop.f32.mrf.mxu0 }
  0xf2   :  { %4031 = vset.pattern.permute.xlu1 %v7061_v44  ;;  %4032 = vset.pattern.permute.xlu0 %v7057_v21  ;;  %v4706_v7 = vpop.eup %4183  ;;  %v739_v39 = vpop.f32.mrf.mxu1  ;;  %7227 = vst [vmem:[#allocation31_spill] sm:$0xff] %v4833_v31 }
  0xf3   :  { %1397 = vperm.xlu1 %4031, %v4614_v27   ;;  %1717 = vperm.xlu0 %4032, %v4614_v27   ;;  %7213 = vst [vmem:[#allocation17_spill] sm:$0xff] %v4706_v7  ;;  %4197 = vpow2.f32 %v840_v32  ;;  %v846_v37 = vmul.f32 1.442695, %v745_v33  ;;  %v740_v40 = vadd.f32 %v4572_v1, %v739_v39 }
  0xf4   :  { %v4718_v13 = vpop.eup %4185  ;;  %v3978_v41 = vpop.f32.mrf.mxu1 }
  0xf5   :  { %7214 = vst [vmem:[#allocation18_spill] sm:$0xff] %v4718_v13  ;;  %4199 = vpow2.f32 %v846_v37  ;;  %v844_v42 = vmul.f32 1.442695, %v740_v40  ;;  %v755_v46 = vadd.f32 %v3978_v41, %v4572_v1  ;;  %v4844_v40 = vpop.f32.mrf.mxu0 }
  0xf6   :  { %v4724_v15 = vpop.eup %4187  ;;  %v749_v53 = vpop.f32.mrf.mxu1  ;;  %7229 = vst [vmem:[#allocation33_spill] sm:$0xff] %v4844_v40 }
  0xf7   :  { %4033 = vset.pattern.permute.xlu1 %v7055_v30  ;;  %4038 = vset.pattern.permute.xlu0 %v7059_v45  ;;  %7215 = vst [vmem:[#allocation19_spill] sm:$0xff] %v4724_v15  ;;  %4201 = vpow2.f32 %v844_v42  ;;  %v850_v51 = vmul.f32 1.442695, %v755_v46  ;;  %v750_v58 = vadd.f32 %v4572_v1, %v749_v53  ;;  %v4850_v46 = vpop.f32.mrf.mxu0 }
  0xf8   :  { %884 = vperm.xlu1 %4033, %v4633_v36   ;;  %1085 = vperm.xlu0 %4038, %v4631_v34   ;;  %v4736_v24 = vpop.eup %4189  ;;  %v3981_v59 = vpop.f32.mrf.mxu1  ;;  %7231 = vst [vmem:[#allocation35_spill] sm:$0xff] %v4850_v46 }
  0xf9   :  { %7216 = vst [vmem:[#allocation20_spill] sm:$0xff] %v4736_v24  ;;  %4203 = vpow2.f32 %v850_v51  ;;  %v848_v4 = vmul.f32 1.442695, %v750_v58  ;;  %v765_v6 = vadd.f32 %v3981_v59, %v4572_v1 }
  0xfa   :  { %v4742_v26 = vpop.eup %4191  ;;  %v759_v16 = vpop.f32.mrf.mxu1 }
  0xfb   :  { %7217 = vst [vmem:[#allocation21_spill] sm:$0xff] %v4742_v26  ;;  %4205 = vpow2.f32 %v848_v4  ;;  %v854_v11 = vmul.f32 1.442695, %v765_v6  ;;  %v760_v19 = vadd.f32 %v4572_v1, %v759_v16  ;;  %v4861_v4 = vpop.f32.mrf.mxu0 }
  0xfc   :  { %4034 = vset.pattern.permute.xlu1 %v7059_v45  ;;  %4040 = vset.pattern.permute.xlu0 %v7057_v21  ;;  %v4754_v35 = vpop.eup %4193  ;;  %v3984_v23 = vpop.f32.mrf.mxu1  ;;  %7232 = vst [vmem:[#allocation36_spill] sm:$0xff] %v4861_v4 }
  0xfd   :  { %1073 = vperm.xlu1 %4034, %v4633_v36   ;;  %1725 = vperm.xlu0 %4040, %v4631_v34   ;;  %7218 = vst [vmem:[#allocation22_spill] sm:$0xff] %v4754_v35  ;;  %4207 = vpow2.f32 %v854_v11  ;;  %v852_v29 = vmul.f32 1.442695, %v760_v19  ;;  %v775_v32 = vadd.f32 %v3984_v23, %v4572_v1  ;;  %v4871_v23 = vpop.f32.mrf.mxu0 }
  0xfe   :  { %v4760_v38 = vpop.eup %4195  ;;  %v769_v53 = vpop.f32.mrf.mxu1  ;;  %7233 = vst [vmem:[#allocation37_spill] sm:$0xff] %v4871_v23 }
  0xff   :  { %7219 = vst [vmem:[#allocation23_spill] sm:$0xff] %v4760_v38  ;;  %4209 = vpow2.f32 %v852_v29  ;;  %v858_v41 = vmul.f32 1.442695, %v775_v32  ;;  %v770_v59 = vadd.f32 %v4572_v1, %v769_v53  ;;  %v4882_v2 = vpop.f32.mrf.mxu0 }
 0x100   :  { %v4772_v48 = vpop.eup %4197  ;;  %v3987_v6 = vpop.f32.mrf.mxu1  ;;  %7236 = vst [vmem:[#allocation40_spill] sm:$0xff] %v4882_v2 }
 0x101   :  { %4035 = vset.pattern.permute.xlu1 %v7061_v44  ;;  %4042 = vset.pattern.permute.xlu0 %v7061_v44  ;;  %7220 = vst [vmem:[#allocation24_spill] sm:$0xff] %v4772_v48  ;;  %4211 = vpow2.f32 %v858_v41  ;;  %v856_v19 = vmul.f32 1.442695, %v770_v59  ;;  %v785_v29 = vadd.f32 %v3987_v6, %v4572_v1  ;;  %v4888_v6 = vpop.f32.mrf.mxu0 }
 0x102   :  { %1393 = vperm.xlu1 %4035, %v4633_v36   ;;  %1401 = vperm.xlu0 %4042, %v4654_v43   ;;  %v4782_v52 = vpop.eup %4199  ;;  %7238 = vst [vmem:[#allocation42_spill] sm:$0xff] %v4888_v6 }
 0x103   :  { %7221 = vst [vmem:[#allocation25_spill] sm:$0xff] %v4782_v52  ;;  %4213 = vpow2.f32 %v856_v19  ;;  %v862_v59 = vmul.f32 1.442695, %v785_v29  ;;  %v7239_v19 = vmov 1  }
 0x104   :  { %v4802_v8 = vpop.eup %4201 }
 0x105   :  { %7222 = vst [vmem:[#allocation26_spill] sm:$0xff] %v4802_v8  ;;  %4215 = vpow2.f32 %v862_v59  ;;  %v7241_v59 = vmov 3  }
 0x106   :  { %4036 = vset.pattern.permute.xlu1 %v7057_v21  ;;  %4045 = vset.pattern.permute.xlu0 %v7059_v45  ;;  %v4812_v12 = vpop.eup %4203 }
 0x107   :  { %1713 = vperm.xlu1 %4036, %v4633_v36   ;;  %1093 = vperm.xlu0 %4045, %v4661_v47   ;;  %7224 = vst [vmem:[#allocation28_spill] sm:$0xff] %v4812_v12  ;;  %v7244_v36 = vmov 0  }
 0x108   :  { %v4836_v33 = vpop.eup %4205 }
 0x109   :  { %7228 = vst [vmem:[#allocation32_spill] sm:$0xff] %v4836_v33 }
 0x10a   :  { %v4848_v42 = vpop.eup %4207 }
 0x10b   :  { %4037 = vset.pattern.permute.xlu1 %v7055_v30  ;;  %4047 = vset.pattern.permute.xlu0 %v7057_v21  ;;  %7230 = vst [vmem:[#allocation34_spill] sm:$0xff] %v4848_v42 }
 0x10c   :  { %899 = vperm.xlu1 %4037, %v4631_v34   ;;  %1733 = vperm.xlu0 %4047, %v4661_v47   ;;  %v4874_v32 = vpop.eup %4209 }
 0x10d   :  { %7234 = vst [vmem:[#allocation38_spill] sm:$0xff] %v4874_v32 }
 0x110   :  { %4039 = vset.pattern.permute.xlu1 %v7061_v44  ;;  %4049 = vset.pattern.permute.xlu0 %v7061_v44 }
 0x111   :  { %1405 = vperm.xlu1 %4039, %v4631_v34   ;;  %1409 = vperm.xlu0 %4049, %v4682_v55  }
 0x115   :  { %4041 = vset.pattern.permute.xlu1 %v7059_v45  ;;  %4052 = vset.pattern.permute.xlu0 %v7059_v45 }
 0x116   :  { %1081 = vperm.xlu1 %4041, %v4654_v43   ;;  %1101 = vperm.xlu0 %4052, %v4688_v57  }
 0x11a   :  { %4043 = vset.pattern.permute.xlu1 %v7057_v21  ;;  %4054 = vset.pattern.permute.xlu0 %v7057_v21 }
 0x11b   :  { %1721 = vperm.xlu1 %4043, %v4654_v43   ;;  %1741 = vperm.xlu0 %4054, %v4688_v57  }
 0x11f   :  { %4044 = vset.pattern.permute.xlu1 %v7055_v30  ;;  %4056 = vset.pattern.permute.xlu0 %v7061_v44 }
 0x120   :  { %909 = vperm.xlu1 %4044, %v4661_v47   ;;  %1417 = vperm.xlu0 %4056, %v4700_v5  }
 0x124   :  { %4046 = vset.pattern.permute.xlu1 %v7061_v44  ;;  %4059 = vset.pattern.permute.xlu0 %v7059_v45 }
 0x125   :  { %1413 = vperm.xlu1 %4046, %v4661_v47   ;;  %1109 = vperm.xlu0 %4059, %v4706_v7  }
 0x129   :  { %4048 = vset.pattern.permute.xlu1 %v7059_v45  ;;  %4061 = vset.pattern.permute.xlu0 %v7057_v21 }
 0x12a   :  { %1089 = vperm.xlu1 %4048, %v4682_v55   ;;  %1749 = vperm.xlu0 %4061, %v4706_v7  }
 0x12e   :  { %4050 = vset.pattern.permute.xlu1 %v7057_v21  ;;  %4063 = vset.pattern.permute.xlu0 %v7061_v44 }
 0x12f   :  { %1729 = vperm.xlu1 %4050, %v4682_v55   ;;  %1425 = vperm.xlu0 %4063, %v4718_v13  }
 0x133   :  { %4051 = vset.pattern.permute.xlu1 %v7055_v30  ;;  %4066 = vset.pattern.permute.xlu0 %v7059_v45 }
 0x134   :  { %919 = vperm.xlu1 %4051, %v4688_v57   ;;  %1117 = vperm.xlu0 %4066, %v4724_v15  }
 0x138   :  { %4053 = vset.pattern.permute.xlu1 %v7061_v44  ;;  %4068 = vset.pattern.permute.xlu0 %v7057_v21 }
 0x139   :  { %1421 = vperm.xlu1 %4053, %v4688_v57   ;;  %1757 = vperm.xlu0 %4068, %v4724_v15  }
 0x13d   :  { %4055 = vset.pattern.permute.xlu1 %v7059_v45  ;;  %4070 = vset.pattern.permute.xlu0 %v7061_v44 }
 0x13e   :  { %1097 = vperm.xlu1 %4055, %v4700_v5   ;;  %1433 = vperm.xlu0 %4070, %v4736_v24  }
 0x142   :  { %4057 = vset.pattern.permute.xlu1 %v7057_v21  ;;  %4073 = vset.pattern.permute.xlu0 %v7059_v45 }
 0x143   :  { %1737 = vperm.xlu1 %4057, %v4700_v5   ;;  %1125 = vperm.xlu0 %4073, %v4742_v26  }
 0x147   :  { %4058 = vset.pattern.permute.xlu1 %v7055_v30  ;;  %4075 = vset.pattern.permute.xlu0 %v7057_v21 }
 0x148   :  { %929 = vperm.xlu1 %4058, %v4706_v7   ;;  %1765 = vperm.xlu0 %4075, %v4742_v26  }
 0x14c   :  { %4060 = vset.pattern.permute.xlu1 %v7061_v44  ;;  %4077 = vset.pattern.permute.xlu0 %v7061_v44 }
 0x14d   :  { %1429 = vperm.xlu1 %4060, %v4706_v7   ;;  %1441 = vperm.xlu0 %4077, %v4754_v35  }
 0x151   :  { %4062 = vset.pattern.permute.xlu1 %v7059_v45  ;;  %4080 = vset.pattern.permute.xlu0 %v7059_v45 }
 0x152   :  { %1105 = vperm.xlu1 %4062, %v4718_v13   ;;  %1133 = vperm.xlu0 %4080, %v4760_v38  }
 0x156   :  { %4064 = vset.pattern.permute.xlu1 %v7057_v21  ;;  %4082 = vset.pattern.permute.xlu0 %v7057_v21 }
 0x157   :  { %1745 = vperm.xlu1 %4064, %v4718_v13   ;;  %1773 = vperm.xlu0 %4082, %v4760_v38  }
 0x15a   :  { %v4774_v49 = vpop.permute.xlu0 %1389  ;;  %v4776_v50 = vpop.permute.xlu1 %1069 }
 0x15b   :  { %4065 = vset.pattern.permute.xlu1 %v7055_v30  ;;  %4084 = vset.pattern.permute.xlu0 %v7061_v44 }
 0x15c   :  { %939 = vperm.xlu1 %4065, %v4724_v15   ;;  %1449 = vperm.xlu0 %4084, %v4772_v48  }
 0x15f   :  { %v4784_v54 = vpop.permute.xlu1 %1709  ;;  %v4786_v56 = vpop.permute.xlu0 %1065 }
 0x160   :  { %4067 = vset.pattern.permute.xlu1 %v7061_v44  ;;  %4087 = vset.pattern.permute.xlu0 %v7059_v45 }
 0x161   :  { %1437 = vperm.xlu1 %4067, %v4724_v15   ;;  %1141 = vperm.xlu0 %4087, %v4782_v52  }
 0x164   :  { %v4793_v63 = vpop.permute.xlu1 %1385  ;;  %v4795_v3 = vpop.permute.xlu0 %1705 }
 0x165   :  { %4069 = vset.pattern.permute.xlu1 %v7059_v45  ;;  %4089 = vset.pattern.permute.xlu0 %v7057_v21 }
 0x166   :  { %1113 = vperm.xlu1 %4069, %v4736_v24   ;;  %1781 = vperm.xlu0 %4089, %v4782_v52  }
 0x169   :  { %v4804_v9 = vpop.permute.xlu1 %889  ;;  %v4806_v10 = vpop.permute.xlu0 %1077 }
 0x16a   :  { %7223 = vst [vmem:[#allocation27_spill] sm:$0xff] %v4804_v9  ;;  %4071 = vset.pattern.permute.xlu1 %v7057_v21  ;;  %4091 = vset.pattern.permute.xlu0 %v7061_v44  ;;  %v4899_v9 = vpop.f32.mrf.mxu0 }
 0x16b   :  { %1753 = vperm.xlu1 %4071, %v4736_v24   ;;  %1457 = vperm.xlu0 %4091, %v4802_v8   ;;  %7240 = vst [vmem:[#allocation43_spill] sm:$0xff] %v4899_v9 }
 0x16c   :  { %v4909_v6 = vpop.f32.mrf.mxu0 }
 0x16d   :  { %7242 = vst [vmem:[#allocation44_spill] sm:$0xff] %v4909_v6 }
 0x16e   :  { %v4814_v14 = vpop.permute.xlu1 %1397  ;;  %v4816_v18 = vpop.permute.xlu0 %1717 }
 0x16f   :  { %4072 = vset.pattern.permute.xlu1 %v7055_v30  ;;  %4094 = vset.pattern.permute.xlu0 %v7059_v45 }
 0x170   :  { %949 = vperm.xlu1 %4072, %v4742_v26   ;;  %1149 = vperm.xlu0 %4094, %v4812_v12  }
 0x173   :  { %v4825_v25 = vpop.permute.xlu1 %884  ;;  %v4827_v28 = vpop.permute.xlu0 %1085 }
 0x174   :  { %7226 = vst [vmem:[#allocation30_spill] sm:$0xff] %v4825_v25  ;;  %4074 = vset.pattern.permute.xlu1 %v7061_v44  ;;  %4096 = vset.pattern.permute.xlu0 %v7057_v21 }
 0x175   :  { %1445 = vperm.xlu1 %4074, %v4742_v26   ;;  %1789 = vperm.xlu0 %4096, %v4812_v12   ;;  %v4920_v26 = vpop.f32.mrf.mxu0 }
 0x176   :  { %7246 = vst [vmem:[#allocation46_spill] sm:$0xff] %v4920_v26 }
 0x178   :  { %v4838_v37 = vpop.permute.xlu1 %1073  ;;  %v4840_v39 = vpop.permute.xlu0 %1725 }
 0x179   :  { %4076 = vset.pattern.permute.xlu1 %v7059_v45  ;;  %4098 = vset.pattern.permute.xlu0 %v7061_v44 }
 0x17a   :  { %1121 = vperm.xlu1 %4076, %v4754_v35   ;;  %1465 = vperm.xlu0 %4098, %v4836_v33  }
 0x17d   :  { %v4852_v51 = vpop.permute.xlu1 %1393  ;;  %v4856_v58 = vpop.permute.xlu0 %1401 }
 0x17e   :  { %4078 = vset.pattern.permute.xlu1 %v7057_v21  ;;  %4101 = vset.pattern.permute.xlu0 %v7059_v45  ;;  %v779_v45 = vpop.f32.mrf.mxu1 }
 0x17f   :  { %1761 = vperm.xlu1 %4078, %v4754_v35   ;;  %1157 = vperm.xlu0 %4101, %v4848_v42   ;;  %v780_v29 = vadd.f32 %v4572_v1, %v779_v45 }
 0x180   :  { %v3990_v25 = vpop.f32.mrf.mxu1 }
 0x181   :  { %v860_v23 = vmul.f32 1.442695, %v780_v29  ;;  %v795_v45 = vadd.f32 %v3990_v25, %v4572_v1  ;;  %v4926_v25 = vpop.f32.mrf.mxu0 }
 0x182   :  { %v4863_v11 = vpop.permute.xlu1 %1713  ;;  %v4865_v16 = vpop.permute.xlu0 %1093  ;;  %7248 = vst [vmem:[#allocation48_spill] sm:$0xff] %v4926_v25 }
 0x183   :  { %4079 = vset.pattern.permute.xlu1 %v7055_v30  ;;  %4103 = vset.pattern.permute.xlu0 %v7057_v21  ;;  %v4886_v30 = vpop.eup %4211  ;;  %4217 = vpow2.f32 %v860_v23  ;;  %v866_v29 = vmul.f32 1.442695, %v795_v45  ;;  %v789_v7 = vpop.f32.mrf.mxu1 }
 0x184   :  { %959 = vperm.xlu1 %4079, %v4760_v38   ;;  %1797 = vperm.xlu0 %4103, %v4848_v42   ;;  %7237 = vst [vmem:[#allocation41_spill] sm:$0xff] %v4886_v30  ;;  %v4912_v0 = vpop.eup %4213  ;;  %v790_v45 = vadd.f32 %v4572_v1, %v789_v7  ;;  %v4937_v57 = vpop.f32.mrf.mxu0 }
 0x185   :  { %7243 = vst [vmem:[#allocation45_spill] sm:$0xff] %v4912_v0  ;;  %v4924_v6 = vpop.eup %4215  ;;  %4219 = vpow2.f32 %v866_v29  ;;  %7250 = vst [vmem:[#allocation50_spill] sm:$0xff] %v4937_v57  ;;  %v3993_v47 = vpop.f32.mrf.mxu1 }
 0x186   :  { %7247 = vst [vmem:[#allocation47_spill] sm:$0xff] %v4924_v6  ;;  %v864_v29 = vmul.f32 1.442695, %v790_v45  ;;  %v805_v7 = vadd.f32 %v3993_v47, %v4572_v1 }
 0x187   :  { %v4876_v41 = vpop.permute.xlu1 %899  ;;  %v4878_v53 = vpop.permute.xlu0 %1733 }
 0x188   :  { %7235 = vst [vmem:[#allocation39_spill] sm:$0xff] %v4876_v41  ;;  %4081 = vset.pattern.permute.xlu1 %v7061_v44  ;;  %4105 = vset.pattern.permute.xlu0 %v7061_v44  ;;  %4221 = vpow2.f32 %v864_v29  ;;  %v870_v45 = vmul.f32 1.442695, %v805_v7  ;;  %v799_v24 = vpop.f32.mrf.mxu1 }
 0x189   :  { %1453 = vperm.xlu1 %4081, %v4760_v38   ;;  %1473 = vperm.xlu0 %4105, %v4874_v32   ;;  %v7245_v38 = vmov 2   ;;  %v800_v7 = vadd.f32 %v4572_v1, %v799_v24 }
 0x18a   :  { %4223 = vpow2.f32 %v870_v45 }
 0x18b   :  { %v868_v45 = vmul.f32 1.442695, %v800_v7 }
 0x18c   :  { %v4890_v21 = vpop.permute.xlu1 %1405  ;;  %v4894_v44 = vpop.permute.xlu0 %1409 }
 0x18d   :  { %4083 = vset.pattern.permute.xlu1 %v7239_v19  ;;  %4108 = vset.pattern.permute.xlu0 %v7239_v19  ;;  %4225 = vpow2.f32 %v868_v45 }
 0x18e   :  { %1129 = vperm.xlu1 %4083, %v4772_v48   ;;  %1165 = vperm.xlu0 %4108, %v4886_v30  }
 0x190   :  { %v4950_v34 = vpop.eup %4217 }
 0x191   :  { %v4901_v41 = vpop.permute.xlu1 %1081  ;;  %v4903_v46 = vpop.permute.xlu0 %1101  ;;  %7252 = vst [vmem:[#allocation52_spill] sm:$0xff] %v4950_v34 }
 0x192   :  { %4085 = vset.pattern.permute.xlu1 %v7241_v59  ;;  %4110 = vset.pattern.permute.xlu0 %v7241_v59 }
 0x193   :  { %1769 = vperm.xlu1 %4085, %v4772_v48   ;;  %1805 = vperm.xlu0 %4110, %v4886_v30  }
 0x196   :  { %v4914_v61 = vpop.permute.xlu1 %1721  ;;  %v4916_v31 = vpop.permute.xlu0 %1741 }
 0x197   :  { %4086 = vset.pattern.permute.xlu1 %v7244_v36  ;;  %4112 = vset.pattern.permute.xlu0 %v7245_v38 }
 0x198   :  { %969 = vperm.xlu1 %4086, %v4782_v52   ;;  %1481 = vperm.xlu0 %4112, %v4912_v0  }
 0x19b   :  { %v4928_v15 = vpop.permute.xlu1 %909  ;;  %v4932_v23 = vpop.permute.xlu0 %1417 }
 0x19c   :  { %7249 = vst [vmem:[#allocation49_spill] sm:$0xff] %v4928_v15  ;;  %4088 = vset.pattern.permute.xlu1 %v7245_v38  ;;  %4115 = vset.pattern.permute.xlu0 %v7239_v19 }
 0x19d   :  { %1461 = vperm.xlu1 %4088, %v4782_v52   ;;  %1173 = vperm.xlu0 %4115, %v4924_v6   ;;  %v4947_v52 = vpop.f32.mrf.mxu0 }
 0x19e   :  { %7251 = vst [vmem:[#allocation51_spill] sm:$0xff] %v4947_v52  ;;  %v4962_v52 = vpop.eup %4219 }
 0x19f   :  { %v4958_v48 = vpop.f32.mrf.mxu0  ;;  %7254 = vst [vmem:[#allocation54_spill] sm:$0xff] %v4962_v52  ;;  %v4987_v55 = vpop.eup %4221 }
 0x1a0   :  { %v4939_v25 = vpop.permute.xlu1 %1413  ;;  %v4941_v15 = vpop.permute.xlu0 %1109  ;;  %7253 = vst [vmem:[#allocation53_spill] sm:$0xff] %v4958_v48 }
 0x1a1   :  { %4090 = vset.pattern.permute.xlu1 %v7239_v19  ;;  %4117 = vset.pattern.permute.xlu0 %v7241_v59  ;;  %v4964_v47 = vpop.f32.mrf.mxu0  ;;  %v4999_v7 = vpop.eup %4223 }
 0x1a2   :  { %1137 = vperm.xlu1 %4090, %v4802_v8   ;;  %1813 = vperm.xlu0 %4117, %v4924_v6   ;;  %7255 = vst [vmem:[#allocation55_spill] sm:$0xff] %v4964_v47 }
 0x1a5   :  { %v4952_v27 = vpop.permute.xlu1 %1089  ;;  %v4954_v20 = vpop.permute.xlu0 %1749 }
 0x1a6   :  { %4092 = vset.pattern.permute.xlu1 %v7241_v59  ;;  %4119 = vset.pattern.permute.xlu0 %v7245_v38 }
 0x1a7   :  { %1777 = vperm.xlu1 %4092, %v4802_v8   ;;  %1489 = vperm.xlu0 %4119, %v4950_v34   ;;  %v4975_v8 = vpop.f32.mrf.mxu0 }
 0x1a8   :  { %7257 = vst [vmem:[#allocation57_spill] sm:$0xff] %v4975_v8 }
 0x1a9   :  { %v4985_v5 = vpop.f32.mrf.mxu0 }
 0x1aa   :  { %v4966_v35 = vpop.permute.xlu1 %1729  ;;  %v4970_v29 = vpop.permute.xlu0 %1425  ;;  %7259 = vst [vmem:[#allocation59_spill] sm:$0xff] %v4985_v5 }
 0x1ab   :  { %7256 = vst [vmem:[#allocation56_spill] sm:$0xff] %v4966_v35  ;;  %4093 = vset.pattern.permute.xlu1 %v7244_v36  ;;  %4122 = vset.pattern.permute.xlu0 %v7239_v19 }
 0x1ac   :  { %979 = vperm.xlu1 %4093, %v4812_v12   ;;  %1181 = vperm.xlu0 %4122, %v4962_v52  }
 0x1af   :  { %v4977_v13 = vpop.permute.xlu1 %919  ;;  %v4979_v47 = vpop.permute.xlu0 %1117 }
 0x1b0   :  { %7258 = vst [vmem:[#allocation58_spill] sm:$0xff] %v4977_v13  ;;  %4095 = vset.pattern.permute.xlu1 %v7245_v38  ;;  %4124 = vset.pattern.permute.xlu0 %v7241_v59  ;;  %v4995_v13 = vpop.f32.mrf.mxu0 }
 0x1b1   :  { %1469 = vperm.xlu1 %4095, %v4812_v12   ;;  %1821 = vperm.xlu0 %4124, %v4962_v52   ;;  %7262 = vst [vmem:[#allocation62_spill] sm:$0xff] %v4995_v13 }
 0x1b2   :  { %v5001_v5 = vpop.f32.mrf.mxu0 }
 0x1b3   :  { %7263 = vst [vmem:[#allocation63_spill] sm:$0xff] %v5001_v5 }
 0x1b4   :  { %v4989_v1 = vpop.permute.xlu1 %1421  ;;  %v4991_v24 = vpop.permute.xlu0 %1757 }
 0x1b5   :  { %7260 = vst [vmem:[#allocation60_spill] sm:$0xff] %v4989_v1  ;;  %7261 = vst [vmem:[#allocation61_spill] sm:$0xff] %v4991_v24  ;;  %4097 = vset.pattern.permute.xlu1 %v7239_v19  ;;  %4126 = vset.pattern.permute.xlu0 %v7245_v38  ;;  %v5011_v45 = vpop.f32.mrf.mxu0  ;;  %v5023_v24 = vpop.eup %4225 }
 0x1b6   :  { %1145 = vperm.xlu1 %4097, %v4836_v33   ;;  %1497 = vperm.xlu0 %4126, %v4987_v55   ;;  %7265 = vst [vmem:[#allocation65_spill] sm:$0xff] %v5011_v45 }
 0x1b7   :  { %v5021_v5 = vpop.f32.mrf.mxu0 }
 0x1b8   :  { %7267 = vst [vmem:[#allocation67_spill] sm:$0xff] %v5021_v5 }
 0x1b9   :  { %v5003_v12 = vpop.permute.xlu1 %1097  ;;  %v5005_v43 = vpop.permute.xlu0 %1433 }
 0x1ba   :  { %7264 = vst [vmem:[#allocation64_spill] sm:$0xff] %v5003_v12  ;;  %4099 = vset.pattern.permute.xlu1 %v7241_v59  ;;  %4129 = vset.pattern.permute.xlu0 %v7239_v19  ;;  %v1193_v12 = vmul.f32 %v4776_v50, %v4844_v40 }
 0x1bb   :  { %1785 = vperm.xlu1 %4099, %v4836_v33   ;;  %1189 = vperm.xlu0 %4129, %v4999_v7  }
 0x1be   :  { %v5013_v17 = vpop.permute.xlu1 %1737  ;;  %v5015_v60 = vpop.permute.xlu0 %1125 }
 0x1bf   :  { %7266 = vst [vmem:[#allocation66_spill] sm:$0xff] %v5013_v17  ;;  %4100 = vset.pattern.permute.xlu1 %v7244_v36  ;;  %4131 = vset.pattern.permute.xlu0 %v7241_v59  ;;  %v5031_v17 = vpop.f32.mrf.mxu0 }
 0x1c0   :  { %989 = vperm.xlu1 %4100, %v4848_v42   ;;  %1829 = vperm.xlu0 %4131, %v4999_v7   ;;  %7270 = vst [vmem:[#allocation70_spill] sm:$0xff] %v5031_v17 }
 0x1c1   :  { %v5037_v5 = vpop.f32.mrf.mxu0 }
 0x1c2   :  { %7271 = vst [vmem:[#allocation71_spill] sm:$0xff] %v5037_v5  ;;  %v1512_v5 = vmul.f32 %v4793_v63, %v4823_v22 }
 0x1c3   :  { %v5025_v33 = vpop.permute.xlu1 %929  ;;  %v5027_v62 = vpop.permute.xlu0 %1765 }
 0x1c4   :  { %7268 = vst [vmem:[#allocation68_spill] sm:$0xff] %v5025_v33  ;;  %7269 = vst [vmem:[#allocation69_spill] sm:$0xff] %v5027_v62  ;;  %4102 = vset.pattern.permute.xlu1 %v7245_v38  ;;  %4133 = vset.pattern.permute.xlu0 %v7245_v38  ;;  %v5048_v62 = vpop.f32.mrf.mxu0 }
 0x1c5   :  { %1477 = vperm.xlu1 %4102, %v4848_v42   ;;  %1505 = vperm.xlu0 %4133, %v5023_v24   ;;  %v1833_v42 = vmul.f32 %v4784_v54, %v4844_v40  ;;  %7273 = vst [vmem:[#allocation73_spill] sm:$0xff] %v5048_v62 }
 0x1c8   :  { %v5039_v1 = vpop.permute.xlu1 %1429  ;;  %v5041_v33 = vpop.permute.xlu0 %1441 }
 0x1c9   :  { %7272 = vst [vmem:[#allocation72_spill] sm:$0xff] %v5039_v1  ;;  %4104 = vset.pattern.permute.xlu1 %v7239_v19  ;;  %1258 = vrot.lane.b32.xlu0 %v1193_v12, %s4234_s2  ;;  %v5059_v12 = vpop.f32.mrf.mxu0 }
 0x1ca   :  { %1153 = vperm.xlu1 %4104, %v4874_v32   ;;  %7275 = vst [vmem:[#allocation75_spill] sm:$0xff] %v5059_v12 }
 0x1cb   :  { %v5069_v1 = vpop.f32.mrf.mxu0 }
 0x1cc   :  { %7277 = vst [vmem:[#allocation77_spill] sm:$0xff] %v5069_v1 }
 0x1cd   :  { %v5050_v35 = vpop.permute.xlu1 %1105  ;;  %1898 = vrot.lane.b32.xlu0 %v1833_v42, %s4235_s14  ;;  %v5053_v50 = vpop.permute.xlu0 %1133  ;;  %v1195_v42 = vmul.f32 %v4806_v10, %v4882_v2  ;;  %v1514_v10 = vmul.f32 %v4852_v51, %v4861_v4 }
 0x1ce   :  { %7274 = vst [vmem:[#allocation74_spill] sm:$0xff] %v5050_v35  ;;  %4106 = vset.pattern.permute.xlu1 %v7241_v59  ;;  %v5073_v63 = vpop.f32.mrf.mxu0 }
 0x1cf   :  { %1793 = vperm.xlu1 %4106, %v4874_v32   ;;  %7278 = vst [vmem:[#allocation78_spill] sm:$0xff] %v5073_v63 }
 0x1d1   :  { %1576 = vrot.lane.b32.xlu0 %v1512_v5, %s4236_s3  ;;  %v1835_v5 = vmul.f32 %v4816_v18, %v4882_v2  ;;  %v1197_v18 = vmul.f32 %v4827_v28, %v4920_v26 }
 0x1d2   :  { %v5062_v54 = vpop.permute.xlu1 %1745  ;;  %v5064_v35 = vpop.permute.xlu0 %1773 }
 0x1d3   :  { %7276 = vst [vmem:[#allocation76_spill] sm:$0xff] %v5062_v54  ;;  %4107 = vset.pattern.permute.xlu1 %v7244_v36  ;;  %v5086_v54 = vpop.f32.mrf.mxu0 }
 0x1d4   :  { %999 = vperm.xlu1 %4107, %v4886_v30   ;;  %7280 = vst [vmem:[#allocation80_spill] sm:$0xff] %v5086_v54 }
 0x1d5   :  { %1262 = vrot.lane.b32.xlu0 %v1195_v42, %s4234_s2 }
 0x1d7   :  { %v5077_v12 = vpop.permute.xlu1 %939  ;;  %v5079_v32 = vpop.permute.xlu0 %1449 }
 0x1d8   :  { %7279 = vst [vmem:[#allocation79_spill] sm:$0xff] %v5077_v12  ;;  %4109 = vset.pattern.permute.xlu1 %v7245_v38  ;;  %v5097_v12 = vpop.f32.mrf.mxu0 }
 0x1d9   :  { %1485 = vperm.xlu1 %4109, %v4886_v30   ;;  %1902 = vrot.lane.b32.xlu0 %v1835_v5, %s4235_s14  ;;  %7282 = vst [vmem:[#allocation82_spill] sm:$0xff] %v5097_v12  ;;  %v1837_v30 = vmul.f32 %v4840_v39, %v4920_v26 }
 0x1dc   :  { %v5088_v42 = vpop.permute.xlu1 %1437  ;;  %v5090_v63 = vpop.permute.xlu0 %1141 }
 0x1dd   :  { %7281 = vst [vmem:[#allocation81_spill] sm:$0xff] %v5088_v42  ;;  %4111 = vset.pattern.permute.xlu1 %v7239_v19  ;;  %1580 = vrot.lane.b32.xlu0 %v1514_v10, %s4236_s3  ;;  %v5107_v42 = vpop.f32.mrf.mxu0 }
 0x1de   :  { %1161 = vperm.xlu1 %4111, %v4912_v0   ;;  %7284 = vst [vmem:[#allocation84_spill] sm:$0xff] %v5107_v42 }
 0x1df   :  { %v5111_v28 = vpop.f32.mrf.mxu0 }
 0x1e0   :  { %7285 = vst [vmem:[#allocation85_spill] sm:$0xff] %v5111_v28 }
 0x1e1   :  { %v5099_v5 = vpop.permute.xlu1 %1113  ;;  %1266 = vrot.lane.b32.xlu0 %v1197_v18, %s4234_s2  ;;  %v5102_v51 = vpop.permute.xlu0 %1781  ;;  %v1516_v18 = vmul.f32 %v4856_v58, %v4899_v9 }
 0x1e2   :  { %7283 = vst [vmem:[#allocation83_spill] sm:$0xff] %v5099_v5  ;;  %4113 = vset.pattern.permute.xlu1 %v7241_v59  ;;  %v5122_v39 = vpop.f32.mrf.mxu0 }
 0x1e3   :  { %1801 = vperm.xlu1 %4113, %v4912_v0   ;;  %7287 = vst [vmem:[#allocation87_spill] sm:$0xff] %v5122_v39 }
 0x1e4   :  { %v5133_v58 = vpop.f32.mrf.mxu0 }
 0x1e5   :  { %1906 = vrot.lane.b32.xlu0 %v1837_v30, %s4235_s14  ;;  %v1199_v30 = vmul.f32 %v4865_v16, %v4958_v48  ;;  %7289 = vst [vmem:[#allocation89_spill] sm:$0xff] %v5133_v58 }
 0x1e6   :  { %v5113_v10 = vpop.permute.xlu1 %1753  ;;  %v5115_v12 = vpop.permute.xlu0 %1457 }
 0x1e7   :  { %7286 = vst [vmem:[#allocation86_spill] sm:$0xff] %v5113_v10  ;;  %4114 = vset.pattern.permute.xlu1 %v7244_v36  ;;  %v5143_v16 = vpop.f32.mrf.mxu0 }
 0x1e8   :  { %1009 = vperm.xlu1 %4114, %v4924_v6   ;;  %7291 = vst [vmem:[#allocation91_spill] sm:$0xff] %v5143_v16 }
 0x1e9   :  { %1584 = vrot.lane.b32.xlu0 %v1516_v18, %s4236_s3  ;;  %v1839_v18 = vmul.f32 %v4878_v53, %v4958_v48 }
 0x1eb   :  { %v5126_v0 = vpop.permute.xlu1 %949  ;;  %v5128_v28 = vpop.permute.xlu0 %1149 }
 0x1ec   :  { %7288 = vst [vmem:[#allocation88_spill] sm:$0xff] %v5126_v0  ;;  %4116 = vset.pattern.permute.xlu1 %v7245_v38  ;;  %v5148_v0 = vpop.f32.mrf.mxu0 }
 0x1ed   :  { %1493 = vperm.xlu1 %4116, %v4924_v6   ;;  %1270 = vrot.lane.b32.xlu0 %v1199_v30, %s4234_s2  ;;  %v1518_v30 = vmul.f32 %v4894_v44, %v4937_v57  ;;  %7292 = vst [vmem:[#allocation92_spill] sm:$0xff] %v5148_v0 }
 0x1ee   :  { %v5160_v6 = vpop.f32.mrf.mxu0 }
 0x1ef   :  { %7294 = vst [vmem:[#allocation94_spill] sm:$0xff] %v5160_v6 }
 0x1f0   :  { %v5137_v10 = vpop.permute.xlu1 %1445  ;;  %v5139_v5 = vpop.permute.xlu0 %1789 }
 0x1f1   :  { %7290 = vst [vmem:[#allocation90_spill] sm:$0xff] %v5137_v10  ;;  %4118 = vset.pattern.permute.xlu1 %v7239_v19  ;;  %1910 = vrot.lane.b32.xlu0 %v1839_v18, %s4235_s14  ;;  %v1201_v18 = vmul.f32 %v4903_v46, %v4995_v13  ;;  %v5171_v46 = vpop.f32.mrf.mxu0 }
 0x1f2   :  { %1169 = vperm.xlu1 %4118, %v4950_v34   ;;  %7296 = vst [vmem:[#allocation96_spill] sm:$0xff] %v5171_v46 }
 0x1f5   :  { %v5150_v58 = vpop.permute.xlu1 %1121  ;;  %1588 = vrot.lane.b32.xlu0 %v1518_v30, %s4236_s3  ;;  %v5153_v53 = vpop.permute.xlu0 %1465  ;;  %v1841_v30 = vmul.f32 %v4916_v31, %v4995_v13  ;;  %v1203_v31 = vmul.f32 %v4941_v15, %v5031_v17 }
 0x1f6   :  { %7293 = vst [vmem:[#allocation93_spill] sm:$0xff] %v5150_v58  ;;  %4120 = vset.pattern.permute.xlu1 %v7241_v59 }
 0x1f7   :  { %1809 = vperm.xlu1 %4120, %v4950_v34  }
 0x1f9   :  { %1274 = vrot.lane.b32.xlu0 %v1201_v18, %s4234_s2  ;;  %v1520_v18 = vmul.f32 %v4932_v23, %v4975_v8 }
 0x1fa   :  { %v5162_v44 = vpop.permute.xlu1 %1761  ;;  %v5164_v0 = vpop.permute.xlu0 %1157 }
 0x1fb   :  { %7295 = vst [vmem:[#allocation95_spill] sm:$0xff] %v5162_v44  ;;  %4121 = vset.pattern.permute.xlu1 %v7244_v36  ;;  %v5180_v44 = vpop.f32.mrf.mxu0 }
 0x1fc   :  { %1019 = vperm.xlu1 %4121, %v4962_v52   ;;  %7298 = vst [vmem:[#allocation98_spill] sm:$0xff] %v5180_v44 }
 0x1fd   :  { %1914 = vrot.lane.b32.xlu0 %v1841_v30, %s4235_s14  ;;  %v5186_v30 = vpop.f32.mrf.mxu0 }
 0x1fe   :  { %7299 = vst [vmem:[#allocation99_spill] sm:$0xff] %v5186_v30 }
 0x1ff   :  { %v5175_v34 = vpop.permute.xlu1 %959  ;;  %v5177_v58 = vpop.permute.xlu0 %1797 }
 0x200   :  { %7297 = vst [vmem:[#allocation97_spill] sm:$0xff] %v5175_v34  ;;  %4123 = vset.pattern.permute.xlu1 %v7245_v38  ;;  %v1843_v34 = vmul.f32 %v4954_v20, %v5031_v17 }
 0x201   :  { %1501 = vperm.xlu1 %4123, %v4962_v52   ;;  %1592 = vrot.lane.b32.xlu0 %v1520_v18, %s4236_s3  ;;  %v5197_v52 = vpop.f32.mrf.mxu0  ;;  %v4237_v18 = vmov 4  }
 0x202   :  { %7301 = vst [vmem:[#allocation101_spill] sm:$0xff] %v5197_v52  ;;  %4136 = vset.pattern.permute.xlu0 %v4237_v18 }
 0x204   :  { %v5188_v46 = vpop.permute.xlu1 %1453  ;;  %v5190_v23 = vpop.permute.xlu0 %1473 }
 0x205   :  { %7300 = vst [vmem:[#allocation100_spill] sm:$0xff] %v5188_v46  ;;  %4125 = vset.pattern.permute.xlu1 %v7239_v19  ;;  %1278 = vrot.lane.b32.xlu0 %v1203_v31, %s4234_s2  ;;  %v1522_v31 = vmul.f32 %v4970_v29, %v5011_v45  ;;  %v5208_v46 = vpop.f32.mrf.mxu0 }
 0x206   :  { %1177 = vperm.xlu1 %4125, %v4987_v55   ;;  %7303 = vst [vmem:[#allocation103_spill] sm:$0xff] %v5208_v46 }
 0x209   :  { %v5199_v15 = vpop.permute.xlu1 %1129  ;;  %1918 = vrot.lane.b32.xlu0 %v1843_v34, %s4235_s14  ;;  %v5202_v30 = vpop.permute.xlu0 %1165  ;;  %v1205_v34 = vmul.f32 %v4979_v47, %v5069_v1  ;;  %v1207_v47 = vmul.f32 %v5015_v60, %v5107_v42 }
 0x20a   :  { %7302 = vst [vmem:[#allocation102_spill] sm:$0xff] %v5199_v15  ;;  %4127 = vset.pattern.permute.xlu1 %v7241_v59  ;;  %v5218_v15 = vpop.f32.mrf.mxu0 }
 0x20b   :  { %1817 = vperm.xlu1 %4127, %v4987_v55   ;;  %7305 = vst [vmem:[#allocation105_spill] sm:$0xff] %v5218_v15 }
 0x20c   :  { %v5222_v29 = vpop.f32.mrf.mxu0 }
 0x20d   :  { %1596 = vrot.lane.b32.xlu0 %v1522_v31, %s4236_s3  ;;  %7306 = vst [vmem:[#allocation106_spill] sm:$0xff] %v5222_v29  ;;  %v1524_v31 = vmul.f32 %v5005_v43, %v5048_v62  ;;  %v1526_v43 = vmul.f32 %v5041_v33, %v5086_v54  ;;  %v1513_v33 = vmul.f32 %v4774_v49, %v4844_v40 }
 0x20e   :  { %v5211_v20 = vpop.permute.xlu1 %1769  ;;  %v5213_v10 = vpop.permute.xlu0 %1805 }
 0x20f   :  { %7304 = vst [vmem:[#allocation104_spill] sm:$0xff] %v5211_v20  ;;  %4128 = vset.pattern.permute.xlu1 %v7244_v36  ;;  %v5235_v36 = vpop.f32.mrf.mxu0 }
 0x210   :  { %1029 = vperm.xlu1 %4128, %v4999_v7   ;;  %7308 = vst [vmem:[#allocation108_spill] sm:$0xff] %v5235_v36 }
 0x211   :  { %1282 = vrot.lane.b32.xlu0 %v1205_v34, %s4234_s2 }
 0x213   :  { %v5226_v46 = vpop.permute.xlu1 %969  ;;  %v5228_v20 = vpop.permute.xlu0 %1481 }
 0x214   :  { %7307 = vst [vmem:[#allocation107_spill] sm:$0xff] %v5226_v46  ;;  %4130 = vset.pattern.permute.xlu1 %v7245_v38  ;;  %v5246_v38 = vpop.f32.mrf.mxu0 }
 0x215   :  { %1509 = vperm.xlu1 %4130, %v4999_v7   ;;  %1600 = vrot.lane.b32.xlu0 %v1524_v31, %s4236_s3  ;;  %7309 = vst [vmem:[#allocation109_spill] sm:$0xff] %v5246_v38 }
 0x216   :  { %v5256_v46 = vpop.f32.mrf.mxu0 }
 0x217   :  { %7310 = vst [vmem:[#allocation110_spill] sm:$0xff] %v5256_v46 }
 0x218   :  { %v5237_v34 = vpop.permute.xlu1 %1461  ;;  %v5239_v29 = vpop.permute.xlu0 %1173 }
 0x219   :  { %4132 = vset.pattern.permute.xlu1 %v7239_v19  ;;  %1286 = vrot.lane.b32.xlu0 %v1207_v47, %s4234_s2  ;;  %v1209_v19 = vmul.f32 %v5053_v50, %v5143_v16  ;;  %v5262_v47 = vpop.f32.mrf.mxu0  ;;  %v1192_v50 = vmul.f32 %v4786_v56, %v4823_v22  ;;  %v1530_v56 = vmul.f32 %v5115_v12, %v5160_v6 }
 0x21a   :  { %1185 = vperm.xlu1 %4132, %v5023_v24   ;;  %7311 = vst [vmem:[#allocation111_spill] sm:$0xff] %v5262_v47  ;;  %v1194_v12 = vmul.f32 %v4838_v37, %v4861_v4 }
 0x21b   :  { %v5274_v49 = vpop.f32.mrf.mxu0 }
 0x21c   :  { %7312 = vst [vmem:[#allocation112_spill] sm:$0xff] %v5274_v49 }
 0x21d   :  { %v5248_v31 = vpop.permute.xlu1 %1137  ;;  %1604 = vrot.lane.b32.xlu0 %v1526_v43, %s4236_s3  ;;  %v5251_v60 = vpop.permute.xlu0 %1813 }
 0x21e   :  { %4134 = vset.pattern.permute.xlu1 %v7241_v59  ;;  %v1528_v59 = vmul.f32 %v5079_v32, %v5122_v39  ;;  %v1832_v32 = vmul.f32 %v4795_v3, %v4823_v22  ;;  %v1213_v3 = vmul.f32 %v5128_v28, %v5218_v15  ;;  %v1834_v28 = vmul.f32 %v4863_v11, %v4861_v4 }
 0x21f   :  { %1825 = vperm.xlu1 %4134, %v5023_v24   ;;  %v1534_v11 = vmul.f32 %v5190_v23, %v5235_v36 }
 0x221   :  { %1290 = vrot.lane.b32.xlu0 %v1209_v19, %s4234_s2  ;;  %v1211_v19 = vmul.f32 %v5090_v63, %v5180_v44 }
 0x222   :  { %v5264_v38 = vpop.permute.xlu1 %1777  ;;  %v5266_v43 = vpop.permute.xlu0 %1489 }
 0x223   :  { %1578 = vrot.lane.b32.xlu1 %v1513_v33, %s4236_s3 }
 0x224   :  { %4135 = vset.pattern.permute.xlu1 %v4237_v18  ;;  %v5286_v18 = vpop.f32.mrf.mxu0 }
 0x225   :  { %1608 = vrot.lane.b32.xlu0 %v1528_v59, %s4236_s3  ;;  %7314 = vst [vmem:[#allocation114_spill] sm:$0xff] %v5286_v18  ;;  %v1515_v59 = vmul.f32 %v4814_v14, %v4882_v2  ;;  %v1532_v14 = vmul.f32 %v5153_v53, %v5197_v52  ;;  %v1215_v2 = vmul.f32 %v5164_v0, %v5256_v46 }
 0x226   :  { %v1517_v53 = vmul.f32 %v4890_v21, %v4920_v26  ;;  %v1196_v0 = vmul.f32 %v4901_v41, %v4899_v9  ;;  %v1536_v41 = vmul.f32 %v5228_v20, %v5274_v49 }
 0x227   :  { %v5278_v40 = vpop.permute.xlu1 %979  ;;  %1256 = vrot.lane.b32.xlu1 %v1192_v50, %s4234_s2  ;;  %v5281_v47 = vpop.permute.xlu0 %1181 }
 0x228   :  { %7313 = vst [vmem:[#allocation113_spill] sm:$0xff] %v5278_v40  ;;  %v5298_v50 = vpop.f32.mrf.mxu0 }
 0x229   :  { %1294 = vrot.lane.b32.xlu0 %v1211_v19, %s4234_s2  ;;  %7315 = vst [vmem:[#allocation115_spill] sm:$0xff] %v5298_v50 }
 0x22a   :  { %v5303_v19 = vpop.f32.mrf.mxu0 }
 0x22b   :  { %1896 = vrot.lane.b32.xlu1 %v1832_v32, %s4235_s14  ;;  %7316 = vst [vmem:[#allocation116_spill] sm:$0xff] %v5303_v19 }
 0x22c   :  { %v5291_v33 = vpop.permute.xlu1 %1469  ;;  %v5293_v63 = vpop.permute.xlu0 %1821 }
 0x22d   :  { %1612 = vrot.lane.b32.xlu0 %v1530_v56, %s4236_s3  ;;  %v5316_v56 = vpop.f32.mrf.mxu0 }
 0x22e   :  { %7317 = vst [vmem:[#allocation117_spill] sm:$0xff] %v5316_v56 }
 0x22f   :  { %1582 = vrot.lane.b32.xlu1 %v1515_v59, %s4236_s3 }
 0x231   :  { %v5307_v32 = vpop.permute.xlu1 %1145  ;;  %1298 = vrot.lane.b32.xlu0 %v1213_v3, %s4234_s2  ;;  %v1498_v22 = vpop.permute.xlu0 %1497 }
 0x232   :  { %v5326_v3 = vpop.f32.mrf.mxu0 }
 0x233   :  { %1260 = vrot.lane.b32.xlu1 %v1194_v12, %s4234_s2  ;;  %7318 = vst [vmem:[#allocation118_spill] sm:$0xff] %v5326_v3 }
 0x235   :  { %1616 = vrot.lane.b32.xlu0 %v1532_v14, %s4236_s3 }
 0x236   :  { %v5318_v59 = vpop.permute.xlu1 %1785  ;;  %v1190_v37 = vpop.permute.xlu0 %1189 }
 0x237   :  { %1900 = vrot.lane.b32.xlu1 %v1834_v28, %s4235_s14  ;;  %v5337_v28 = vpop.f32.mrf.mxu0 }
 0x238   :  { %7320 = vst [vmem:[#allocation120_spill] sm:$0xff] %v5337_v28 }
 0x239   :  { %1302 = vrot.lane.b32.xlu0 %v1215_v2, %s4234_s2  ;;  %v1217_v2 = vmul.f32 %v5202_v30, %v5298_v50  ;;  %v5343_v21 = vpop.f32.mrf.mxu0 }
 0x23b   :  { %v5330_v12 = vpop.permute.xlu1 %989  ;;  %v5332_v14 = vpop.permute.xlu0 %1829  ;;  %1586 = vrot.lane.b32.xlu1 %v1517_v53, %s4236_s3  ;;  %v1836_v53 = vmul.f32 %v4914_v61, %v4899_v9  ;;  %v1219_v61 = vmul.f32 %v5239_v29, %v5337_v28 }
 0x23c   :  { %7319 = vst [vmem:[#allocation119_spill] sm:$0xff] %v5330_v12  ;;  %v5357_v30 = vpop.f32.mrf.mxu0 }
 0x23d   :  { %1620 = vrot.lane.b32.xlu0 %v1534_v11, %s4236_s3  ;;  %7322 = vst [vmem:[#allocation122_spill] sm:$0xff] %v5357_v30 }
 0x23e   :  { %v5369_v20 = vpop.f32.mrf.mxu0 }
 0x23f   :  { %1264 = vrot.lane.b32.xlu1 %v1196_v0, %s4234_s2  ;;  %v1519_v0 = vmul.f32 %v4939_v25, %v4958_v48  ;;  %v1538_v25 = vmul.f32 %v5266_v43, %v5316_v56  ;;  %v7329_v43 = vld [vmem:[#allocation60_spill] sm:$0xff] }
 0x240   :  { %v5345_v23 = vpop.permute.xlu1 %1477  ;;  %v5347_v4 = vpop.permute.xlu0 %1505 }
 0x241   :  { %1306 = vrot.lane.b32.xlu0 %v1217_v2, %s4234_s2 }
 0x243   :  { %1904 = vrot.lane.b32.xlu1 %v1836_v53, %s4235_s14  ;;  %v1198_v53 = vmul.f32 %v4952_v27, %v4937_v57 }
 0x244   :  { %v5355_v11 = vpop.permute.xlu0 %1258 }
 0x245   :  { %7321 = vst [vmem:[#allocation121_spill] sm:$0xff] %v5355_v11  ;;  %v5361_v26 = vpop.permute.xlu1 %1153  ;;  %1624 = vrot.lane.b32.xlu0 %v1536_v41, %s4236_s3  ;;  %v5379_v41 = vpop.f32.mrf.mxu0 }
 0x246   :  { %7324 = vst [vmem:[#allocation124_spill] sm:$0xff] %v5379_v41  ;;  %v1221_v27 = vmul.f32 %v5281_v47, %v5379_v41  ;;  %v7331_v47 = vld [vmem:[#allocation64_spill] sm:$0xff] }
 0x247   :  { %1590 = vrot.lane.b32.xlu1 %v1519_v0, %s4236_s3  ;;  %v7326_v0 = vld [vmem:[#allocation56_spill] sm:$0xff]  ;;  %v1200_v40 = vmul.f32 %v7331_v47, %v4975_v8 }
 0x248   :  { %v5367_v2 = vpop.permute.xlu0 %1898 }
 0x249   :  { %7323 = vst [vmem:[#allocation123_spill] sm:$0xff] %v5367_v2  ;;  %1310 = vrot.lane.b32.xlu0 %v1219_v61, %s4234_s2  ;;  %v1838_v2 = vmul.f32 %v7326_v0, %v4937_v57 }
 0x24a   :  { %v5374_v11 = vpop.permute.xlu1 %1793 }
 0x24b   :  { %1268 = vrot.lane.b32.xlu1 %v1198_v53, %s4234_s2  ;;  %v1521_v53 = vmul.f32 %v7329_v43, %v4995_v13  ;;  %v7375_v13 = vld [vmem:[#allocation22_spill] sm:$0xff] }
 0x24c   :  { %v5381_v29 = vpop.permute.xlu0 %1576 }
 0x24d   :  { %7325 = vst [vmem:[#allocation125_spill] sm:$0xff] %v5381_v29  ;;  %1628 = vrot.lane.b32.xlu0 %v1538_v25, %s4236_s3  ;;  %v1540_v29 = vmul.f32 %v1498_v22, %v5357_v30 }
 0x24f   :  { %v5388_v61 = vpop.permute.xlu1 %999  ;;  %1908 = vrot.lane.b32.xlu1 %v1838_v2, %s4235_s14  ;;  %v7332_v2 = vld [vmem:[#allocation5_spill] sm:$0xff] }
 0x250   :  { %7327 = vst [vmem:[#allocation56_spill] sm:$0xff] %v5388_v61  ;;  %v5391_v9 = vpop.permute.xlu0 %1262 }
 0x251   :  { %7328 = vst [vmem:[#allocation126_spill] sm:$0xff] %v5391_v9  ;;  %1314 = vrot.lane.b32.xlu0 %v1221_v27, %s4234_s2  ;;  %v1223_v9 = vmul.f32 %v1190_v37, %v7332_v2  ;;  %v7334_v27 = vld [vmem:[#allocation66_spill] sm:$0xff]  ;;  %v7337_v37 = vld [vmem:[#allocation72_spill] sm:$0xff] }
 0x252   :  { %v1840_v22 = vmul.f32 %v7334_v27, %v4975_v8  ;;  %v7338_v27 = vld [vmem:[#allocation69_spill] sm:$0xff]  ;;  %v7372_v8 = vld [vmem:[#allocation20_spill] sm:$0xff] }
 0x253   :  { %1594 = vrot.lane.b32.xlu1 %v1521_v53, %s4236_s3  ;;  %v7335_v53 = vld [vmem:[#allocation61_spill] sm:$0xff] }
 0x254   :  { %v5398_v0 = vpop.permute.xlu1 %1485  ;;  %v5400_v25 = vpop.permute.xlu0 %1902 }
 0x255   :  { %7330 = vst [vmem:[#allocation60_spill] sm:$0xff] %v5400_v25  ;;  %1632 = vrot.lane.b32.xlu0 %v1540_v29, %s4236_s3  ;;  %v1845_v25 = vmul.f32 %v7335_v53, %v5069_v1  ;;  %v1523_v29 = vmul.f32 %v7337_v37, %v5031_v17  ;;  %v7340_v53 = vld [vmem:[#allocation74_spill] sm:$0xff] }
 0x256   :  { %v1202_v48 = vmul.f32 %v7340_v53, %v5011_v45  ;;  %v7438_v17 = vld [vmem:[#allocation34_spill] sm:$0xff] }
 0x257   :  { %1272 = vrot.lane.b32.xlu1 %v1200_v40, %s4234_s2 }
 0x258   :  { %v5407_v43 = vpop.permute.xlu0 %1580 }
 0x259   :  { %7333 = vst [vmem:[#allocation64_spill] sm:$0xff] %v5407_v43  ;;  %v5411_v57 = vpop.permute.xlu1 %1161  ;;  %1318 = vrot.lane.b32.xlu0 %v1223_v9, %s4234_s2  ;;  %v1847_v43 = vmul.f32 %v7338_v27, %v5107_v42  ;;  %v7343_v27 = vld [vmem:[#allocation76_spill] sm:$0xff] }
 0x25b   :  { %1912 = vrot.lane.b32.xlu1 %v1840_v22, %s4235_s14  ;;  %v1849_v22 = vmul.f32 %v5064_v35, %v5143_v16  ;;  %v7345_v35 = vld [vmem:[#allocation81_spill] sm:$0xff] }
 0x25c   :  { %v5417_v47 = vpop.permute.xlu0 %1266 }
 0x25d   :  { %7336 = vst [vmem:[#allocation66_spill] sm:$0xff] %v5417_v47  ;;  %1922 = vrot.lane.b32.xlu0 %v1845_v25, %s4235_s14  ;;  %v1842_v47 = vmul.f32 %v7343_v27, %v5011_v45  ;;  %v7428_v45 = vld [vmem:[#allocation23_spill] sm:$0xff] }
 0x25e   :  { %v5422_v40 = vpop.permute.xlu1 %1801 }
 0x25f   :  { %1598 = vrot.lane.b32.xlu1 %v1523_v29, %s4236_s3  ;;  %v1851_v29 = vmul.f32 %v5102_v51, %v5180_v44  ;;  %v7347_v51 = vld [vmem:[#allocation83_spill] sm:$0xff] }
 0x260   :  { %v5427_v9 = vpop.permute.xlu0 %1906  ;;  %v1204_v27 = vmul.f32 %v7347_v51, %v5048_v62  ;;  %v1857_v51 = vmul.f32 %v5213_v10, %v5298_v50  ;;  %v7354_v10 = vld [vmem:[#allocation100_spill] sm:$0xff] }
 0x261   :  { %7339 = vst [vmem:[#allocation61_spill] sm:$0xff] %v5427_v9  ;;  %1926 = vrot.lane.b32.xlu0 %v1847_v43, %s4235_s14  ;;  %v1525_v9 = vmul.f32 %v7345_v35, %v5069_v1  ;;  %v7179_v1 = vmov 7  }
 0x263   :  { %v5434_v37 = vpop.permute.xlu1 %1009  ;;  %1276 = vrot.lane.b32.xlu1 %v1202_v48, %s4234_s2  ;;  %v1853_v48 = vmul.f32 %v5139_v5, %v5218_v15  ;;  %v7349_v5 = vld [vmem:[#allocation90_spill] sm:$0xff] }
 0x264   :  { %7341 = vst [vmem:[#allocation72_spill] sm:$0xff] %v5434_v37  ;;  %v5437_v25 = vpop.permute.xlu0 %1584  ;;  %v1527_v35 = vmul.f32 %v7349_v5, %v5107_v42  ;;  %v7444_v37 = vld [vmem:[#allocation47_spill] sm:$0xff] }
 0x265   :  { %7342 = vst [vmem:[#allocation69_spill] sm:$0xff] %v5437_v25  ;;  %1930 = vrot.lane.b32.xlu0 %v1849_v22, %s4235_s14  ;;  %v1855_v25 = vmul.f32 %v5177_v58, %v5256_v46  ;;  %v7351_v58 = vld [vmem:[#allocation93_spill] sm:$0xff] }
 0x267   :  { %1916 = vrot.lane.b32.xlu1 %v1842_v47, %s4235_s14 }
 0x268   :  { %v5445_v43 = vpop.permute.xlu1 %1493  ;;  %v5447_v53 = vpop.permute.xlu0 %1270 }
 0x269   :  { %7344 = vst [vmem:[#allocation74_spill] sm:$0xff] %v5447_v53  ;;  %1934 = vrot.lane.b32.xlu0 %v1851_v29, %s4235_s14 }
 0x26b   :  { %1602 = vrot.lane.b32.xlu1 %v1525_v9, %s4236_s3 }
 0x26c   :  { %v5455_v22 = vpop.permute.xlu0 %1910 }
 0x26d   :  { %7346 = vst [vmem:[#allocation76_spill] sm:$0xff] %v5455_v22  ;;  %v5459_v47 = vpop.permute.xlu1 %1169  ;;  %1938 = vrot.lane.b32.xlu0 %v1853_v48, %s4235_s14  ;;  %v1206_v22 = vmul.f32 %v7351_v58, %v5086_v54 }
 0x26f   :  { %1280 = vrot.lane.b32.xlu1 %v1204_v27, %s4234_s2  ;;  %v1859_v27 = vmul.f32 %v5251_v60, %v5337_v28  ;;  %v7356_v60 = vld [vmem:[#allocation102_spill] sm:$0xff] }
 0x270   :  { %v5465_v29 = vpop.permute.xlu0 %1588  ;;  %v1208_v53 = vmul.f32 %v7356_v60, %v5122_v39 }
 0x271   :  { %7348 = vst [vmem:[#allocation81_spill] sm:$0xff] %v5465_v29  ;;  %1942 = vrot.lane.b32.xlu0 %v1855_v25, %s4235_s14  ;;  %v1529_v29 = vmul.f32 %v7354_v10, %v5143_v16 }
 0x272   :  { %v5470_v9 = vpop.permute.xlu1 %1809 }
 0x273   :  { %1606 = vrot.lane.b32.xlu1 %v1527_v35, %s4236_s3  ;;  %v1861_v35 = vmul.f32 %v5293_v63, %v5379_v41  ;;  %v1531_v63 = vmul.f32 %v5237_v34, %v5180_v44  ;;  %v7366_v44 = vld [vmem:[#allocation14_spill] sm:$0xff] }
 0x274   :  { %v5475_v48 = vpop.permute.xlu0 %1274 }
 0x275   :  { %7350 = vst [vmem:[#allocation83_spill] sm:$0xff] %v5475_v48  ;;  %1946 = vrot.lane.b32.xlu0 %v1857_v51, %s4235_s14 }
 0x277   :  { %v5482_v5 = vpop.permute.xlu1 %1019  ;;  %1284 = vrot.lane.b32.xlu1 %v1206_v22, %s4234_s2  ;;  %v7357_v22 = vld [vmem:[#allocation3_spill] sm:$0xff] }
 0x278   :  { %7352 = vst [vmem:[#allocation90_spill] sm:$0xff] %v5482_v5  ;;  %v5485_v25 = vpop.permute.xlu0 %1914  ;;  %v1542_v12 = vmul.f32 %v5347_v4, %v7357_v22  ;;  %v1210_v4 = vmul.f32 %v5248_v31, %v5160_v6  ;;  %v1212_v31 = vmul.f32 %v5307_v32, %v5197_v52  ;;  %v7492_v5 = vmov 0  }
 0x279   :  { %7353 = vst [vmem:[#allocation93_spill] sm:$0xff] %v5485_v25  ;;  %1950 = vrot.lane.b32.xlu0 %v1859_v27, %s4235_s14  ;;  %v1537_v25 = vmul.f32 %v5398_v0, %v5298_v50  ;;  %v1539_v0 = vmul.f32 %v5445_v43, %v5337_v28  ;;  %v7425_v50 = vld [vmem:[#allocation21_spill] sm:$0xff] }
 0x27b   :  { %1610 = vrot.lane.b32.xlu1 %v1529_v29, %s4236_s3  ;;  %v1863_v29 = vmul.f32 %v5332_v14, %v7332_v2 }
 0x27c   :  { %v1502_v51 = vpop.permute.xlu1 %1501  ;;  %v5493_v58 = vpop.permute.xlu0 %1592 }
 0x27d   :  { %7355 = vst [vmem:[#allocation100_spill] sm:$0xff] %v5493_v58  ;;  %1954 = vrot.lane.b32.xlu0 %v1861_v35, %s4235_s14  ;;  %v7361_v35 = vld [vmem:[#allocation7_spill] sm:$0xff]  ;;  %v7368_v58 = vld [vmem:[#allocation16_spill] sm:$0xff]  ;;  %v1541_v43 = vmul.f32 %v1502_v51, %v5379_v41 }
 0x27f   :  { %1288 = vrot.lane.b32.xlu1 %v1208_v53, %s4234_s2 }
 0x280   :  { %v5501_v10 = vpop.permute.xlu0 %1278 }
 0x281   :  { %7358 = vst [vmem:[#allocation102_spill] sm:$0xff] %v5501_v10  ;;  %v1178_v27 = vpop.permute.xlu1 %1177  ;;  %1636 = vrot.lane.b32.xlu0 %v1542_v12, %s4236_s3  ;;  %v1533_v12 = vmul.f32 %v5291_v33, %v5218_v15  ;;  %v1535_v33 = vmul.f32 %v5345_v23, %v5256_v46  ;;  %v1214_v15 = vmul.f32 %v5361_v26, %v5235_v36  ;;  %v7370_v23 = vld [vmem:[#allocation18_spill] sm:$0xff] }
 0x282   :  { %v1216_v26 = vmul.f32 %v5411_v57, %v5274_v49  ;;  %v1218_v57 = vmul.f32 %v5459_v47, %v5316_v56  ;;  %v1220_v47 = vmul.f32 %v1178_v27, %v5357_v30 }
 0x283   :  { %1614 = vrot.lane.b32.xlu1 %v1531_v63, %s4236_s3 }
 0x284   :  { %v5509_v60 = vpop.permute.xlu0 %1918 }
 0x285   :  { %7359 = vst [vmem:[#allocation127_spill] sm:$0xff] %v5509_v60  ;;  %1958 = vrot.lane.b32.xlu0 %v1863_v29, %s4235_s14  ;;  %v7364_v29 = vld [vmem:[#allocation12_spill] sm:$0xff] }
 0x286   :  { %v5514_v53 = vpop.permute.xlu1 %1817 }
 0x287   :  { %1292 = vrot.lane.b32.xlu1 %v1210_v4, %s4234_s2 }
 0x288   :  { %v5517_v34 = vpop.permute.xlu0 %1596 }
 0x289   :  { %7360 = vst [vmem:[#allocation128_spill] sm:$0xff] %v5517_v34  ;;  %2029 = vperm.xlu0 %4136, %v7361_v35  }
 0x28b   :  { %v5522_v14 = vpop.permute.xlu1 %1029  ;;  %1618 = vrot.lane.b32.xlu1 %v1533_v12, %s4236_s3 }
 0x28c   :  { %7362 = vst [vmem:[#allocation7_spill] sm:$0xff] %v5522_v14  ;;  %v5525_v63 = vpop.permute.xlu0 %1282 }
 0x28d   :  { %7363 = vst [vmem:[#allocation129_spill] sm:$0xff] %v5525_v63  ;;  %2041 = vperm.xlu0 %4136, %v7364_v29  }
 0x28f   :  { %1296 = vrot.lane.b32.xlu1 %v1212_v31, %s4234_s2 }
 0x290   :  { %v1510_v4 = vpop.permute.xlu1 %1509  ;;  %v5531_v16 = vpop.permute.xlu0 %1600 }
 0x291   :  { %7365 = vst [vmem:[#allocation12_spill] sm:$0xff] %v5531_v16  ;;  %2049 = vperm.xlu0 %4136, %v7366_v44   ;;  %v1543_v51 = vmul.f32 %v1510_v4, %v7332_v2  ;;  %v7393_v4 = vld [vmem:[#allocation86_spill] sm:$0xff] }
 0x293   :  { %1622 = vrot.lane.b32.xlu1 %v1535_v33, %s4236_s3 }
 0x294   :  { %v5537_v12 = vpop.permute.xlu0 %1286 }
 0x295   :  { %7367 = vst [vmem:[#allocation14_spill] sm:$0xff] %v5537_v12  ;;  %v1186_v32 = vpop.permute.xlu1 %1185  ;;  %2057 = vperm.xlu0 %4136, %v7368_v58  }
 0x296   :  { %v1222_v27 = vmul.f32 %v1186_v32, %v7357_v22  ;;  %v7397_v32 = vld [vmem:[#allocation95_spill] sm:$0xff] }
 0x297   :  { %1300 = vrot.lane.b32.xlu1 %v1214_v15, %s4234_s2 }
 0x298   :  { %v5543_v31 = vpop.permute.xlu0 %1604 }
 0x299   :  { %7369 = vst [vmem:[#allocation16_spill] sm:$0xff] %v5543_v31  ;;  %2065 = vperm.xlu0 %4136, %v7370_v23  }
 0x29a   :  { %v5548_v46 = vpop.permute.xlu1 %1825 }
 0x29b   :  { %1626 = vrot.lane.b32.xlu1 %v1537_v25, %s4236_s3 }
 0x29c   :  { %v5551_v33 = vpop.permute.xlu0 %1290 }
 0x29d   :  { %7371 = vst [vmem:[#allocation18_spill] sm:$0xff] %v5551_v33  ;;  %2073 = vperm.xlu0 %4136, %v7372_v8   ;;  %v7378_v33 = vld [vmem:[#allocation24_spill] sm:$0xff] }
 0x29e   :  { %v5556_v48 = vpop.permute.xlu1 %1578 }
 0x29f   :  { %7373 = vst [vmem:[#allocation20_spill] sm:$0xff] %v5556_v48  ;;  %1304 = vrot.lane.b32.xlu1 %v1216_v26, %s4234_s2 }
 0x2a0   :  { %v5559_v15 = vpop.permute.xlu0 %1608 }
 0x2a1   :  { %7374 = vst [vmem:[#allocation130_spill] sm:$0xff] %v5559_v15  ;;  %2081 = vperm.xlu0 %4136, %v7375_v13   ;;  %v7381_v15 = vld [vmem:[#allocation26_spill] sm:$0xff] }
 0x2a2   :  { %v5564_v34 = vpop.permute.xlu1 %1256 }
 0x2a3   :  { %7376 = vst [vmem:[#allocation22_spill] sm:$0xff] %v5564_v34  ;;  %1630 = vrot.lane.b32.xlu1 %v1539_v0, %s4236_s3 }
 0x2a4   :  { %v5567_v25 = vpop.permute.xlu0 %1294 }
 0x2a5   :  { %7377 = vst [vmem:[#allocation131_spill] sm:$0xff] %v5567_v25  ;;  %2089 = vperm.xlu0 %4136, %v7378_v33   ;;  %v7384_v25 = vld [vmem:[#allocation32_spill] sm:$0xff] }
 0x2a6   :  { %v5572_v48 = vpop.permute.xlu1 %1896 }
 0x2a7   :  { %7379 = vst [vmem:[#allocation24_spill] sm:$0xff] %v5572_v48  ;;  %1308 = vrot.lane.b32.xlu1 %v1218_v57, %s4234_s2  ;;  %v7387_v48 = vld [vmem:[#allocation38_spill] sm:$0xff] }
 0x2a8   :  { %v5575_v26 = vpop.permute.xlu0 %1612 }
 0x2a9   :  { %7380 = vst [vmem:[#allocation132_spill] sm:$0xff] %v5575_v26  ;;  %2097 = vperm.xlu0 %4136, %v7381_v15  }
 0x2aa   :  { %v5579_v34 = vpop.permute.xlu1 %1582 }
 0x2ab   :  { %7382 = vst [vmem:[#allocation26_spill] sm:$0xff] %v5579_v34  ;;  %1634 = vrot.lane.b32.xlu1 %v1541_v43, %s4236_s3  ;;  %v7390_v34 = vld [vmem:[#allocation45_spill] sm:$0xff] }
 0x2ac   :  { %v5582_v0 = vpop.permute.xlu0 %1298 }
 0x2ad   :  { %7383 = vst [vmem:[#allocation133_spill] sm:$0xff] %v5582_v0  ;;  %2105 = vperm.xlu0 %4136, %v7384_v25  }
 0x2ae   :  { %v5586_v61 = vpop.permute.xlu1 %1260 }
 0x2af   :  { %7385 = vst [vmem:[#allocation32_spill] sm:$0xff] %v5586_v61  ;;  %1312 = vrot.lane.b32.xlu1 %v1220_v47, %s4234_s2  ;;  %v1844_v61 = vmul.f32 %v7393_v4, %v5048_v62  ;;  %v7400_v4 = vld [vmem:[#allocation104_spill] sm:$0xff]  ;;  %v7176_v62 = vmov 6  }
 0x2b0   :  { %v5589_v57 = vpop.permute.xlu0 %1616 }
 0x2b1   :  { %7386 = vst [vmem:[#allocation134_spill] sm:$0xff] %v5589_v57  ;;  %2113 = vperm.xlu0 %4136, %v7387_v48   ;;  %v7394_v57 = vld [vmem:[#allocation52_spill] sm:$0xff] }
 0x2b2   :  { %v5593_v26 = vpop.permute.xlu1 %1900 }
 0x2b3   :  { %7388 = vst [vmem:[#allocation38_spill] sm:$0xff] %v5593_v26  ;;  %1638 = vrot.lane.b32.xlu1 %v1543_v51, %s4236_s3 }
 0x2b4   :  { %v5596_v43 = vpop.permute.xlu0 %1302 }
 0x2b5   :  { %7389 = vst [vmem:[#allocation135_spill] sm:$0xff] %v5596_v43  ;;  %2121 = vperm.xlu0 %4136, %v7390_v34   ;;  %v1846_v43 = vmul.f32 %v7397_v32, %v5086_v54  ;;  %v1850_v32 = vmul.f32 %v5264_v38, %v5160_v6 }
 0x2b6   :  { %v5600_v0 = vpop.permute.xlu1 %1586 }
 0x2b7   :  { %7391 = vst [vmem:[#allocation45_spill] sm:$0xff] %v5600_v0  ;;  %1316 = vrot.lane.b32.xlu1 %v1222_v27, %s4234_s2 }
 0x2b8   :  { %v5603_v47 = vpop.permute.xlu0 %1620 }
 0x2b9   :  { %7392 = vst [vmem:[#allocation136_spill] sm:$0xff] %v5603_v47  ;;  %2129 = vperm.xlu0 %4136, %v7394_v57   ;;  %v1848_v47 = vmul.f32 %v7400_v4, %v5122_v39  ;;  %v1852_v39 = vmul.f32 %v5318_v59, %v5197_v52  ;;  %v1856_v59 = vmul.f32 %v5422_v40, %v5274_v49  ;;  %v7422_v49 = vld [vmem:[#allocation19_spill] sm:$0xff] }
 0x2ba   :  { %v5608_v26 = vpop.permute.xlu1 %1264  ;;  %v1860_v40 = vmul.f32 %v5514_v53, %v5357_v30 }
 0x2bb   :  { %7395 = vst [vmem:[#allocation86_spill] sm:$0xff] %v5608_v26  ;;  %1920 = vrot.lane.b32.xlu1 %v1844_v61, %s4235_s14 }
 0x2bc   :  { %v5611_v51 = vpop.permute.xlu0 %1306 }
 0x2bd   :  { %7396 = vst [vmem:[#allocation52_spill] sm:$0xff] %v5611_v51  ;;  %2137 = vperm.xlu0 %4136, %v4987_v55   ;;  %v7165_v51 = vmov 5  }
 0x2be   :  { %v5616_v0 = vpop.permute.xlu1 %1904 }
 0x2bf   :  { %7398 = vst [vmem:[#allocation95_spill] sm:$0xff] %v5616_v0  ;;  %1924 = vrot.lane.b32.xlu1 %v1846_v43, %s4235_s14  ;;  %v7404_v0 = vld [vmem:[#allocation8_spill] sm:$0xff] }
 0x2c0   :  { %v5619_v27 = vpop.permute.xlu0 %1624 }
 0x2c1   :  { %7399 = vst [vmem:[#allocation137_spill] sm:$0xff] %v5619_v27  ;;  %2145 = vperm.xlu0 %4136, %v5023_v24   ;;  %v7419_v27 = vld [vmem:[#allocation17_spill] sm:$0xff] }
 0x2c2   :  { %v5624_v26 = vpop.permute.xlu1 %1590 }
 0x2c3   :  { %7401 = vst [vmem:[#allocation104_spill] sm:$0xff] %v5624_v26  ;;  %1928 = vrot.lane.b32.xlu1 %v1848_v47, %s4235_s14  ;;  %v7407_v26 = vld [vmem:[#allocation9_spill] sm:$0xff] }
 0x2c4   :  { %v5627_v61 = vpop.permute.xlu0 %1310 }
 0x2c5   :  { %7402 = vst [vmem:[#allocation138_spill] sm:$0xff] %v5627_v61  ;;  %4137 = vset.pattern.permute.xlu0 %v7165_v51  ;;  %v1854_v51 = vmul.f32 %v5374_v11, %v5235_v36  ;;  %v1858_v11 = vmul.f32 %v5470_v9, %v5316_v56  ;;  %v1862_v9 = vmul.f32 %v5548_v46, %v7357_v22  ;;  %v7429_v46 = vld [vmem:[#allocation11_spill] sm:$0xff]  ;;  %v7441_v61 = vld [vmem:[#allocation41_spill] sm:$0xff] }
 0x2c6   :  { %v5632_v43 = vpop.permute.xlu1 %1268  ;;  %2217 = vperm.xlu0 %4137, %v7404_v0  }
 0x2c7   :  { %7403 = vst [vmem:[#allocation139_spill] sm:$0xff] %v5632_v43  ;;  %1932 = vrot.lane.b32.xlu1 %v1850_v32, %s4235_s14  ;;  %v7410_v43 = vld [vmem:[#allocation10_spill] sm:$0xff] }
 0x2c8   :  { %v5636_v4 = vpop.permute.xlu0 %1628 }
 0x2c9   :  { %7405 = vst [vmem:[#allocation8_spill] sm:$0xff] %v5636_v4  ;;  %v7435_v4 = vld [vmem:[#allocation28_spill] sm:$0xff] }
 0x2ca   :  { %v5640_v47 = vpop.permute.xlu1 %1908  ;;  %2229 = vperm.xlu0 %4137, %v7407_v26  }
 0x2cb   :  { %7406 = vst [vmem:[#allocation140_spill] sm:$0xff] %v5640_v47  ;;  %1936 = vrot.lane.b32.xlu1 %v1852_v39, %s4235_s14  ;;  %v7413_v47 = vld [vmem:[#allocation13_spill] sm:$0xff] }
 0x2cc   :  { %v5644_v38 = vpop.permute.xlu0 %1314 }
 0x2cd   :  { %7408 = vst [vmem:[#allocation9_spill] sm:$0xff] %v5644_v38 }
 0x2ce   :  { %v5648_v6 = vpop.permute.xlu1 %1594  ;;  %2237 = vperm.xlu0 %4137, %v7410_v43  }
 0x2cf   :  { %7409 = vst [vmem:[#allocation141_spill] sm:$0xff] %v5648_v6  ;;  %1940 = vrot.lane.b32.xlu1 %v1854_v51, %s4235_s14  ;;  %v7416_v6 = vld [vmem:[#allocation15_spill] sm:$0xff] }
 0x2d0   :  { %v5652_v32 = vpop.permute.xlu0 %1632 }
 0x2d1   :  { %7411 = vst [vmem:[#allocation10_spill] sm:$0xff] %v5652_v32  ;;  %v7468_v32 = vmov 5  }
 0x2d2   :  { %v5656_v52 = vpop.permute.xlu1 %1272  ;;  %2245 = vperm.xlu0 %4137, %v7413_v47  }
 0x2d3   :  { %7412 = vst [vmem:[#allocation142_spill] sm:$0xff] %v5656_v52  ;;  %1944 = vrot.lane.b32.xlu1 %v1856_v59, %s4235_s14 }
 0x2d4   :  { %v5660_v39 = vpop.permute.xlu0 %1318 }
 0x2d5   :  { %7414 = vst [vmem:[#allocation13_spill] sm:$0xff] %v5660_v39 }
 0x2d6   :  { %v5664_v36 = vpop.permute.xlu1 %1912  ;;  %2253 = vperm.xlu0 %4137, %v7416_v6  }
 0x2d7   :  { %7415 = vst [vmem:[#allocation143_spill] sm:$0xff] %v5664_v36  ;;  %1948 = vrot.lane.b32.xlu1 %v1858_v11, %s4235_s14 }
 0x2d8   :  { %v5668_v51 = vpop.permute.xlu0 %1922 }
 0x2d9   :  { %7417 = vst [vmem:[#allocation15_spill] sm:$0xff] %v5668_v51 }
 0x2da   :  { %v5672_v52 = vpop.permute.xlu1 %1598  ;;  %2261 = vperm.xlu0 %4137, %v7419_v27  }
 0x2db   :  { %7418 = vst [vmem:[#allocation144_spill] sm:$0xff] %v5672_v52  ;;  %1952 = vrot.lane.b32.xlu1 %v1860_v40, %s4235_s14 }
 0x2dc   :  { %v5676_v59 = vpop.permute.xlu0 %1926 }
 0x2dd   :  { %7420 = vst [vmem:[#allocation17_spill] sm:$0xff] %v5676_v59  ;;  %v7494_v59 = vld [vmem:[#allocation31_spill] sm:$0xff] }
 0x2de   :  { %v5680_v36 = vpop.permute.xlu1 %1276  ;;  %2269 = vperm.xlu0 %4137, %v7422_v49  }
 0x2df   :  { %7421 = vst [vmem:[#allocation145_spill] sm:$0xff] %v5680_v36  ;;  %1956 = vrot.lane.b32.xlu1 %v1862_v9, %s4235_s14  ;;  %v7432_v9 = vld [vmem:[#allocation25_spill] sm:$0xff] }
 0x2e0   :  { %v5684_v11 = vpop.permute.xlu0 %1930 }
 0x2e1   :  { %7423 = vst [vmem:[#allocation19_spill] sm:$0xff] %v5684_v11 }
 0x2e2   :  { %v5686_v53 = vpop.permute.xlu1 %1916  ;;  %2277 = vperm.xlu0 %4137, %v7425_v50  }
 0x2e3   :  { %7424 = vst [vmem:[#allocation146_spill] sm:$0xff] %v5686_v53  ;;  %2025 = vperm.xlu1 %4135, %v7404_v0  }
 0x2e4   :  { %v5690_v40 = vpop.permute.xlu0 %1934 }
 0x2e5   :  { %7426 = vst [vmem:[#allocation21_spill] sm:$0xff] %v5690_v40 }
 0x2e6   :  { %v5692_v60 = vpop.permute.xlu1 %1602  ;;  %2285 = vperm.xlu0 %4137, %v7428_v45  }
 0x2e7   :  { %7427 = vst [vmem:[#allocation147_spill] sm:$0xff] %v5692_v60  ;;  %2033 = vperm.xlu1 %4135, %v7429_v46  }
 0x2e8   :  { %v5696_v36 = vpop.permute.xlu0 %1938 }
 0x2e9   :  { %7430 = vst [vmem:[#allocation23_spill] sm:$0xff] %v5696_v36 }
 0x2ea   :  { %v5698_v52 = vpop.permute.xlu1 %1280  ;;  %2293 = vperm.xlu0 %4137, %v7432_v9  }
 0x2eb   :  { %7431 = vst [vmem:[#allocation11_spill] sm:$0xff] %v5698_v52  ;;  %2037 = vperm.xlu1 %4135, %v7407_v26   ;;  %v7447_v52 = vld [vmem:[#allocation54_spill] sm:$0xff] }
 0x2ec   :  { %v5702_v11 = vpop.permute.xlu0 %1942 }
 0x2ed   :  { %7433 = vst [vmem:[#allocation25_spill] sm:$0xff] %v5702_v11 }
 0x2ee   :  { %v5704_v53 = vpop.permute.xlu1 %1606  ;;  %2301 = vperm.xlu0 %4137, %v7435_v4  }
 0x2ef   :  { %7434 = vst [vmem:[#allocation148_spill] sm:$0xff] %v5704_v53  ;;  %2045 = vperm.xlu1 %4135, %v7410_v43   ;;  %v7501_v53 = vmov 7  }
 0x2f0   :  { %v5708_v40 = vpop.permute.xlu0 %1946 }
 0x2f1   :  { %7436 = vst [vmem:[#allocation28_spill] sm:$0xff] %v5708_v40 }
 0x2f2   :  { %v5710_v10 = vpop.permute.xlu1 %1284  ;;  %2309 = vperm.xlu0 %4137, %v7438_v17  }
 0x2f3   :  { %7437 = vst [vmem:[#allocation149_spill] sm:$0xff] %v5710_v10  ;;  %2053 = vperm.xlu1 %4135, %v7413_v47  }
 0x2f4   :  { %v5714_v36 = vpop.permute.xlu0 %1950 }
 0x2f5   :  { %7439 = vst [vmem:[#allocation34_spill] sm:$0xff] %v5714_v36 }
 0x2f6   :  { %v5716_v56 = vpop.permute.xlu1 %1610  ;;  %2317 = vperm.xlu0 %4137, %v7441_v61  }
 0x2f7   :  { %7440 = vst [vmem:[#allocation150_spill] sm:$0xff] %v5716_v56  ;;  %2061 = vperm.xlu1 %4135, %v7416_v6  }
 0x2f8   :  { %v5720_v11 = vpop.permute.xlu0 %1954 }
 0x2f9   :  { %7442 = vst [vmem:[#allocation41_spill] sm:$0xff] %v5720_v11 }
 0x2fa   :  { %v5722_v16 = vpop.permute.xlu1 %1288  ;;  %2325 = vperm.xlu0 %4137, %v7444_v37  }
 0x2fb   :  { %7443 = vst [vmem:[#allocation151_spill] sm:$0xff] %v5722_v16  ;;  %2069 = vperm.xlu1 %4135, %v7419_v27  }
 0x2fc   :  { %v5726_v40 = vpop.permute.xlu0 %1636 }
 0x2fd   :  { %7445 = vst [vmem:[#allocation47_spill] sm:$0xff] %v5726_v40 }
 0x2fe   :  { %v5728_v28 = vpop.permute.xlu1 %1614  ;;  %2333 = vperm.xlu0 %4137, %v7447_v52  }
 0x2ff   :  { %7446 = vst [vmem:[#allocation152_spill] sm:$0xff] %v5728_v28  ;;  %2077 = vperm.xlu1 %4135, %v7422_v49  }
 0x300   :  { %v5732_v56 = vpop.permute.xlu0 %1958 }
 0x301   :  { %7448 = vst [vmem:[#allocation54_spill] sm:$0xff] %v5732_v56 }
 0x302   :  { %v5734_v36 = vpop.permute.xlu1 %1292  ;;  %2341 = vperm.xlu0 %4137, %v4999_v7  }
 0x303   :  { %7449 = vst [vmem:[#allocation153_spill] sm:$0xff] %v5734_v36  ;;  %2085 = vperm.xlu1 %4135, %v7425_v50  }
 0x304   :  { %v5738_v16 = vpop.permute.xlu0 %2029 }
 0x305   :  { %7450 = vst [vmem:[#allocation154_spill] sm:$0xff] %v5738_v16 }
 0x306   :  { %v5740_v51 = vpop.permute.xlu1 %1618  ;;  %4139 = vset.pattern.permute.xlu0 %v7176_v62 }
 0x307   :  { %7451 = vst [vmem:[#allocation155_spill] sm:$0xff] %v5740_v51  ;;  %2093 = vperm.xlu1 %4135, %v7428_v45   ;;  %2661 = vperm.xlu0 %4139, %v4999_v7  }
 0x308   :  { %v5745_v28 = vpop.permute.xlu0 %2041 }
 0x309   :  { %7452 = vst [vmem:[#allocation156_spill] sm:$0xff] %v5745_v28 }
 0x30a   :  { %v5747_v60 = vpop.permute.xlu1 %1296 }
 0x30b   :  { %7453 = vst [vmem:[#allocation157_spill] sm:$0xff] %v5747_v60  ;;  %2101 = vperm.xlu1 %4135, %v7432_v9   ;;  %2653 = vperm.xlu0 %4139, %v7447_v52  }
 0x30c   :  { %v5751_v36 = vpop.permute.xlu0 %2049 }
 0x30d   :  { %7454 = vst [vmem:[#allocation158_spill] sm:$0xff] %v5751_v36 }
 0x30e   :  { %v5753_v16 = vpop.permute.xlu1 %1622 }
 0x30f   :  { %7455 = vst [vmem:[#allocation159_spill] sm:$0xff] %v5753_v16  ;;  %2109 = vperm.xlu1 %4135, %v7435_v4   ;;  %2585 = vperm.xlu0 %4139, %v7372_v8  }
 0x310   :  { %v5757_v62 = vpop.permute.xlu0 %2057 }
 0x311   :  { %7456 = vst [vmem:[#allocation160_spill] sm:$0xff] %v5757_v62 }
 0x312   :  { %v5759_v51 = vpop.permute.xlu1 %1300 }
 0x313   :  { %7457 = vst [vmem:[#allocation161_spill] sm:$0xff] %v5759_v51  ;;  %2117 = vperm.xlu1 %4135, %v7438_v17   ;;  %2641 = vperm.xlu0 %4139, %v7394_v57  }
 0x314   :  { %v5763_v28 = vpop.permute.xlu0 %2065 }
 0x315   :  { %7458 = vst [vmem:[#allocation162_spill] sm:$0xff] %v5763_v28 }
 0x316   :  { %v5765_v60 = vpop.permute.xlu1 %1626 }
 0x317   :  { %7459 = vst [vmem:[#allocation163_spill] sm:$0xff] %v5765_v60  ;;  %2125 = vperm.xlu1 %4135, %v7441_v61   ;;  %2573 = vperm.xlu0 %4139, %v7416_v6  }
 0x318   :  { %v5769_v36 = vpop.permute.xlu0 %2073 }
 0x319   :  { %7460 = vst [vmem:[#allocation164_spill] sm:$0xff] %v5769_v36 }
 0x31a   :  { %v5771_v16 = vpop.permute.xlu1 %1304 }
 0x31b   :  { %7461 = vst [vmem:[#allocation165_spill] sm:$0xff] %v5771_v16  ;;  %2133 = vperm.xlu1 %4135, %v7444_v37   ;;  %2629 = vperm.xlu0 %4139, %v7438_v17  }
 0x31c   :  { %v5775_v51 = vpop.permute.xlu0 %2081 }
 0x31d   :  { %7462 = vst [vmem:[#allocation166_spill] sm:$0xff] %v5775_v51 }
 0x31e   :  { %v5777_v62 = vpop.permute.xlu1 %1630 }
 0x31f   :  { %7463 = vst [vmem:[#allocation167_spill] sm:$0xff] %v5777_v62  ;;  %2141 = vperm.xlu1 %4135, %v7447_v52   ;;  %2561 = vperm.xlu0 %4139, %v7366_v44  }
 0x320   :  { %v5781_v28 = vpop.permute.xlu0 %2089 }
 0x321   :  { %7464 = vst [vmem:[#allocation168_spill] sm:$0xff] %v5781_v28 }
 0x322   :  { %v5783_v60 = vpop.permute.xlu1 %1308 }
 0x323   :  { %7465 = vst [vmem:[#allocation169_spill] sm:$0xff] %v5783_v60  ;;  %2149 = vperm.xlu1 %4135, %v4999_v7   ;;  %2617 = vperm.xlu0 %4139, %v7384_v25  }
 0x324   :  { %v5787_v16 = vpop.permute.xlu0 %2097 }
 0x325   :  { %7466 = vst [vmem:[#allocation170_spill] sm:$0xff] %v5787_v16 }
 0x326   :  { %v5789_v36 = vpop.permute.xlu1 %1634 }
 0x327   :  { %7467 = vst [vmem:[#allocation171_spill] sm:$0xff] %v5789_v36  ;;  %4138 = vset.pattern.permute.xlu1 %v7468_v32  ;;  %2549 = vperm.xlu0 %4139, %v7407_v26  }
 0x328   :  { %2221 = vperm.xlu1 %4138, %v7361_v35   ;;  %v5794_v62 = vpop.permute.xlu0 %2105 }
 0x329   :  { %7469 = vst [vmem:[#allocation172_spill] sm:$0xff] %v5794_v62 }
 0x32a   :  { %v5796_v63 = vpop.permute.xlu1 %1312 }
 0x32b   :  { %7470 = vst [vmem:[#allocation173_spill] sm:$0xff] %v5796_v63  ;;  %2605 = vperm.xlu0 %4139, %v7428_v45  }
 0x32c   :  { %2225 = vperm.xlu1 %4138, %v7429_v46   ;;  %v5800_v28 = vpop.permute.xlu0 %2113 }
 0x32d   :  { %7471 = vst [vmem:[#allocation174_spill] sm:$0xff] %v5800_v28 }
 0x32e   :  { %v5802_v60 = vpop.permute.xlu1 %1638 }
 0x32f   :  { %7472 = vst [vmem:[#allocation175_spill] sm:$0xff] %v5802_v60  ;;  %2537 = vperm.xlu0 %4139, %v7404_v0  }
 0x330   :  { %2233 = vperm.xlu1 %4138, %v7364_v29   ;;  %v5806_v32 = vpop.permute.xlu0 %2121 }
 0x331   :  { %7473 = vst [vmem:[#allocation176_spill] sm:$0xff] %v5806_v32 }
 0x332   :  { %v5808_v16 = vpop.permute.xlu1 %1316 }
 0x333   :  { %7474 = vst [vmem:[#allocation177_spill] sm:$0xff] %v5808_v16  ;;  %4160 = vset.pattern.permute.xlu0 %v7179_v1 }
 0x334   :  { %2241 = vperm.xlu1 %4138, %v7366_v44   ;;  %2981 = vperm.xlu0 %4160, %v4999_v7   ;;  %v5813_v62 = vpop.permute.xlu0 %2129 }
 0x335   :  { %7475 = vst [vmem:[#allocation178_spill] sm:$0xff] %v5813_v62 }
 0x336   :  { %v5815_v28 = vpop.permute.xlu1 %1920 }
 0x337   :  { %7476 = vst [vmem:[#allocation179_spill] sm:$0xff] %v5815_v28 }
 0x338   :  { %2249 = vperm.xlu1 %4138, %v7368_v58   ;;  %2913 = vperm.xlu0 %4160, %v7375_v13   ;;  %v5819_v63 = vpop.permute.xlu0 %2137 }
 0x339   :  { %7477 = vst [vmem:[#allocation180_spill] sm:$0xff] %v5819_v63 }
 0x33a   :  { %v5821_v32 = vpop.permute.xlu1 %1924 }
 0x33b   :  { %7478 = vst [vmem:[#allocation181_spill] sm:$0xff] %v5821_v32 }
 0x33c   :  { %2257 = vperm.xlu1 %4138, %v7370_v23   ;;  %2969 = vperm.xlu0 %4160, %v4987_v55   ;;  %v5825_v1 = vpop.permute.xlu0 %2145 }
 0x33d   :  { %7479 = vst [vmem:[#allocation182_spill] sm:$0xff] %v5825_v1 }
 0x33e   :  { %v5827_v51 = vpop.permute.xlu1 %1928 }
 0x33f   :  { %7480 = vst [vmem:[#allocation183_spill] sm:$0xff] %v5827_v51 }
 0x340   :  { %2265 = vperm.xlu1 %4138, %v7372_v8   ;;  %2901 = vperm.xlu0 %4160, %v7419_v27  }
 0x341   :  { %v2218_v7 = vpop.permute.xlu0 %2217 }
 0x342   :  { %v5831_v62 = vpop.permute.xlu1 %1932  ;;  %v2344_v1 = vmul.f32 %v2218_v7, %v7494_v59 }
 0x343   :  { %7481 = vst [vmem:[#allocation184_spill] sm:$0xff] %v5831_v62 }
 0x344   :  { %2273 = vperm.xlu1 %4138, %v7375_v13   ;;  %2957 = vperm.xlu0 %4160, %v7441_v61  }
 0x345   :  { %v5835_v28 = vpop.permute.xlu0 %2229 }
 0x346   :  { %7482 = vst [vmem:[#allocation185_spill] sm:$0xff] %v5835_v28  ;;  %v5837_v63 = vpop.permute.xlu1 %1936 }
 0x347   :  { %7483 = vst [vmem:[#allocation186_spill] sm:$0xff] %v5837_v63 }
 0x348   :  { %2281 = vperm.xlu1 %4138, %v7378_v33   ;;  %2889 = vperm.xlu0 %4160, %v7368_v58  }
 0x349   :  { %v5841_v51 = vpop.permute.xlu0 %2237 }
 0x34a   :  { %7484 = vst [vmem:[#allocation187_spill] sm:$0xff] %v5841_v51  ;;  %v5843_v11 = vpop.permute.xlu1 %1940 }
 0x34b   :  { %7485 = vst [vmem:[#allocation188_spill] sm:$0xff] %v5843_v11 }
 0x34c   :  { %2289 = vperm.xlu1 %4138, %v7381_v15   ;;  %2945 = vperm.xlu0 %4160, %v7387_v48  }
 0x34d   :  { %v5847_v62 = vpop.permute.xlu0 %2245 }
 0x34e   :  { %7486 = vst [vmem:[#allocation189_spill] sm:$0xff] %v5847_v62  ;;  %v5849_v32 = vpop.permute.xlu1 %1944 }
 0x34f   :  { %7487 = vst [vmem:[#allocation190_spill] sm:$0xff] %v5849_v32 }
 0x350   :  { %2297 = vperm.xlu1 %4138, %v7384_v25   ;;  %2877 = vperm.xlu0 %4160, %v7410_v43  }
 0x351   :  { %v5853_v63 = vpop.permute.xlu0 %2253 }
 0x352   :  { %v5855_v30 = vpop.permute.xlu1 %1948 }
 0x353   :  { %7488 = vst [vmem:[#allocation191_spill] sm:$0xff] %v5855_v30 }
 0x354   :  { %2305 = vperm.xlu1 %4138, %v7387_v48   ;;  %2933 = vperm.xlu0 %4160, %v7432_v9  }
 0x355   :  { %v5859_v11 = vpop.permute.xlu0 %2261 }
 0x356   :  { %v5861_v36 = vpop.permute.xlu1 %1952 }
 0x357   :  { %7489 = vst [vmem:[#allocation192_spill] sm:$0xff] %v5861_v36 }
 0x358   :  { %2313 = vperm.xlu1 %4138, %v7390_v34   ;;  %2865 = vperm.xlu0 %4160, %v7429_v46  }
 0x359   :  { %v5865_v32 = vpop.permute.xlu0 %2269 }
 0x35a   :  { %v5867_v31 = vpop.permute.xlu1 %1956 }
 0x35b   :  { %7490 = vst [vmem:[#allocation193_spill] sm:$0xff] %v5867_v31 }
 0x35c   :  { %2321 = vperm.xlu1 %4138, %v7394_v57   ;;  %2857 = vperm.xlu0 %4160, %v7404_v0  }
 0x35d   :  { %v5871_v30 = vpop.permute.xlu0 %2277 }
 0x35e   :  { %v5873_v38 = vpop.permute.xlu1 %2025 }
 0x35f   :  { %7491 = vst [vmem:[#allocation194_spill] sm:$0xff] %v5873_v38 }
 0x360   :  { %2329 = vperm.xlu1 %4138, %v4987_v55   ;;  %4161 = vset.pattern.permute.xlu0 %v7492_v5 }
 0x361   :  { %874 = vperm.xlu0 %4161, %v7404_v0   ;;  %v5878_v36 = vpop.permute.xlu0 %2285  ;;  %v7496_v0 = vmov 6  }
 0x362   :  { %v5880_v41 = vpop.permute.xlu1 %2033 }
 0x363   :  { %7493 = vst [vmem:[#allocation195_spill] sm:$0xff] %v5880_v41 }
 0x364   :  { %2337 = vperm.xlu1 %4138, %v5023_v24  }
 0x365   :  { %879 = vperm.xlu0 %4161, %v7361_v35   ;;  %v5884_v10 = vpop.permute.xlu0 %2293 }
 0x366   :  { %v5887_v54 = vpop.permute.xlu1 %2037 }
 0x367   :  { %7495 = vst [vmem:[#allocation196_spill] sm:$0xff] %v5887_v54 }
 0x368   :  { %2408 = vrot.lane.b32.xlu1 %v2344_v1, %s4234_s2 }
 0x369   :  { %894 = vperm.xlu0 %4161, %v7364_v29   ;;  %v5891_v38 = vpop.permute.xlu0 %2301  ;;  %4140 = vset.pattern.permute.xlu1 %v7496_v0 }
 0x36a   :  { %v5894_v28 = vpop.permute.xlu1 %2045 }
 0x36b   :  { %7497 = vst [vmem:[#allocation197_spill] sm:$0xff] %v5894_v28 }
 0x36c   :  { %2597 = vperm.xlu1 %4140, %v7425_v50  }
 0x36d   :  { %904 = vperm.xlu0 %4161, %v7366_v44   ;;  %v5898_v41 = vpop.permute.xlu0 %2309 }
 0x36e   :  { %v5900_v31 = vpop.permute.xlu1 %2053 }
 0x36f   :  { %7498 = vst [vmem:[#allocation198_spill] sm:$0xff] %v5900_v31 }
 0x370   :  { %2657 = vperm.xlu1 %4140, %v5023_v24  }
 0x371   :  { %914 = vperm.xlu0 %4161, %v7368_v58   ;;  %v5904_v1 = vpop.permute.xlu0 %2317 }
 0x372   :  { %v5906_v7 = vpop.permute.xlu1 %2061 }
 0x373   :  { %7499 = vst [vmem:[#allocation199_spill] sm:$0xff] %v5906_v7 }
 0x374   :  { %2593 = vperm.xlu1 %4140, %v7375_v13  }
 0x375   :  { %924 = vperm.xlu0 %4161, %v7370_v23   ;;  %v5910_v54 = vpop.permute.xlu0 %2325 }
 0x376   :  { %v5912_v28 = vpop.permute.xlu1 %2069 }
 0x377   :  { %7500 = vst [vmem:[#allocation200_spill] sm:$0xff] %v5912_v28 }
 0x378   :  { %4141 = vset.pattern.permute.xlu1 %v7501_v53 }
 0x379   :  { %934 = vperm.xlu0 %4161, %v7372_v8   ;;  %2917 = vperm.xlu1 %4141, %v7425_v50   ;;  %v5917_v31 = vpop.permute.xlu0 %2333 }
 0x37a   :  { %v5919_v12 = vpop.permute.xlu1 %2077 }
 0x37b   :  { %7502 = vst [vmem:[#allocation201_spill] sm:$0xff] %v5919_v12 }
 0x37d   :  { %944 = vperm.xlu0 %4161, %v7375_v13   ;;  %2977 = vperm.xlu1 %4141, %v5023_v24   ;;  %v5923_v7 = vpop.permute.xlu0 %2341 }
 0x37e   :  { %v5925_v40 = vpop.permute.xlu1 %2085 }
 0x37f   :  { %7503 = vst [vmem:[#allocation202_spill] sm:$0xff] %v5925_v40 }
 0x381   :  { %954 = vperm.xlu0 %4161, %v7378_v33   ;;  %4142 = vset.pattern.permute.xlu1 %v7496_v0 }
 0x382   :  { %v5929_v28 = vpop.permute.xlu1 %2093  ;;  %2589 = vperm.xlu1 %4142, %v7422_v49   ;;  %v5932_v50 = vpop.permute.xlu0 %2661 }
 0x383   :  { %7504 = vst [vmem:[#allocation203_spill] sm:$0xff] %v5929_v28 }
 0x385   :  { %964 = vperm.xlu0 %4161, %v7381_v15  }
 0x386   :  { %v5935_v12 = vpop.permute.xlu1 %2101  ;;  %2649 = vperm.xlu1 %4142, %v4987_v55   ;;  %v5938_v13 = vpop.permute.xlu0 %2653 }
 0x387   :  { %7505 = vst [vmem:[#allocation204_spill] sm:$0xff] %v5935_v12 }
 0x389   :  { %974 = vperm.xlu0 %4161, %v7384_v25  }
 0x38a   :  { %v5941_v40 = vpop.permute.xlu1 %2109  ;;  %4143 = vset.pattern.permute.xlu1 %v7501_v53  ;;  %v5944_v42 = vpop.permute.xlu0 %2585 }
 0x38b   :  { %7506 = vst [vmem:[#allocation205_spill] sm:$0xff] %v5941_v40  ;;  %2973 = vperm.xlu1 %4143, %v7447_v52  }
 0x38d   :  { %984 = vperm.xlu0 %4161, %v7387_v48  }
 0x38e   :  { %v5948_v28 = vpop.permute.xlu1 %2117  ;;  %v5950_v16 = vpop.permute.xlu0 %2641 }
 0x38f   :  { %7507 = vst [vmem:[#allocation206_spill] sm:$0xff] %v5948_v28  ;;  %2909 = vperm.xlu1 %4143, %v7422_v49  }
 0x391   :  { %994 = vperm.xlu0 %4161, %v7390_v34  }
 0x392   :  { %v5954_v12 = vpop.permute.xlu1 %2125  ;;  %v5956_v56 = vpop.permute.xlu0 %2573 }
 0x393   :  { %7508 = vst [vmem:[#allocation207_spill] sm:$0xff] %v5954_v12  ;;  %4144 = vset.pattern.permute.xlu1 %v7496_v0 }
 0x394   :  { %2645 = vperm.xlu1 %4144, %v7444_v37  }
 0x395   :  { %1004 = vperm.xlu0 %4161, %v7394_v57  }
 0x396   :  { %v5961_v52 = vpop.permute.xlu1 %2133  ;;  %v5963_v40 = vpop.permute.xlu0 %2629 }
 0x397   :  { %7509 = vst [vmem:[#allocation208_spill] sm:$0xff] %v5961_v52  ;;  %7510 = vst [vmem:[#allocation209_spill] sm:$0xff] %v5963_v40  ;;  %v7525_v40 = vld [vmem:[#allocation82_spill] sm:$0xff] }
 0x398   :  { %2581 = vperm.xlu1 %4144, %v7419_v27  }
 0x399   :  { %1014 = vperm.xlu0 %4161, %v4987_v55  }
 0x39a   :  { %v5967_v49 = vpop.permute.xlu1 %2141  ;;  %v5969_v28 = vpop.permute.xlu0 %2561 }
 0x39b   :  { %7511 = vst [vmem:[#allocation210_spill] sm:$0xff] %v5967_v49 }
 0x39c   :  { %4145 = vset.pattern.permute.xlu1 %v7501_v53 }
 0x39d   :  { %2905 = vperm.xlu1 %4145, %v7372_v8   ;;  %1024 = vperm.xlu0 %4161, %v5023_v24  }
 0x39e   :  { %v5974_v12 = vpop.permute.xlu1 %2149  ;;  %v5976_v22 = vpop.permute.xlu0 %2617 }
 0x39f   :  { %7512 = vst [vmem:[#allocation211_spill] sm:$0xff] %v5974_v12  ;;  %7513 = vst [vmem:[#allocation212_spill] sm:$0xff] %v5976_v22 }
 0x3a1   :  { %2965 = vperm.xlu1 %4145, %v7444_v37  }
 0x3a2   :  { %v5979_v52 = vpop.permute.xlu0 %2549 }
 0x3a3   :  { %v5981_v27 = vpop.permute.xlu1 %2221 }
 0x3a4   :  { %7514 = vst [vmem:[#allocation213_spill] sm:$0xff] %v5981_v27 }
 0x3a5   :  { %4146 = vset.pattern.permute.xlu1 %v7496_v0 }
 0x3a6   :  { %2577 = vperm.xlu1 %4146, %v7370_v23   ;;  %v5987_v49 = vpop.permute.xlu0 %2605 }
 0x3a7   :  { %v5985_v55 = vpop.permute.xlu1 %2225  ;;  %7516 = vst [vmem:[#allocation215_spill] sm:$0xff] %v5987_v49 }
 0x3a8   :  { %7515 = vst [vmem:[#allocation214_spill] sm:$0xff] %v5985_v55 }
 0x3aa   :  { %2637 = vperm.xlu1 %4146, %v7441_v61   ;;  %v5992_v24 = vpop.permute.xlu0 %2537 }
 0x3ab   :  { %v5990_v8 = vpop.permute.xlu1 %2233  ;;  %7518 = vst [vmem:[#allocation217_spill] sm:$0xff] %v5992_v24 }
 0x3ac   :  { %7517 = vst [vmem:[#allocation216_spill] sm:$0xff] %v5990_v8 }
 0x3ae   :  { %4147 = vset.pattern.permute.xlu1 %v7501_v53 }
 0x3af   :  { %v5995_v37 = vpop.permute.xlu1 %2241  ;;  %2961 = vperm.xlu1 %4147, %v7394_v57   ;;  %v2982_v22 = vpop.permute.xlu0 %2981 }
 0x3b0   :  { %7519 = vst [vmem:[#allocation218_spill] sm:$0xff] %v5995_v37 }
 0x3b3   :  { %v5998_v27 = vpop.permute.xlu1 %2249  ;;  %2897 = vperm.xlu1 %4147, %v7370_v23   ;;  %v6005_v61 = vpop.permute.xlu0 %2913 }
 0x3b7   :  { %v6001_v55 = vpop.permute.xlu1 %2257  ;;  %4148 = vset.pattern.permute.xlu1 %v7496_v0  ;;  %v6010_v8 = vpop.permute.xlu0 %2969 }
 0x3b8   :  { %2633 = vperm.xlu1 %4148, %v7390_v34  }
 0x3bb   :  { %v6007_v24 = vpop.permute.xlu1 %2265  ;;  %v6017_v57 = vpop.permute.xlu0 %2901 }
 0x3bc   :  { %2569 = vperm.xlu1 %4148, %v7368_v58  }
 0x3bf   :  { %v2274_v49 = vpop.permute.xlu1 %2273  ;;  %v6025_v60 = vpop.permute.xlu0 %2957 }
 0x3c0   :  { %4149 = vset.pattern.permute.xlu1 %v7501_v53 }
 0x3c1   :  { %2893 = vperm.xlu1 %4149, %v7416_v6  }
 0x3c3   :  { %v6014_v23 = vpop.permute.xlu1 %2281  ;;  %v6030_v6 = vpop.permute.xlu0 %2889 }
 0x3c4   :  { %7520 = vst [vmem:[#allocation219_spill] sm:$0xff] %v6014_v23  ;;  %7521 = vst [vmem:[#allocation220_spill] sm:$0xff] %v6030_v6  ;;  %v7523_v6 = vld [vmem:[#allocation4_spill] sm:$0xff] }
 0x3c5   :  { %2953 = vperm.xlu1 %4149, %v7390_v34  }
 0x3c7   :  { %v6019_v12 = vpop.permute.xlu1 %2289  ;;  %v6039_v14 = vpop.permute.xlu0 %2945 }
 0x3c9   :  { %4150 = vset.pattern.permute.xlu1 %v7496_v0 }
 0x3ca   :  { %2565 = vperm.xlu1 %4150, %v7413_v47  }
 0x3cb   :  { %v6023_v58 = vpop.permute.xlu1 %2297 }
 0x3ce   :  { %2625 = vperm.xlu1 %4150, %v7387_v48   ;;  %v6043_v48 = vpop.permute.xlu0 %2877 }
 0x3cf   :  { %v6028_v59 = vpop.permute.xlu1 %2305  ;;  %7522 = vst [vmem:[#allocation221_spill] sm:$0xff] %v6043_v48  ;;  %v6056_v48 = vpop.f32.mrf.mxu0 }
 0x3d2   :  { %4151 = vset.pattern.permute.xlu1 %v7501_v53  ;;  %v6051_v23 = vpop.permute.xlu0 %2933 }
 0x3d3   :  { %v6033_v34 = vpop.permute.xlu1 %2313  ;;  %2949 = vperm.xlu1 %4151, %v7438_v17  }
 0x3d7   :  { %v6036_v39 = vpop.permute.xlu1 %2321  ;;  %2885 = vperm.xlu1 %4151, %v7413_v47   ;;  %v2358_v47 = vmul.f32 %v2274_v49, %v7525_v40 }
 0x3db   :  { %v2330_v2 = vpop.permute.xlu1 %2329  ;;  %4152 = vset.pattern.permute.xlu1 %v7496_v0 }
 0x3dc   :  { %2621 = vperm.xlu1 %4152, %v7435_v4  }
 0x3df   :  { %v2338_v51 = vpop.permute.xlu1 %2337 }
 0x3e0   :  { %v2374_v37 = vmul.f32 %v2338_v51, %v7523_v6  ;;  %2557 = vperm.xlu1 %4152, %v7410_v43   ;;  %v2373_v43 = vmul.f32 %v5917_v31, %v6056_v48  ;;  %v6063_v51 = vpop.permute.xlu0 %2865 }
 0x3e2   :  { %2468 = vrot.lane.b32.xlu0 %v2374_v37, %s4234_s2  ;;  %v7526_v37 = vld [vmem:[#allocation6_spill] sm:$0xff] }
 0x3e3   :  { %v6048_v17 = vpop.permute.xlu1 %2408 }
 0x3e4   :  { %7524 = vst [vmem:[#allocation4_spill] sm:$0xff] %v6048_v17  ;;  %4153 = vset.pattern.permute.xlu1 %v7501_v53  ;;  %v3015_v17 = vmul.f32 %v2982_v22, %v7526_v37 }
 0x3e5   :  { %2881 = vperm.xlu1 %4153, %v7366_v44  }
 0x3e6   :  { %2436 = vrot.lane.b32.xlu0 %v2358_v47, %s4234_s2  ;;  %v6072_v47 = vpop.permute.xlu0 %2857 }
 0x3e7   :  { %v6058_v62 = vpop.permute.xlu1 %2597  ;;  %7527 = vst [vmem:[#allocation82_spill] sm:$0xff] %v6072_v47 }
 0x3e9   :  { %2941 = vperm.xlu1 %4153, %v7435_v4   ;;  %v2372_v4 = vmul.f32 %v2330_v2, %v5369_v20 }
 0x3ea   :  { %2466 = vrot.lane.b32.xlu0 %v2373_v43, %s4234_s2  ;;  %v6080_v22 = vpop.permute.xlu0 %874 }
 0x3eb   :  { %v6066_v49 = vpop.permute.xlu1 %2657  ;;  %7528 = vst [vmem:[#allocation6_spill] sm:$0xff] %v6080_v22 }
 0x3ed   :  { %4154 = vset.pattern.permute.xlu1 %v7496_v0 }
 0x3ee   :  { %2553 = vperm.xlu1 %4154, %v7364_v29   ;;  %3110 = vrot.lane.b32.xlu0 %v3015_v17, %s4235_s14 }
 0x3ef   :  { %v2594_v44 = vpop.permute.xlu1 %2593 }
 0x3f0   :  { %v2678_v31 = vmul.f32 %v2594_v44, %v7525_v40  ;;  %v7530_v44 = vld [vmem:[#allocation78_spill] sm:$0xff] }
 0x3f2   :  { %2613 = vperm.xlu1 %4154, %v7432_v9   ;;  %2756 = vrot.lane.b32.xlu0 %v2678_v31, %s4236_s3  ;;  %v6088_v9 = vpop.permute.xlu0 %879 }
 0x3f3   :  { %7529 = vst [vmem:[#allocation222_spill] sm:$0xff] %v6088_v9 }
 0x3f4   :  { %v6078_v43 = vpop.permute.xlu1 %2917 }
 0x3f6   :  { %4155 = vset.pattern.permute.xlu1 %v7501_v53  ;;  %2464 = vrot.lane.b32.xlu0 %v2372_v4, %s4234_s2 }
 0x3f7   :  { %2937 = vperm.xlu1 %4155, %v7384_v25   ;;  %v2371_v25 = vmul.f32 %v5910_v54, %v5343_v21  ;;  %v7533_v54 = vld [vmem:[#allocation75_spill] sm:$0xff] }
 0x3f8   :  { %v2978_v17 = vpop.permute.xlu1 %2977  ;;  %v2676_v22 = vmul.f32 %v5944_v42, %v7533_v54  ;;  %v3012_v42 = vmul.f32 %v6010_v8, %v5369_v20  ;;  %v2369_v8 = vmul.f32 %v5904_v1, %v5303_v19 }
 0x3f9   :  { %v3014_v47 = vmul.f32 %v2978_v17, %v7523_v6  ;;  %v6098_v17 = vpop.permute.xlu0 %894 }
 0x3fa   :  { %7531 = vst [vmem:[#allocation78_spill] sm:$0xff] %v6098_v17 }
 0x3fb   :  { %2873 = vperm.xlu1 %4155, %v7364_v29   ;;  %3108 = vrot.lane.b32.xlu0 %v3014_v47, %s4235_s14 }
 0x3fd   :  { %v2590_v2 = vpop.permute.xlu1 %2589 }
 0x3fe   :  { %v2677_v31 = vmul.f32 %v2590_v2, %v7530_v44  ;;  %v6103_v2 = vpop.permute.xlu0 %904 }
 0x3ff   :  { %4156 = vset.pattern.permute.xlu1 %v7496_v0  ;;  %7532 = vst [vmem:[#allocation223_spill] sm:$0xff] %v6103_v2 }
 0x400   :  { %2609 = vperm.xlu1 %4156, %v7381_v15   ;;  %2754 = vrot.lane.b32.xlu0 %v2677_v31, %s4236_s3 }
 0x401   :  { %v6094_v4 = vpop.permute.xlu1 %2649 }
 0x404   :  { %2545 = vperm.xlu1 %4156, %v7429_v46   ;;  %2462 = vrot.lane.b32.xlu0 %v2371_v25, %s4234_s2  ;;  %v6114_v46 = vpop.permute.xlu0 %914  ;;  %v2370_v25 = vmul.f32 %v6036_v39, %v5326_v3 }
 0x405   :  { %7534 = vst [vmem:[#allocation75_spill] sm:$0xff] %v6114_v46  ;;  %v7558_v46 = vld [vmem:[#allocation37_spill] sm:$0xff] }
 0x406   :  { %v2974_v29 = vpop.permute.xlu1 %2973 }
 0x407   :  { %v3013_v47 = vmul.f32 %v2974_v29, %v6056_v48 }
 0x408   :  { %4157 = vset.pattern.permute.xlu1 %v7501_v53 }
 0x409   :  { %2869 = vperm.xlu1 %4157, %v7407_v26   ;;  %3106 = vrot.lane.b32.xlu0 %v3013_v47, %s4235_s14 }
 0x40a   :  { %v6108_v31 = vpop.permute.xlu1 %2909 }
 0x40d   :  { %2929 = vperm.xlu1 %4157, %v7381_v15   ;;  %2752 = vrot.lane.b32.xlu0 %v2676_v22, %s4236_s3  ;;  %v6125_v15 = vpop.permute.xlu0 %924  ;;  %v7535_v22 = vld [vmem:[#allocation71_spill] sm:$0xff] }
 0x40f   :  { %v6118_v29 = vpop.permute.xlu1 %2645 }
 0x411   :  { %4158 = vset.pattern.permute.xlu1 %v7496_v0  ;;  %2460 = vrot.lane.b32.xlu0 %v2370_v25, %s4234_s2  ;;  %v6133_v0 = vpop.permute.xlu0 %934 }
 0x412   :  { %2541 = vperm.xlu1 %4158, %v7361_v35  }
 0x413   :  { %v2582_v26 = vpop.permute.xlu1 %2581 }
 0x414   :  { %v2675_v39 = vmul.f32 %v2582_v26, %v7535_v22 }
 0x415   :  { %3104 = vrot.lane.b32.xlu0 %v3012_v42, %s4235_s14  ;;  %v6142_v26 = vpop.permute.xlu0 %944 }
 0x416   :  { %2601 = vperm.xlu1 %4158, %v7378_v33  }
 0x418   :  { %v6130_v47 = vpop.permute.xlu1 %2905 }
 0x419   :  { %2750 = vrot.lane.b32.xlu0 %v2675_v39, %s4236_s3  ;;  %v7536_v39 = vld [vmem:[#allocation67_spill] sm:$0xff]  ;;  %v6152_v1 = vpop.permute.xlu0 %954 }
 0x41a   :  { %4159 = vset.pattern.permute.xlu1 %v7501_v53  ;;  %v2375_v53 = vmul.f32 %v5923_v7, %v7526_v37  ;;  %7537 = vst [vmem:[#allocation71_spill] sm:$0xff] %v6152_v1 }
 0x41b   :  { %2925 = vperm.xlu1 %4159, %v7428_v45  }
 0x41c   :  { %v2966_v25 = vpop.permute.xlu1 %2965 }
 0x41d   :  { %2458 = vrot.lane.b32.xlu0 %v2369_v8, %s4234_s2  ;;  %v3011_v42 = vmul.f32 %v2966_v25, %v5343_v21  ;;  %v7538_v8 = vld [vmem:[#allocation85_spill] sm:$0xff]  ;;  %v2695_v25 = vmul.f32 %v5932_v50, %v7526_v37 }
 0x41f   :  { %2861 = vperm.xlu1 %4159, %v7361_v35   ;;  %v2368_v35 = vmul.f32 %v6033_v34, %v5286_v18 }
 0x421   :  { %v2578_v9 = vpop.permute.xlu1 %2577  ;;  %3102 = vrot.lane.b32.xlu0 %v3011_v42, %s4235_s14 }
 0x422   :  { %v2674_v17 = vmul.f32 %v2578_v9, %v7536_v39  ;;  %v2359_v9 = vmul.f32 %v5871_v30, %v7538_v8  ;;  %v2679_v30 = vmul.f32 %v6058_v62, %v7538_v8 }
 0x423   :  { %2921 = vperm.xlu1 %4159, %v7378_v33  }
 0x425   :  { %v6149_v45 = vpop.permute.xlu1 %2637  ;;  %2748 = vrot.lane.b32.xlu0 %v2674_v17, %s4236_s3  ;;  %v6163_v17 = vpop.permute.xlu0 %964 }
 0x426   :  { %7539 = vst [vmem:[#allocation85_spill] sm:$0xff] %v6163_v17 }
 0x427   :  { %2470 = vrot.lane.b32.xlu1 %v2375_v53, %s4234_s2 }
 0x428   :  { %4162 = vset.pattern.permute.xlu1 %v7492_v5  ;;  %v7540_v5 = vld [vmem:[#allocation63_spill] sm:$0xff] }
 0x429   :  { %2456 = vrot.lane.b32.xlu0 %v2368_v35, %s4234_s2  ;;  %v2673_v42 = vmul.f32 %v5956_v56, %v7540_v5  ;;  %v6176_v53 = vpop.permute.xlu0 %974  ;;  %v7542_v35 = vld [vmem:[#allocation111_spill] sm:$0xff]  ;;  %v3009_v56 = vmul.f32 %v6025_v60, %v5303_v19 }
 0x42a   :  { %v2962_v33 = vpop.permute.xlu1 %2961  ;;  %7541 = vst [vmem:[#allocation224_spill] sm:$0xff] %v6176_v53 }
 0x42b   :  { %v3010_v7 = vmul.f32 %v2962_v33, %v5326_v3  ;;  %2438 = vrot.lane.b32.xlu1 %v2359_v9, %s4234_s2  ;;  %v2367_v9 = vmul.f32 %v5898_v41, %v7542_v35  ;;  %v2694_v33 = vmul.f32 %v6066_v49, %v7523_v6  ;;  %v2357_v41 = vmul.f32 %v5865_v32, %v7530_v44 }
 0x42d   :  { %3100 = vrot.lane.b32.xlu0 %v3010_v7, %s4235_s14  ;;  %v6189_v7 = vpop.permute.xlu0 %984 }
 0x42e   :  { %v6168_v34 = vpop.permute.xlu1 %2897  ;;  %7543 = vst [vmem:[#allocation225_spill] sm:$0xff] %v6189_v7 }
 0x42f   :  { %2790 = vrot.lane.b32.xlu1 %v2695_v25, %s4236_s3  ;;  %v7544_v25 = vld [vmem:[#allocation59_spill] sm:$0xff] }
 0x431   :  { %2746 = vrot.lane.b32.xlu0 %v2673_v42, %s4236_s3  ;;  %v6201_v60 = vpop.permute.xlu0 %994 }
 0x432   :  { %7545 = vst [vmem:[#allocation226_spill] sm:$0xff] %v6201_v60 }
 0x433   :  { %v6180_v50 = vpop.permute.xlu1 %2633  ;;  %2758 = vrot.lane.b32.xlu1 %v2679_v30, %s4236_s3  ;;  %v2999_v30 = vmul.f32 %v6078_v43, %v7538_v8 }
 0x435   :  { %2454 = vrot.lane.b32.xlu0 %v2367_v9, %s4234_s2  ;;  %v7546_v9 = vld [vmem:[#allocation109_spill] sm:$0xff]  ;;  %v6211_v43 = vpop.permute.xlu0 %1004 }
 0x437   :  { %v2570_v62 = vpop.permute.xlu1 %2569  ;;  %2788 = vrot.lane.b32.xlu1 %v2694_v33, %s4236_s3  ;;  %v2366_v33 = vmul.f32 %v6028_v59, %v7546_v9  ;;  %v7547_v59 = vld [vmem:[#allocation55_spill] sm:$0xff] }
 0x438   :  { %v2672_v42 = vmul.f32 %v2570_v62, %v7544_v25 }
 0x439   :  { %3098 = vrot.lane.b32.xlu0 %v3009_v56, %s4235_s14  ;;  %v2693_v56 = vmul.f32 %v5938_v13, %v6056_v48  ;;  %v2998_v13 = vmul.f32 %v6005_v61, %v7525_v40 }
 0x43b   :  { %2434 = vrot.lane.b32.xlu1 %v2357_v41, %s4234_s2  ;;  %v2356_v41 = vmul.f32 %v6007_v24, %v7533_v54  ;;  %v2692_v24 = vmul.f32 %v6094_v4, %v5369_v20 }
 0x43c   :  { %v6196_v49 = vpop.permute.xlu1 %2893 }
 0x43d   :  { %2744 = vrot.lane.b32.xlu0 %v2672_v42, %s4236_s3 }
 0x43f   :  { %3078 = vrot.lane.b32.xlu1 %v2999_v30, %s4235_s14 }
 0x440   :  { %v2954_v32 = vpop.permute.xlu1 %2953 }
 0x441   :  { %2452 = vrot.lane.b32.xlu0 %v2366_v33, %s4234_s2  ;;  %v3008_v62 = vmul.f32 %v2954_v32, %v5286_v18  ;;  %v6223_v32 = vpop.permute.xlu0 %1014 }
 0x443   :  { %2786 = vrot.lane.b32.xlu1 %v2693_v56, %s4236_s3  ;;  %v7548_v56 = vld [vmem:[#allocation106_spill] sm:$0xff] }
 0x444   :  { %v2365_v1 = vmul.f32 %v5891_v38, %v7548_v56 }
 0x445   :  { %v2566_v42 = vpop.permute.xlu1 %2565  ;;  %3096 = vrot.lane.b32.xlu0 %v3008_v62, %s4235_s14  ;;  %v6233_v61 = vpop.permute.xlu0 %1024 }
 0x446   :  { %v2671_v30 = vmul.f32 %v2566_v42, %v7547_v59  ;;  %v2355_v42 = vmul.f32 %v5859_v11, %v7535_v22 }
 0x447   :  { %2432 = vrot.lane.b32.xlu1 %v2356_v41, %s4234_s2 }
 0x449   :  { %v6220_v33 = vpop.permute.xlu1 %2625  ;;  %2742 = vrot.lane.b32.xlu0 %v2671_v30, %s4236_s3  ;;  %v7549_v30 = vld [vmem:[#allocation51_spill] sm:$0xff] }
 0x44b   :  { %3076 = vrot.lane.b32.xlu1 %v2998_v13, %s4235_s14  ;;  %v2670_v13 = vmul.f32 %v5969_v28, %v7549_v30  ;;  %v2691_v28 = vmul.f32 %v6118_v29, %v5343_v21 }
 0x44d   :  { %2450 = vrot.lane.b32.xlu0 %v2365_v1, %s4234_s2  ;;  %v2997_v1 = vmul.f32 %v6108_v31, %v7530_v44 }
 0x44e   :  { %v2950_v62 = vpop.permute.xlu1 %2949 }
 0x44f   :  { %v3007_v41 = vmul.f32 %v2950_v62, %v7542_v35  ;;  %2784 = vrot.lane.b32.xlu1 %v2692_v24, %s4236_s3  ;;  %v7550_v24 = vld [vmem:[#allocation103_spill] sm:$0xff] }
 0x450   :  { %v2364_v62 = vmul.f32 %v6023_v58, %v7550_v24  ;;  %v2354_v58 = vmul.f32 %v6001_v55, %v7536_v39 }
 0x451   :  { %3094 = vrot.lane.b32.xlu0 %v3007_v41, %s4235_s14 }
 0x452   :  { %v6238_v38 = vpop.permute.xlu1 %2885 }
 0x453   :  { %2430 = vrot.lane.b32.xlu1 %v2355_v42, %s4234_s2  ;;  %v3006_v42 = vmul.f32 %v6039_v14, %v7546_v9  ;;  %v2996_v14 = vmul.f32 %v6130_v47, %v7533_v54 }
 0x454   :  { %v6243_v4 = vpop.permute.xlu0 %2468 }
 0x455   :  { %2740 = vrot.lane.b32.xlu0 %v2670_v13, %s4236_s3 }
 0x457   :  { %v6250_v11 = vpop.permute.xlu1 %2621  ;;  %3074 = vrot.lane.b32.xlu1 %v2997_v1, %s4235_s14  ;;  %v7551_v1 = vld [vmem:[#allocation48_spill] sm:$0xff] }
 0x458   :  { %v6253_v41 = vpop.permute.xlu0 %2436 }
 0x459   :  { %2448 = vrot.lane.b32.xlu0 %v2364_v62, %s4234_s2 }
 0x45b   :  { %v2558_v31 = vpop.permute.xlu1 %2557  ;;  %2782 = vrot.lane.b32.xlu1 %v2691_v28, %s4236_s3  ;;  %v7552_v28 = vld [vmem:[#allocation99_spill] sm:$0xff] }
 0x45c   :  { %v6261_v13 = vpop.permute.xlu0 %2466  ;;  %v2669_v17 = vmul.f32 %v2558_v31, %v7551_v1  ;;  %v2363_v53 = vmul.f32 %v5884_v10, %v7552_v28  ;;  %v2690_v31 = vmul.f32 %v5950_v16, %v5326_v3  ;;  %v2995_v16 = vmul.f32 %v6017_v57, %v7535_v22 }
 0x45d   :  { %3092 = vrot.lane.b32.xlu0 %v3006_v42, %s4235_s14 }
 0x45f   :  { %2428 = vrot.lane.b32.xlu1 %v2354_v58, %s4234_s2 }
 0x460   :  { %v6268_v29 = vpop.permute.xlu1 %2881  ;;  %v6270_v62 = vpop.permute.xlu0 %3110 }
 0x461   :  { %2738 = vrot.lane.b32.xlu0 %v2669_v17, %s4236_s3  ;;  %v2353_v17 = vmul.f32 %v5853_v63, %v7540_v5  ;;  %v2689_v63 = vmul.f32 %v6149_v45, %v5303_v19 }
 0x463   :  { %3072 = vrot.lane.b32.xlu1 %v2996_v14, %s4235_s14  ;;  %v7553_v14 = vld [vmem:[#allocation44_spill] sm:$0xff] }
 0x464   :  { %v2942_v55 = vpop.permute.xlu1 %2941  ;;  %v6278_v42 = vpop.permute.xlu0 %2756 }
 0x465   :  { %2446 = vrot.lane.b32.xlu0 %v2363_v53, %s4234_s2  ;;  %v3005_v58 = vmul.f32 %v2942_v55, %v7548_v56 }
 0x467   :  { %2780 = vrot.lane.b32.xlu1 %v2690_v31, %s4236_s3  ;;  %v7554_v31 = vld [vmem:[#allocation96_spill] sm:$0xff] }
 0x468   :  { %v6285_v47 = vpop.permute.xlu0 %2464  ;;  %v2362_v7 = vmul.f32 %v6019_v12, %v7554_v31 }
 0x469   :  { %v2554_v10 = vpop.permute.xlu1 %2553  ;;  %3090 = vrot.lane.b32.xlu0 %v3005_v58, %s4235_s14 }
 0x46a   :  { %v2668_v2 = vmul.f32 %v2554_v10, %v7553_v14  ;;  %v7555_v10 = vld [vmem:[#allocation42_spill] sm:$0xff] }
 0x46b   :  { %2426 = vrot.lane.b32.xlu1 %v2353_v17, %s4234_s2 }
 0x46d   :  { %v6294_v53 = vpop.permute.xlu1 %2613  ;;  %2736 = vrot.lane.b32.xlu0 %v2668_v2, %s4236_s3  ;;  %v6297_v55 = vpop.permute.xlu0 %3108  ;;  %v2352_v2 = vmul.f32 %v5998_v27, %v7544_v25 }
 0x46f   :  { %3070 = vrot.lane.b32.xlu1 %v2995_v16, %s4235_s14  ;;  %v2667_v16 = vmul.f32 %v5979_v52, %v7555_v10 }
 0x471   :  { %2444 = vrot.lane.b32.xlu0 %v2362_v7, %s4234_s2  ;;  %v2994_v7 = vmul.f32 %v6168_v34, %v7536_v39 }
 0x472   :  { %v2938_v58 = vpop.permute.xlu1 %2937  ;;  %v6305_v17 = vpop.permute.xlu0 %2754 }
 0x473   :  { %v3004_v57 = vmul.f32 %v2938_v58, %v7550_v24  ;;  %2778 = vrot.lane.b32.xlu1 %v2689_v63, %s4236_s3  ;;  %v7556_v63 = vld [vmem:[#allocation92_spill] sm:$0xff] }
 0x474   :  { %v2361_v58 = vmul.f32 %v5878_v36, %v7556_v63 }
 0x475   :  { %3088 = vrot.lane.b32.xlu0 %v3004_v57, %s4235_s14  ;;  %v2688_v57 = vmul.f32 %v6180_v50, %v5286_v18  ;;  %v2993_v18 = vmul.f32 %v6196_v49, %v7540_v5  ;;  %v7563_v49 = vld [vmem:[#allocation218_spill] sm:$0xff] }
 0x476   :  { %v6312_v12 = vpop.permute.xlu1 %2873  ;;  %v6317_v45 = vpop.permute.xlu0 %2462 }
 0x477   :  { %2424 = vrot.lane.b32.xlu1 %v2352_v2, %s4234_s2  ;;  %v3003_v2 = vmul.f32 %v6051_v23, %v7552_v28  ;;  %v7559_v23 = vld [vmem:[#allocation89_spill] sm:$0xff] }
 0x479   :  { %2734 = vrot.lane.b32.xlu0 %v2667_v16, %s4236_s3  ;;  %v7557_v16 = vld [vmem:[#allocation189_spill] sm:$0xff] }
 0x47a   :  { %v2351_v36 = vmul.f32 %v7557_v16, %v7547_v59 }
 0x47b   :  { %v6324_v27 = vpop.permute.xlu1 %2609  ;;  %3068 = vrot.lane.b32.xlu1 %v2994_v7, %s4235_s14  ;;  %v6330_v52 = vpop.permute.xlu0 %3106 }
 0x47d   :  { %2442 = vrot.lane.b32.xlu0 %v2361_v58, %s4234_s2 }
 0x47f   :  { %v2546_v34 = vpop.permute.xlu1 %2545  ;;  %2776 = vrot.lane.b32.xlu1 %v2688_v57, %s4236_s3  ;;  %v6340_v50 = vpop.permute.xlu0 %2752  ;;  %v7560_v57 = vld [vmem:[#allocation219_spill] sm:$0xff] }
 0x480   :  { %v2666_v7 = vmul.f32 %v2546_v34, %v7558_v46  ;;  %v2360_v39 = vmul.f32 %v7560_v57, %v7559_v23 }
 0x481   :  { %3086 = vrot.lane.b32.xlu0 %v3003_v2, %s4235_s14  ;;  %v7561_v2 = vld [vmem:[#allocation209_spill] sm:$0xff] }
 0x482   :  { %v2687_v34 = vmul.f32 %v7561_v2, %v7542_v35 }
 0x483   :  { %2422 = vrot.lane.b32.xlu1 %v2351_v36, %s4234_s2  ;;  %v6353_v36 = vpop.permute.xlu0 %2460 }
 0x484   :  { %v6342_v58 = vpop.permute.xlu1 %2869  ;;  %7562 = vst [vmem:[#allocation48_spill] sm:$0xff] %v6353_v36  ;;  %v7574_v36 = vld [vmem:[#allocation82_spill] sm:$0xff] }
 0x485   :  { %2732 = vrot.lane.b32.xlu0 %v2666_v7, %s4236_s3  ;;  %v2350_v7 = vmul.f32 %v7563_v49, %v7549_v30 }
 0x487   :  { %3066 = vrot.lane.b32.xlu1 %v2993_v18, %s4235_s14  ;;  %v2986_v18 = vmul.f32 %v6063_v51, %v7558_v46  ;;  %v6365_v57 = vpop.permute.xlu0 %3104 }
 0x488   :  { %v2930_v16 = vpop.permute.xlu1 %2929 }
 0x489   :  { %2440 = vrot.lane.b32.xlu0 %v2360_v39, %s4234_s2  ;;  %v3002_v60 = vmul.f32 %v2930_v16, %v7554_v31  ;;  %v7564_v39 = vld [vmem:[#allocation220_spill] sm:$0xff] }
 0x48a   :  { %v2992_v2 = vmul.f32 %v7564_v39, %v7544_v25  ;;  %v7567_v25 = vld [vmem:[#allocation35_spill] sm:$0xff] }
 0x48b   :  { %2774 = vrot.lane.b32.xlu1 %v2687_v34, %s4236_s3  ;;  %v2686_v34 = vmul.f32 %v6220_v33, %v7546_v9  ;;  %v7569_v33 = vld [vmem:[#allocation5_spill] sm:$0xff]  ;;  %v7570_v9 = vld [vmem:[#allocation7_spill] sm:$0xff] }
 0x48c   :  { %v1063_v19 = vmul.f32 %v7570_v9, %v7569_v33 }
 0x48d   :  { %v6359_v5 = vpop.permute.xlu1 %2541  ;;  %3084 = vrot.lane.b32.xlu0 %v3002_v60, %s4235_s14  ;;  %v6375_v60 = vpop.permute.xlu0 %2750 }
 0x48e   :  { %7565 = vst [vmem:[#allocation99_spill] sm:$0xff] %v6375_v60 }
 0x48f   :  { %2420 = vrot.lane.b32.xlu1 %v2350_v7, %s4234_s2  ;;  %v7566_v7 = vld [vmem:[#allocation187_spill] sm:$0xff] }
 0x490   :  { %v2349_v35 = vmul.f32 %v7566_v7, %v7551_v1  ;;  %v7572_v7 = vld [vmem:[#allocation13_spill] sm:$0xff] }
 0x491   :  { %v6369_v16 = vpop.permute.xlu1 %2601  ;;  %3052 = vrot.lane.b32.xlu0 %v2986_v18, %s4235_s14  ;;  %v1383_v60 = vadd.f32 %v7572_v7, %v1063_v19  ;;  %v7577_v19 = vld [vmem:[#allocation211_spill] sm:$0xff] }
 0x492   :  { %v2183_v33 = vmul.f32 %v7577_v19, %v7526_v37  ;;  %v7581_v37 = vld [vmem:[#allocation177_spill] sm:$0xff] }
 0x493   :  { %3064 = vrot.lane.b32.xlu1 %v2992_v2, %s4235_s14  ;;  %v6384_v2 = vpop.permute.xlu0 %2458 }
 0x494   :  { %7568 = vst [vmem:[#allocation44_spill] sm:$0xff] %v6384_v2  ;;  %v2685_v2 = vmul.f32 %v6250_v11, %v7548_v56  ;;  %v7580_v11 = vld [vmem:[#allocation216_spill] sm:$0xff]  ;;  %v3387_v56 = vld [vmem:[%s7045_s9 + $0x20] sm:$0xff] }
 0x496   :  { %v2926_v49 = vpop.permute.xlu1 %2925 }
 0x497   :  { %v3001_v51 = vmul.f32 %v2926_v49, %v7556_v63  ;;  %2772 = vrot.lane.b32.xlu1 %v2686_v34, %s4236_s3  ;;  %v2991_v49 = vmul.f32 %v6238_v38, %v7547_v59  ;;  %v6401_v9 = vpop.permute.xlu0 %3102 }
 0x498   :  { %7576 = vst [vmem:[#allocation42_spill] sm:$0xff] %v6401_v9 }
 0x499   :  { %3082 = vrot.lane.b32.xlu0 %v3001_v51, %s4235_s14  ;;  %v7573_v51 = vld [vmem:[#allocation31_spill] sm:$0xff] }
 0x49a   :  { %v2862_v39 = vpop.permute.xlu1 %2861  ;;  %v2984_v3 = vmul.f32 %v7574_v36, %v7573_v51  ;;  %v7578_v36 = vld [vmem:[#allocation3_spill] sm:$0xff] }
 0x49b   :  { %v2985_v18 = vmul.f32 %v2862_v39, %v7567_v25  ;;  %2418 = vrot.lane.b32.xlu1 %v2349_v35, %s4234_s2  ;;  %v7575_v35 = vld [vmem:[#allocation175_spill] sm:$0xff] }
 0x49c   :  { %v1703_v39 = vadd.f32 %v7575_v35, %v1383_v60  ;;  %v1062_v60 = vmul.f32 %v6233_v61, %v7578_v36  ;;  %v2990_v61 = vmul.f32 %v6268_v29, %v7549_v30  ;;  %v7588_v30 = vld [vmem:[#allocation148_spill] sm:$0xff] }
 0x49d   :  { %3050 = vrot.lane.b32.xlu0 %v2985_v18, %s4235_s14  ;;  %v3384_v18 = vld [vmem:[%s7045_s9 + $0x8] sm:$0xff] }
 0x49e   :  { %v6391_v34 = vpop.permute.xlu1 %2921  ;;  %v1382_v19 = vadd.f32 %v7581_v37, %v1062_v60 }
 0x49f   :  { %7571 = vst [vmem:[#allocation96_spill] sm:$0xff] %v6391_v34  ;;  %3062 = vrot.lane.b32.xlu1 %v2991_v49, %s4235_s14  ;;  %v7579_v49 = vld [vmem:[#allocation54_spill] sm:$0xff] }
 0x4a0   :  { %v2023_v7 = vadd.f32 %v7579_v49, %v1703_v39  ;;  %v7583_v49 = vld [vmem:[#allocation84_spill] sm:$0xff] }
 0x4a1   :  { %3048 = vrot.lane.b32.xlu0 %v2984_v3, %s4235_s14  ;;  %v2348_v3 = vmul.f32 %v7580_v11, %v7553_v14  ;;  %v7584_v11 = vld [vmem:[#allocation88_spill] sm:$0xff] }
 0x4a2   :  { %v2471_v38 = vpop.permute.xlu1 %2470  ;;  %v2215_v59 = vadd.f32 %v2183_v33, %v2023_v7  ;;  %v1047_v34 = vmul.f32 %v7584_v11, %v7583_v49  ;;  %v7585_v7 = vld [vmem:[#allocation47_spill] sm:$0xff] }
 0x4a3   :  { %2770 = vrot.lane.b32.xlu1 %v2685_v2, %s4236_s3  ;;  %v6419_v2 = vpop.permute.xlu0 %2748  ;;  %v1702_v60 = vadd.f32 %v7585_v7, %v1382_v19  ;;  %v7590_v19 = vld [vmem:[#allocation185_spill] sm:$0xff] }
 0x4a4   :  { %7582 = vst [vmem:[#allocation92_spill] sm:$0xff] %v6419_v2  ;;  %v2535_v39 = vadd.f32 %v2471_v38, %v2215_v59  ;;  %v7587_v2 = vld [vmem:[#allocation212_spill] sm:$0xff]  ;;  %v7594_v7 = vld [vmem:[#allocation17_spill] sm:$0xff] }
 0x4a5   :  { %3398 = vperm.xlu0 %4161, %v3384_v18   ;;  %v3389_v18 = vld [vmem:[%s7045_s9 + $0x30] sm:$0xff]  ;;  %v2684_v29 = vmul.f32 %v7587_v2, %v7550_v24  ;;  %v7592_v2 = vld [vmem:[#allocation80_spill] sm:$0xff] }
 0x4a6   :  { %v2439_v35 = vpop.permute.xlu1 %2438 }
 0x4a7   :  { %2416 = vrot.lane.b32.xlu1 %v2348_v3, %s4234_s2  ;;  %v7586_v3 = vld [vmem:[#allocation14_spill] sm:$0xff] }
 0x4a8   :  { %v1367_v37 = vadd.f32 %v7586_v3, %v1047_v34  ;;  %v7591_v34 = vld [vmem:[#allocation202_spill] sm:$0xff] }
 0x4a9   :  { %3413 = vperm.xlu0 %4161, %v3387_v56   ;;  %v6434_v56 = vpop.permute.xlu0 %2456  ;;  %v2167_v49 = vmul.f32 %v7591_v34, %v7538_v8  ;;  %v7598_v34 = vld [vmem:[#allocation90_spill] sm:$0xff] }
 0x4aa   :  { %v2791_v36 = vpop.permute.xlu1 %2790  ;;  %v1687_v9 = vadd.f32 %v7588_v30, %v1367_v37 }
 0x4ab   :  { %v2855_v33 = vadd.f32 %v2791_v36, %v2535_v39  ;;  %3060 = vrot.lane.b32.xlu1 %v2990_v61, %s4235_s14  ;;  %v7589_v39 = vld [vmem:[#allocation193_spill] sm:$0xff]  ;;  %v2347_v36 = vmul.f32 %v7590_v19, %v7555_v10  ;;  %v7597_v19 = vld [vmem:[#allocation124_spill] sm:$0xff] }
 0x4ac   :  { %v2022_v61 = vadd.f32 %v7589_v39, %v1702_v60  ;;  %v2007_v30 = vadd.f32 %v7594_v7, %v1687_v9  ;;  %v7595_v60 = vld [vmem:[#allocation221_spill] sm:$0xff] }
 0x4ad   :  { %v3175_v59 = vadd.f32 %v6270_v62, %v2855_v33  ;;  %3423 = vperm.xlu0 %4161, %v3389_v18   ;;  %v1046_v62 = vmul.f32 %v6142_v26, %v7592_v2  ;;  %v7593_v18 = vld [vmem:[#allocation182_spill] sm:$0xff]  ;;  %v6449_v37 = vpop.permute.xlu0 %3100  ;;  %v1061_v26 = vmul.f32 %v7598_v34, %v7597_v19  ;;  %v7599_v9 = vld [vmem:[#allocation9_spill] sm:$0xff] }
 0x4ae   :  { %v2759_v38 = vpop.permute.xlu1 %2758  ;;  %v2182_v11 = vmul.f32 %v7593_v18, %v7523_v6  ;;  %v2199_v8 = vadd.f32 %v2167_v49, %v2007_v30  ;;  %v7606_v34 = vld [vmem:[#allocation41_spill] sm:$0xff] }
 0x4af   :  { %2768 = vrot.lane.b32.xlu1 %v2684_v29, %s4236_s3  ;;  %3879 = vmatprep.subr.mxu1 %v3175_v59  ;;  %v2989_v29 = vmul.f32 %v7595_v60, %v7551_v1  ;;  %v7596_v59 = vld [vmem:[#allocation149_spill] sm:$0xff]  ;;  %v2683_v60 = vmul.f32 %v6294_v53, %v7552_v28 }
 0x4b0   :  { %v2214_v3 = vadd.f32 %v2182_v11, %v2022_v61  ;;  %v1366_v39 = vadd.f32 %v7596_v59, %v1046_v62  ;;  %v2519_v18 = vadd.f32 %v2439_v35, %v2199_v8  ;;  %v7600_v11 = vld [vmem:[#allocation16_spill] sm:$0xff]  ;;  %v7601_v62 = vld [vmem:[#allocation171_spill] sm:$0xff] }
 0x4b1   :  { %v6463_v30 = vpop.permute.xlu0 %2746 }
 0x4b2   :  { %v2789_v33 = vpop.permute.xlu1 %2788  ;;  %v2534_v2 = vadd.f32 %v6243_v4, %v2214_v3  ;;  %v1686_v7 = vadd.f32 %v7600_v11, %v1366_v39  ;;  %v2839_v24 = vadd.f32 %v2759_v38, %v2519_v18  ;;  %v7602_v4 = vld [vmem:[#allocation210_spill] sm:$0xff]  ;;  %v7605_v38 = vld [vmem:[#allocation181_spill] sm:$0xff] }
 0x4b3   :  { %2414 = vrot.lane.b32.xlu1 %v2347_v36, %s4234_s2  ;;  %v1381_v36 = vadd.f32 %v7599_v9, %v1061_v26  ;;  %v2181_v35 = vmul.f32 %v7602_v4, %v6056_v48  ;;  %v7603_v3 = vld [vmem:[#allocation122_spill] sm:$0xff]  ;;  %v7608_v48 = vld [vmem:[#allocation173_spill] sm:$0xff] }
 0x4b4   :  { %v2854_v61 = vadd.f32 %v2789_v33, %v2534_v2  ;;  %v1060_v33 = vmul.f32 %v6223_v32, %v7603_v3  ;;  %v7604_v39 = vld [vmem:[#allocation214_spill] sm:$0xff]  ;;  %v2006_v8 = vadd.f32 %v7605_v38, %v1686_v7  ;;  %v2988_v7 = vmul.f32 %v6312_v12, %v7553_v14  ;;  %v7614_v38 = vld [vmem:[#allocation201_spill] sm:$0xff] }
 0x4b5   :  { %v1701_v49 = vadd.f32 %v7601_v62, %v1381_v36  ;;  %v2346_v53 = vmul.f32 %v7604_v39, %v7558_v46  ;;  %v6479_v36 = vpop.permute.xlu0 %2454  ;;  %v7612_v4 = vld [vmem:[#allocation10_spill] sm:$0xff] }
 0x4b6   :  { %v2435_v6 = vpop.permute.xlu1 %2434  ;;  %v1380_v9 = vadd.f32 %v7608_v48, %v1060_v33  ;;  %v7613_v33 = vld [vmem:[#allocation147_spill] sm:$0xff] }
 0x4b7   :  { %3058 = vrot.lane.b32.xlu1 %v2989_v29, %s4235_s14  ;;  %v3174_v29 = vadd.f32 %v6297_v55, %v2854_v61  ;;  %v2021_v26 = vadd.f32 %v7606_v34, %v1701_v49  ;;  %v7609_v55 = vld [vmem:[#allocation77_spill] sm:$0xff]  ;;  %v7610_v61 = vld [vmem:[#allocation79_spill] sm:$0xff] }
 0x4b8   :  { %v1045_v11 = vmul.f32 %v7610_v61, %v7609_v55  ;;  %v7615_v34 = vld [vmem:[#allocation73_spill] sm:$0xff]  ;;  %v7620_v61 = vld [vmem:[#allocation11_spill] sm:$0xff] }
 0x4b9   :  { %v2213_v32 = vadd.f32 %v2181_v35, %v2021_v26  ;;  %v1700_v35 = vadd.f32 %v7612_v4, %v1380_v9  ;;  %v6494_v12 = vpop.permute.xlu0 %3098 }
 0x4ba   :  { %v3079_v59 = vpop.permute.xlu1 %3078 }
 0x4bb   :  { %v3159_v19 = vadd.f32 %v3079_v59, %v2839_v24  ;;  %2766 = vrot.lane.b32.xlu1 %v2683_v60, %s4236_s3  ;;  %v7607_v24 = vld [vmem:[#allocation166_spill] sm:$0xff]  ;;  %v2533_v62 = vadd.f32 %v6261_v13, %v2213_v32  ;;  %v7611_v59 = vld [vmem:[#allocation129_spill] sm:$0xff]  ;;  %v7619_v32 = vld [vmem:[#allocation180_spill] sm:$0xff] }
 0x4bc   :  { %v2166_v18 = vmul.f32 %v7607_v24, %v7525_v40  ;;  %v2180_v55 = vmul.f32 %v7619_v32, %v5369_v20  ;;  %v7631_v32 = vld [vmem:[#allocation34_spill] sm:$0xff] }
 0x4bd   :  { %3880 = vmatpush3.msra.mxu1 %v3159_v19  ;;  %v1365_v19 = vadd.f32 %v7611_v59, %v1045_v11  ;;  %v7621_v59 = vld [vmem:[#allocation120_spill] sm:$0xff] }
 0x4be   :  { %v2787_v2 = vpop.permute.xlu1 %2786  ;;  %3881 = vmatprep.subr.mxu1 %v3174_v29  ;;  %v2198_v60 = vadd.f32 %v2166_v18, %v2006_v8  ;;  %v2165_v8 = vmul.f32 %v7614_v38, %v7530_v44 }
 0x4bf   :  { %2412 = vrot.lane.b32.xlu1 %v2346_v53, %s4234_s2  ;;  %v2853_v3 = vadd.f32 %v2787_v2, %v2533_v62  ;;  %v1685_v29 = vadd.f32 %v7613_v33, %v1365_v19  ;;  %v2682_v53 = vmul.f32 %v6324_v27, %v7554_v31  ;;  %v7616_v2 = vld [vmem:[#allocation192_spill] sm:$0xff]  ;;  %v7618_v27 = vld [vmem:[#allocation213_spill] sm:$0xff]  ;;  %v7624_v33 = vld [vmem:[#allocation138_spill] sm:$0xff] }
 0x4c0   :  { %v2518_v40 = vadd.f32 %v6253_v41, %v2198_v60  ;;  %v1044_v41 = vmul.f32 %v6133_v0, %v7615_v34  ;;  %v2020_v24 = vadd.f32 %v7616_v2, %v1700_v35  ;;  %v2345_v9 = vmul.f32 %v7618_v27, %v7567_v25  ;;  %v7622_v19 = vld [vmem:[#allocation72_spill] sm:$0xff] }
 0x4c1   :  { %v3173_v18 = vadd.f32 %v6330_v52, %v2853_v3  ;;  %v2987_v52 = vmul.f32 %v6342_v58, %v7555_v10  ;;  %v7623_v35 = vld [vmem:[#allocation12_spill] sm:$0xff] }
 0x4c2   :  { %v2433_v49 = vpop.permute.xlu1 %2432  ;;  %v2838_v39 = vadd.f32 %v6278_v42, %v2518_v40  ;;  %v7617_v42 = vld [vmem:[#allocation15_spill] sm:$0xff]  ;;  %v1364_v0 = vadd.f32 %v7620_v61, %v1044_v41  ;;  %v2212_v60 = vadd.f32 %v2180_v55, %v2020_v24  ;;  %v1059_v40 = vmul.f32 %v7622_v19, %v7621_v59  ;;  %v7628_v2 = vld [vmem:[#allocation208_spill] sm:$0xff] }
 0x4c3   :  { %3056 = vrot.lane.b32.xlu1 %v2988_v7, %s4235_s14  ;;  %v2005_v48 = vadd.f32 %v7617_v42, %v1685_v29  ;;  %v6510_v7 = vpop.permute.xlu0 %2744  ;;  %v2179_v24 = vmul.f32 %v7628_v2, %v5343_v21  ;;  %v7632_v21 = vld [vmem:[#allocation169_spill] sm:$0xff] }
 0x4c4   :  { %v2532_v4 = vadd.f32 %v6285_v47, %v2212_v60  ;;  %v1684_v3 = vadd.f32 %v7623_v35, %v1364_v0  ;;  %v1379_v29 = vadd.f32 %v7624_v33, %v1059_v40  ;;  %v7627_v47 = vld [vmem:[#allocation179_spill] sm:$0xff]  ;;  %v7634_v60 = vld [vmem:[#allocation68_spill] sm:$0xff]  ;;  %v7635_v40 = vld [vmem:[#allocation102_spill] sm:$0xff] }
 0x4c5   :  { %v2197_v11 = vadd.f32 %v2165_v8, %v2005_v48 }
 0x4c6   :  { %v3077_v13 = vpop.permute.xlu1 %3076  ;;  %v2004_v41 = vadd.f32 %v7627_v47, %v1684_v3  ;;  %v7636_v3 = vld [vmem:[#allocation8_spill] sm:$0xff] }
 0x4c7   :  { %v3158_v26 = vadd.f32 %v3077_v13, %v2838_v39  ;;  %2764 = vrot.lane.b32.xlu1 %v2682_v53, %s4236_s3  ;;  %v2517_v62 = vadd.f32 %v2435_v6, %v2197_v11  ;;  %v7625_v53 = vld [vmem:[#allocation215_spill] sm:$0xff]  ;;  %v6526_v8 = vpop.permute.xlu0 %2452  ;;  %v7639_v47 = vld [vmem:[#allocation200_spill] sm:$0xff] }
 0x4c8   :  { %v2681_v13 = vmul.f32 %v7625_v53, %v7556_v63  ;;  %v7626_v6 = vld [vmem:[#allocation167_spill] sm:$0xff] }
 0x4c9   :  { %3882 = vmatpush3.msra.mxu1 %v3158_v26  ;;  %v2837_v58 = vadd.f32 %v6305_v17, %v2517_v62  ;;  %v1699_v38 = vadd.f32 %v7626_v6, %v1379_v29  ;;  %v7630_v17 = vld [vmem:[#allocation164_spill] sm:$0xff]  ;;  %v3176_v62 = vlaneseq }
 0x4ca   :  { %v2785_v44 = vpop.permute.xlu1 %2784  ;;  %3883 = vmatprep.subr.mxu1 %v3173_v18  ;;  %v7629_v18 = vld [vmem:[#allocation117_spill] sm:$0xff]  ;;  %v2164_v27 = vmul.f32 %v7630_v17, %v7533_v54  ;;  %v2680_v54 = vmul.f32 %v6369_v16, %v7559_v23 }
 0x4cb   :  { %2410 = vrot.lane.b32.xlu1 %v2345_v9, %s4234_s2  ;;  %v2852_v39 = vadd.f32 %v2785_v44, %v2532_v4  ;;  %v1058_v42 = vmul.f32 %v6211_v43, %v7629_v18  ;;  %v2665_v9 = vmul.f32 %v6359_v5, %v7567_v25  ;;  %v2019_v55 = vadd.f32 %v7631_v32, %v1699_v38  ;;  %v6542_v43 = vpop.permute.xlu0 %3096  ;;  %v3185_v38 = vld [vmem:[%s7046_s0] sm:$0x3] }
 0x4cc   :  { %v2196_v61 = vadd.f32 %v2164_v27, %v2004_v41  ;;  %v6553_v35 = vshrl.u32 %v3176_v62, 7  ;;  %v2163_v41 = vmul.f32 %v7639_v47, %v7535_v22  ;;  %v7641_v18 = vld [vmem:[#allocation191_spill] sm:$0xff]  ;;  %v7646_v22 = vld [vmem:[#allocation178_spill] sm:$0xff] }
 0x4cd   :  { %v3172_v48 = vadd.f32 %v6365_v57, %v2852_v39  ;;  %v1378_v0 = vadd.f32 %v7632_v21, %v1058_v42  ;;  %v2211_v11 = vadd.f32 %v2179_v24, %v2019_v55  ;;  %v7633_v57 = vld [vmem:[#allocation70_spill] sm:$0xff]  ;;  %v7637_v39 = vld [vmem:[#allocation144_spill] sm:$0xff] }
 0x4ce   :  { %v6517_v20 = vpop.permute.xlu1 %2430  ;;  %v2516_v5 = vadd.f32 %v2433_v49, %v2196_v61  ;;  %v7644_v55 = vld [vmem:[#allocation96_spill] sm:$0xff] }
 0x4cf   :  { %3054 = vrot.lane.b32.xlu1 %v2987_v52, %s4235_s14  ;;  %v1043_v52 = vmul.f32 %v7634_v60, %v7633_v57  ;;  %v2531_v59 = vadd.f32 %v6317_v45, %v2211_v11  ;;  %v1698_v33 = vadd.f32 %v7636_v3, %v1378_v0  ;;  %v3192_v45 = vsub.s32 1, %v6553_v35  ;;  %v7647_v11 = vld [vmem:[#allocation145_spill] sm:$0xff]  ;;  %v7650_v3 = vld [vmem:[#allocation48_spill] sm:$0xff] }
 0x4d0   :  { %v2836_v49 = vadd.f32 %v6340_v50, %v2516_v5  ;;  %v4241_v0 = vmov 1.0  }
 0x4d1   :  { %v1363_v4 = vadd.f32 %v7635_v40, %v1043_v52  ;;  %v6572_v50 = vrot.slane %v3185_v38, %v3192_v45  ;;  %v2018_v42 = vadd.f32 %v7641_v18, %v1698_v33  ;;  %v6591_v52 = vadd.s32 8, %v6553_v35  ;;  %v7649_v40 = vld [vmem:[#allocation56_spill] sm:$0xff]  ;;  %v7653_v45 = vld [vmem:[#allocation99_spill] sm:$0xff] }
 0x4d2   :  { %v3075_v34 = vpop.permute.xlu1 %3074  ;;  %v6620_v18 = vadd.s32 24, %v6553_v35 }
 0x4d3   :  { %v3157_v26 = vadd.f32 %v3075_v34, %v2837_v58  ;;  %2762 = vrot.lane.b32.xlu1 %v2681_v13, %s4236_s3  ;;  %v1683_v53 = vadd.f32 %v7637_v39, %v1363_v4  ;;  %v7638_v13 = vld [vmem:[#allocation217_spill] sm:$0xff]  ;;  %v6561_v58 = vpop.permute.xlu0 %2742  ;;  %v3188_v34 = vsub.s32 0, %v6553_v35  ;;  %vm3195_vm3 = vcmp.eq.s32.totalorder %v6553_v35, %v6572_v50  ;;  %v7651_v39 = vld [vmem:[#allocation128_spill] sm:$0xff] }
 0x4d4   :  { %v2664_v16 = vmul.f32 %v7638_v13, %v7573_v51  ;;  %3819 = vmatprep.mubr.msk.f32.mxu1 %vm3195_vm3, %v4241_v0  ;;  %vm3197_vm5 = vcmp.eq.s32.totalorder %v6591_v52, %v6572_v50  ;;  %v6607_v13 = vadd.s32 16, %v6553_v35  ;;  %vm3201_vm9 = vcmp.eq.s32.totalorder %v6620_v18, %v6572_v50 }
 0x4d5   :  { %3884 = vmatpush3.msra.mxu1 %v3157_v26  ;;  %v7640_v26 = vld [vmem:[#allocation65_spill] sm:$0xff]  ;;  %v6576_v27 = vrot.slane %v3185_v38, %v3188_v34  ;;  %v7654_v38 = vld [vmem:[#allocation163_spill] sm:$0xff] }
 0x4d6   :  { %v2783_v44 = vpop.permute.xlu1 %2782  ;;  %3885 = vmatprep.subr.mxu1 %v3172_v48  ;;  %v1042_v2 = vmul.f32 %v6125_v15, %v7640_v26  ;;  %v7642_v48 = vld [vmem:[#allocation42_spill] sm:$0xff]  ;;  %vm3199_vm7 = vcmp.eq.s32.totalorder %v6607_v13, %v6572_v50 }
 0x4d7   :  { %2730 = vrot.lane.b32.xlu1 %v2665_v9, %s4236_s3  ;;  %v2851_v29 = vadd.f32 %v2783_v44, %v2531_v59  ;;  %v7643_v9 = vld [vmem:[#allocation127_spill] sm:$0xff]  ;;  %v3000_v44 = vmul.f32 %v7644_v55, %v7559_v23  ;;  %v7645_v15 = vld [vmem:[#allocation118_spill] sm:$0xff]  ;;  %vm3194_vm4 = vcmp.eq.s32.totalorder %v6553_v35, %v6576_v27  ;;  %v6593_v5 = vpop.permute.xlu0 %2450  ;;  %vm3196_vm6 = vcmp.eq.s32.totalorder %v6591_v52, %v6576_v27 }
 0x4d8   :  { %v2003_v32 = vadd.f32 %v7643_v9, %v1683_v53  ;;  %v2178_v61 = vmul.f32 %v7646_v22, %v7645_v15  ;;  %v1362_v57 = vadd.f32 %v7647_v11, %v1042_v2  ;;  %v7648_v59 = vld [vmem:[#allocation115_spill] sm:$0xff]  ;;  %vm3198_vm8 = vcmp.eq.s32.totalorder %v6607_v13, %v6576_v27  ;;  %v7655_v26 = vld [vmem:[#allocation146_spill] sm:$0xff]  ;;  %v7658_v9 = vld [vmem:[#allocation112_spill] sm:$0xff] }
 0x4d9   :  { %v3171_v17 = vadd.f32 %v7642_v48, %v2851_v29  ;;  %v1057_v4 = vmul.f32 %v7649_v40, %v7648_v59  ;;  %v7657_v48 = vld [vmem:[#allocation207_spill] sm:$0xff]  ;;  %v7661_v22 = vld [vmem:[#allocation162_spill] sm:$0xff]  ;;  %vm3200_vm10 = vcmp.eq.s32.totalorder %v6620_v18, %v6576_v27  ;;  %v3445_v13 = vld [vmem:[%s7048_s1 + $0x30] sm:$0xff] }
 0x4da   :  { %v6549_v19 = vpop.permute.xlu1 %2428  ;;  %v2195_v60 = vadd.f32 %v2163_v41, %v2003_v32  ;;  %v1682_v53 = vadd.f32 %v7651_v39, %v1362_v57  ;;  %v7659_v32 = vld [vmem:[#allocation226_spill] sm:$0xff]  ;;  %v7660_v15 = vld [vmem:[#allocation67_spill] sm:$0xff] }
 0x4db   :  { %2760 = vrot.lane.b32.xlu1 %v2680_v54, %s4236_s3  ;;  %v2210_v54 = vadd.f32 %v2178_v61, %v2018_v42  ;;  %v6616_v47 = vpop.permute.xlu0 %3094  ;;  %v7656_v42 = vld [vmem:[#allocation116_spill] sm:$0xff]  ;;  %v1056_v55 = vmul.f32 %v7659_v32, %v7658_v9  ;;  %v2162_v61 = vmul.f32 %v7661_v22, %v7660_v15  ;;  %v7672_v9 = vld [vmem:[#allocation199_spill] sm:$0xff]  ;;  %v3442_v52 = vld [vmem:[%s7048_s1 + $0x18] sm:$0xff] }
 0x4dc   :  { %v2515_v62 = vadd.f32 %v6517_v20, %v2195_v60  ;;  %v2002_v2 = vadd.f32 %v7655_v26, %v1682_v53  ;;  %v7666_v53 = vld [vmem:[#allocation44_spill] sm:$0xff]  ;;  %v7669_v26 = vld [vmem:[#allocation141_spill] sm:$0xff]  ;;  %v3446_v18 = vld [vmem:[%s7048_s1 + $0x38] sm:$0xff] }
 0x4dd   :  { %v2530_v33 = vadd.f32 %v7650_v3, %v2210_v54  ;;  %v6635_v54 = vadd.s32 32, %v6553_v35  ;;  %v7665_v3 = vld [vmem:[#allocation58_spill] sm:$0xff] }
 0x4de   :  { %v3073_v6 = vpop.permute.xlu1 %3072  ;;  %v2194_v60 = vadd.f32 %v2162_v61, %v2002_v2  ;;  %v6666_v61 = vadd.s32 48, %v6553_v35 }
 0x4df   :  { %v3156_v24 = vadd.f32 %v3073_v6, %v2836_v49  ;;  %2728 = vrot.lane.b32.xlu1 %v2664_v16, %s4236_s3  ;;  %v7652_v16 = vld [vmem:[#allocation52_spill] sm:$0xff]  ;;  %v2835_v6 = vadd.f32 %v7653_v45, %v2515_v62  ;;  %v7663_v62 = vld [vmem:[#allocation165_spill] sm:$0xff]  ;;  %v6638_v40 = vpop.permute.xlu0 %2740  ;;  %vm3203_vm11 = vcmp.eq.s32.totalorder %v6635_v54, %v6572_v50  ;;  %vm3202_vm12 = vcmp.eq.s32.totalorder %v6635_v54, %v6576_v27 }
 0x4e0   :  { %v1377_v20 = vadd.f32 %v7652_v16, %v1057_v4  ;;  %v7664_v4 = vld [vmem:[#allocation62_spill] sm:$0xff]  ;;  %v2514_v39 = vadd.f32 %v6549_v19, %v2194_v60  ;;  %v7670_v19 = vld [vmem:[#allocation92_spill] sm:$0xff]  ;;  %v7676_v60 = vld [vmem:[#allocation93_spill] sm:$0xff]  ;;  %vm3207_vm15 = vcmp.eq.s32.totalorder %v6666_v61, %v6572_v50  ;;  %vm3206_vm1 = vcmp.eq.s32.totalorder %v6666_v61, %v6576_v27 }
 0x4e1   :  { %3886 = vmatpush3.msra.mxu1 %v3156_v24  ;;  %v7787_v54 = vmov 0.0  }
 0x4e2   :  { %v2781_v21 = vpop.permute.xlu1 %2780  ;;  %3887 = vmatprep.subr.mxu1 %v3171_v17  ;;  %v1697_v34 = vadd.f32 %v7654_v38, %v1377_v20  ;;  %v2177_v17 = vmul.f32 %v7657_v48, %v7656_v42  ;;  %v7668_v38 = vld [vmem:[#allocation137_spill] sm:$0xff] }
 0x4e3   :  { %3080 = vrot.lane.b32.xlu1 %v3000_v44, %s4235_s14  ;;  %v2850_v49 = vadd.f32 %v2781_v21, %v2530_v33  ;;  %v7662_v21 = vld [vmem:[#allocation28_spill] sm:$0xff]  ;;  %v1041_v33 = vmul.f32 %v7665_v3, %v7664_v4  ;;  %v6659_v42 = vpop.permute.xlu0 %2448 }
 0x4e4   :  { %v2017_v11 = vadd.f32 %v7662_v21, %v1697_v34  ;;  %v7675_v21 = vld [vmem:[#allocation190_spill] sm:$0xff] }
 0x4e5   :  { %v3170_v44 = vadd.f32 %v6449_v37, %v2850_v49  ;;  %v1376_v37 = vadd.f32 %v7663_v62, %v1056_v55  ;;  %v7667_v49 = vld [vmem:[#allocation83_spill] sm:$0xff]  ;;  %v7673_v55 = vld [vmem:[#allocation57_spill] sm:$0xff] }
 0x4e6   :  { %v6603_v29 = vpop.permute.xlu1 %2426  ;;  %v2209_v59 = vadd.f32 %v2177_v17, %v2017_v11  ;;  %v1361_v45 = vadd.f32 %v7667_v49, %v1041_v33  ;;  %v7671_v17 = vld [vmem:[#allocation63_spill] sm:$0xff]  ;;  %v7679_v33 = vld [vmem:[#allocation142_spill] sm:$0xff] }
 0x4e7   :  { %v1696_v34 = vadd.f32 %v7668_v38, %v1376_v37  ;;  %v2161_v32 = vmul.f32 %v7672_v9, %v7671_v17  ;;  %v7677_v37 = vld [vmem:[#allocation114_spill] sm:$0xff]  ;;  %v6681_v49 = vpop.permute.xlu0 %3092 }
 0x4e8   :  { %v2529_v16 = vadd.f32 %v7666_v53, %v2209_v59  ;;  %v1681_v2 = vadd.f32 %v7669_v26, %v1361_v45  ;;  %v7678_v59 = vld [vmem:[#allocation176_spill] sm:$0xff]  ;;  %v7680_v38 = vld [vmem:[#allocation110_spill] sm:$0xff] }
 0x4e9   :  { %v2016_v11 = vadd.f32 %v7675_v21, %v1696_v34  ;;  %v2176_v4 = vmul.f32 %v7678_v59, %v7677_v37  ;;  %v7681_v34 = vld [vmem:[#allocation119_spill] sm:$0xff]  ;;  %v7689_v37 = vld [vmem:[#allocation225_spill] sm:$0xff] }
 0x4ea   :  { %v3071_v41 = vpop.permute.xlu1 %3070  ;;  %v2001_v62 = vadd.f32 %v7676_v60, %v1681_v2  ;;  %v7687_v60 = vld [vmem:[#allocation206_spill] sm:$0xff] }
 0x4eb   :  { %v3155_v24 = vadd.f32 %v3071_v41, %v2835_v6  ;;  %v6650_v6 = vadd.s32 40, %v6553_v35 }
 0x4ec   :  { %v2193_v53 = vadd.f32 %v2161_v32, %v2001_v62 }
 0x4ed   :  { %3888 = vmatpush3.msra.mxu1 %v3155_v24  ;;  %v2834_v24 = vadd.f32 %v7670_v19, %v2514_v39  ;;  %vm3205_vm13 = vcmp.eq.s32.totalorder %v6650_v6, %v6572_v50  ;;  %vm3204_vm14 = vcmp.eq.s32.totalorder %v6650_v6, %v6576_v27  ;;  %v7682_v19 = vld [vmem:[#allocation100_spill] sm:$0xff] }
 0x4ee   :  { %v2779_v57 = vpop.permute.xlu1 %2778  ;;  %3889 = vmatprep.subr.mxu1 %v3170_v44  ;;  %v7674_v44 = vld [vmem:[#allocation75_spill] sm:$0xff]  ;;  %v2513_v45 = vadd.f32 %v6603_v29, %v2193_v53 }
 0x4ef   :  { %v2849_v41 = vadd.f32 %v2779_v57, %v2529_v16  ;;  %v1040_v15 = vmul.f32 %v7674_v44, %v7673_v55  ;;  %v6679_v16 = vadd.s32 56, %v6553_v35  ;;  %v7684_v29 = vld [vmem:[#allocation159_spill] sm:$0xff]  ;;  %v6695_v44 = vpop.permute.xlu0 %2738  ;;  %v3440_v35 = vld [vmem:[%s7048_s1 + $0x8] sm:$0xff] }
 0x4f0   :  { %v2833_v32 = vadd.f32 %v6463_v30, %v2513_v45  ;;  %v7692_v30 = vld [vmem:[#allocation25_spill] sm:$0xff] }
 0x4f1   :  { %v3169_v57 = vadd.f32 %v6494_v12, %v2849_v41  ;;  %v1360_v39 = vadd.f32 %v7679_v33, %v1040_v15  ;;  %v2208_v12 = vadd.f32 %v2176_v4, %v2016_v11  ;;  %vm3209_vm2 = vcmp.eq.s32.totalorder %v6679_v16, %v6572_v50  ;;  %v7690_v33 = vld [vmem:[#allocation59_spill] sm:$0xff]  ;;  %v3441_v50 = vld [vmem:[%s7048_s1 + $0x10] sm:$0xff] }
 0x4f2   :  { %v2425_v20 = vpop.permute.xlu1 %2424  ;;  %vm3208_vm3 = vcmp.eq.s32.totalorder %v6679_v16, %v6576_v27  ;;  %v1055_v41 = vmul.f32 %v7681_v34, %v7680_v38  ;;  %v7693_v38 = vld [vmem:[#allocation161_spill] sm:$0xff]  ;;  %v3443_v27 = vld [vmem:[%s7048_s1 + $0x20] sm:$0xff] }
 0x4f3   :  { %v2528_v26 = vadd.f32 %v6434_v56, %v2208_v12  ;;  %v7688_v56 = vld [vmem:[#allocation108_spill] sm:$0xff] }
 0x4f4   :  { %v1054_v59 = vmul.f32 %v7689_v37, %v7688_v56  ;;  %v7699_v56 = vld [vmem:[#allocation55_spill] sm:$0xff]  ;;  %v7700_v37 = vld [vmem:[#allocation198_spill] sm:$0xff] }
 0x4f6   :  { %v3069_v48 = vpop.permute.xlu1 %3068  ;;  %v1374_v34 = vadd.f32 %v7693_v38, %v1054_v59  ;;  %v2159_v59 = vmul.f32 %v7700_v37, %v7699_v56  ;;  %v7705_v38 = vld [vmem:[#allocation109_spill] sm:$0xff] }
 0x4f7   :  { %v3154_v22 = vadd.f32 %v3069_v48, %v2834_v24  ;;  %v1680_v24 = vadd.f32 %v7682_v19, %v1360_v39  ;;  %v7683_v48 = vld [vmem:[#allocation135_spill] sm:$0xff]  ;;  %v7694_v19 = vld [vmem:[#allocation53_spill] sm:$0xff] }
 0x4f8   :  { %v1375_v17 = vadd.f32 %v7683_v48, %v1055_v41  ;;  %v7711_v56 = vld [vmem:[#allocation133_spill] sm:$0xff] }
 0x4f9   :  { %3890 = vmatpush3.msra.mxu1 %v3154_v22  ;;  %v7685_v22 = vld [vmem:[#allocation143_spill] sm:$0xff] }
 0x4fa   :  { %v2777_v3 = vpop.permute.xlu1 %2776  ;;  %3891 = vmatprep.subr.mxu1 %v3169_v57  ;;  %v1695_v55 = vadd.f32 %v7684_v29, %v1375_v17  ;;  %v2000_v21 = vadd.f32 %v7685_v22, %v1680_v24  ;;  %v7686_v57 = vld [vmem:[#allocation111_spill] sm:$0xff]  ;;  %v7695_v24 = vld [vmem:[#allocation49_spill] sm:$0xff] }
 0x4fb   :  { %v2848_v9 = vadd.f32 %v2777_v3, %v2528_v26  ;;  %v2175_v62 = vmul.f32 %v7687_v60, %v7686_v57  ;;  %v7691_v3 = vld [vmem:[#allocation160_spill] sm:$0xff]  ;;  %v6707_v26 = vpop.permute.xlu0 %2446  ;;  %v1039_v48 = vmul.f32 %v7695_v24, %v7694_v19  ;;  %v7707_v24 = vld [vmem:[#allocation139_spill] sm:$0xff] }
 0x4fc   :  { %v2160_v39 = vmul.f32 %v7691_v3, %v7690_v33  ;;  %v2015_v53 = vadd.f32 %v7692_v30, %v1695_v55  ;;  %v3383_v3 = vld [vmem:[%s7045_s9] sm:$0xff] }
 0x4fd   :  { %v3168_v4 = vadd.f32 %v6542_v43, %v2848_v9  ;;  %3393 = vperm.xlu1 %4162, %v3383_v3  }
 0x4fe   :  { %v2423_v2 = vpop.permute.xlu1 %2422  ;;  %v2192_v45 = vadd.f32 %v2160_v39, %v2000_v21  ;;  %v2207_v41 = vadd.f32 %v2175_v62, %v2015_v53  ;;  %v7703_v39 = vld [vmem:[#allocation188_spill] sm:$0xff] }
 0x4ff   :  { %v6716_v60 = vpop.permute.xlu0 %3090 }
 0x500   :  { %v2512_v17 = vadd.f32 %v2425_v20, %v2192_v45  ;;  %v2527_v43 = vadd.f32 %v6479_v36, %v2207_v41  ;;  %v7702_v20 = vld [vmem:[#allocation223_spill] sm:$0xff]  ;;  %v3385_v45 = vld [vmem:[%s7045_s9 + $0x10] sm:$0xff] }
 0x501   :  { %3403 = vperm.xlu1 %4162, %v3385_v45   ;;  %v7716_v45 = vld [vmem:[#allocation101_spill] sm:$0xff] }
 0x502   :  { %v3067_v15 = vpop.permute.xlu1 %3066  ;;  %v2832_v21 = vadd.f32 %v6510_v7, %v2512_v17  ;;  %v7704_v7 = vld [vmem:[#allocation76_spill] sm:$0xff] }
 0x503   :  { %v3153_v11 = vadd.f32 %v3067_v15, %v2833_v32  ;;  %v7696_v32 = vld [vmem:[#allocation74_spill] sm:$0xff]  ;;  %v7697_v15 = vld [vmem:[#allocation136_spill] sm:$0xff] }
 0x504   :  { %v1359_v29 = vadd.f32 %v7696_v32, %v1039_v48  ;;  %v1694_v22 = vadd.f32 %v7697_v15, %v1374_v34  ;;  %v7706_v34 = vld [vmem:[#allocation174_spill] sm:$0xff]  ;;  %v6734_v32 = vpop.permute.xlu0 %2736  ;;  %v7708_v15 = vld [vmem:[#allocation105_spill] sm:$0xff] }
 0x505   :  { %3892 = vmatpush3.msra.mxu1 %v3153_v11  ;;  %v7698_v11 = vld [vmem:[#allocation104_spill] sm:$0xff]  ;;  %v2174_v41 = vmul.f32 %v7706_v34, %v7705_v38 }
 0x506   :  { %v2775_v12 = vpop.permute.xlu1 %2774  ;;  %3893 = vmatprep.subr.mxu1 %v3168_v4  ;;  %v1679_v57 = vadd.f32 %v7698_v11, %v1359_v29  ;;  %v7701_v4 = vld [vmem:[#allocation50_spill] sm:$0xff]  ;;  %v2014_v30 = vadd.f32 %v7703_v39, %v1694_v22  ;;  %v7709_v22 = vld [vmem:[#allocation113_spill] sm:$0xff]  ;;  %v7713_v39 = vld [vmem:[#allocation140_spill] sm:$0xff] }
 0x507   :  { %v2847_v55 = vadd.f32 %v2775_v12, %v2527_v43  ;;  %v1038_v33 = vmul.f32 %v7702_v20, %v7701_v4  ;;  %v3386_v29 = vld [vmem:[%s7045_s9 + $0x18] sm:$0xff]  ;;  %v7712_v20 = vld [vmem:[#allocation155_spill] sm:$0xff]  ;;  %v7717_v38 = vld [vmem:[#allocation224_spill] sm:$0xff] }
 0x508   :  { %v1999_v12 = vadd.f32 %v7704_v7, %v1679_v57  ;;  %v2206_v43 = vadd.f32 %v2174_v41, %v2014_v30  ;;  %3408 = vperm.xlu1 %4162, %v3386_v29   ;;  %v7715_v7 = vld [vmem:[#allocation205_spill] sm:$0xff]  ;;  %v1052_v34 = vmul.f32 %v7717_v38, %v7716_v45  ;;  %v7718_v41 = vld [vmem:[#allocation51_spill] sm:$0xff] }
 0x509   :  { %v3167_v53 = vadd.f32 %v6616_v47, %v2847_v55  ;;  %v1358_v48 = vadd.f32 %v7707_v24, %v1038_v33  ;;  %v1053_v55 = vmul.f32 %v7709_v22, %v7708_v15  ;;  %v7721_v15 = vld [vmem:[#allocation157_spill] sm:$0xff]  ;;  %v7728_v38 = vld [vmem:[#allocation43_spill] sm:$0xff] }
 0x50a   :  { %v2421_v9 = vpop.permute.xlu1 %2420  ;;  %v2191_v17 = vadd.f32 %v2159_v59, %v1999_v12  ;;  %v2526_v11 = vadd.f32 %v6526_v8, %v2206_v43  ;;  %v1372_v22 = vadd.f32 %v7721_v15, %v1052_v34 }
 0x50b   :  { %v1373_v37 = vadd.f32 %v7711_v56, %v1053_v55 }
 0x50c   :  { %v2511_v47 = vadd.f32 %v2423_v2, %v2191_v17  ;;  %v3388_v2 = vld [vmem:[%s7045_s9 + $0x28] sm:$0xff]  ;;  %v7720_v17 = vld [vmem:[#allocation23_spill] sm:$0xff] }
 0x50d   :  { %v1693_v33 = vadd.f32 %v7712_v20, %v1373_v37  ;;  %3418 = vperm.xlu1 %4162, %v3388_v2   ;;  %v7725_v20 = vld [vmem:[#allocation134_spill] sm:$0xff] }
 0x50e   :  { %v3065_v62 = vpop.permute.xlu1 %3064  ;;  %v2831_v4 = vadd.f32 %v6561_v58, %v2511_v47 }
 0x50f   :  { %v3152_v36 = vadd.f32 %v3065_v62, %v2832_v21  ;;  %v7710_v21 = vld [vmem:[#allocation81_spill] sm:$0xff]  ;;  %v2013_v43 = vadd.f32 %v7720_v17, %v1693_v33  ;;  %v7732_v17 = vld [vmem:[#allocation103_spill] sm:$0xff] }
 0x510   :  { %v1678_v62 = vadd.f32 %v7710_v21, %v1358_v48  ;;  %v3390_v48 = vld [vmem:[%s7045_s9 + $0x38] sm:$0xff]  ;;  %v7723_v21 = vld [vmem:[#allocation39_spill] sm:$0xff] }
 0x511   :  { %3894 = vmatpush3.msra.mxu1 %v3152_v36  ;;  %v6749_v36 = vpop.permute.xlu0 %2444  ;;  %3428 = vperm.xlu1 %4162, %v3390_v48  }
 0x512   :  { %v2773_v19 = vpop.permute.xlu1 %2772  ;;  %3895 = vmatprep.subr.mxu1 %v3167_v53  ;;  %v1998_v8 = vadd.f32 %v7713_v39, %v1678_v62  ;;  %v7714_v53 = vld [vmem:[#allocation106_spill] sm:$0xff]  ;;  %v7726_v39 = vld [vmem:[#allocation45_spill] sm:$0xff] }
 0x513   :  { %v2846_v59 = vadd.f32 %v2773_v19, %v2526_v11  ;;  %v2173_v12 = vmul.f32 %v7715_v7, %v7714_v53  ;;  %v7719_v19 = vld [vmem:[#allocation158_spill] sm:$0xff] }
 0x514   :  { %v2158_v24 = vmul.f32 %v7719_v19, %v7718_v41 }
 0x515   :  { %v3166_v58 = vadd.f32 %v6681_v49, %v2846_v59  ;;  %v2205_v55 = vadd.f32 %v2173_v12, %v2013_v43  ;;  %v3089_v11 = vpop.permute.xlu0 %3088  ;;  %v7722_v49 = vld [vmem:[#allocation46_spill] sm:$0xff]  ;;  %v7727_v12 = vld [vmem:[#allocation197_spill] sm:$0xff]  ;;  %v7733_v43 = vld [vmem:[#allocation172_spill] sm:$0xff] }
 0x516   :  { %v2419_v57 = vpop.permute.xlu1 %2418  ;;  %v2190_v29 = vadd.f32 %v2158_v24, %v1998_v8  ;;  %v1037_v62 = vmul.f32 %v7723_v21, %v7722_v49  ;;  %v2157_v45 = vmul.f32 %v7727_v12, %v7551_v1  ;;  %v7731_v24 = vld [vmem:[#allocation61_spill] sm:$0xff]  ;;  %v7735_v21 = vld [vmem:[#allocation98_spill] sm:$0xff] }
 0x517   :  { %v2525_v37 = vadd.f32 %v6593_v5, %v2205_v55 }
 0x518   :  { %v2510_v56 = vadd.f32 %v2421_v9, %v2190_v29  ;;  %v7729_v9 = vld [vmem:[#allocation78_spill] sm:$0xff] }
 0x519   :  { %v6771_v53 = vpop.permute.xlu0 %2734  ;;  %v1036_v34 = vmul.f32 %v7729_v9, %v7728_v38  ;;  %v7734_v29 = vld [vmem:[#allocation86_spill] sm:$0xff]  ;;  %v7741_v9 = vld [vmem:[#allocation204_spill] sm:$0xff] }
 0x51a   :  { %v3063_v3 = vpop.permute.xlu1 %3062  ;;  %v2830_v8 = vadd.f32 %v6638_v40, %v2510_v56  ;;  %v2172_v40 = vmul.f32 %v7733_v43, %v7732_v17  ;;  %v7746_v43 = vld [vmem:[#allocation36_spill] sm:$0xff] }
 0x51b   :  { %v3151_v30 = vadd.f32 %v3063_v3, %v2831_v4  ;;  %v7724_v4 = vld [vmem:[#allocation66_spill] sm:$0xff]  ;;  %v1692_v3 = vadd.f32 %v7725_v20, %v1372_v22  ;;  %v1356_v15 = vadd.f32 %v7734_v29, %v1036_v34  ;;  %v7738_v20 = vld [vmem:[#allocation131_spill] sm:$0xff]  ;;  %v2171_v34 = vmul.f32 %v7741_v9, %v7552_v28 }
 0x51c   :  { %v1357_v2 = vadd.f32 %v7724_v4, %v1037_v62  ;;  %v7736_v62 = vld [vmem:[#allocation107_spill] sm:$0xff]  ;;  %v7737_v4 = vld [vmem:[#allocation69_spill] sm:$0xff] }
 0x51d   :  { %3896 = vmatpush3.msra.mxu1 %v3151_v30  ;;  %v6783_v55 = vpop.permute.xlu0 %2442  ;;  %v1051_v56 = vmul.f32 %v7736_v62, %v7735_v21  ;;  %v7750_v21 = vld [vmem:[#allocation27_spill] sm:$0xff] }
 0x51e   :  { %v2771_v47 = vpop.permute.xlu1 %2770  ;;  %3897 = vmatprep.subr.mxu1 %v3166_v58  ;;  %v1677_v30 = vadd.f32 %v7726_v39, %v1357_v2  ;;  %v7730_v58 = vld [vmem:[#allocation186_spill] sm:$0xff]  ;;  %v1676_v2 = vadd.f32 %v7737_v4, %v1356_v15  ;;  %v7748_v15 = vld [vmem:[#allocation153_spill] sm:$0xff] }
 0x51f   :  { %v2845_v33 = vadd.f32 %v2771_v47, %v2525_v37  ;;  %v2012_v41 = vadd.f32 %v7730_v58, %v1692_v3  ;;  %v1371_v3 = vadd.f32 %v7738_v20, %v1051_v56 }
 0x520   :  { %v1997_v48 = vadd.f32 %v7731_v24, %v1677_v30  ;;  %v7739_v30 = vld [vmem:[#allocation152_spill] sm:$0xff] }
 0x521   :  { %v3165_v19 = vadd.f32 %v6716_v60, %v2845_v33  ;;  %v2204_v1 = vadd.f32 %v2172_v40, %v2012_v41  ;;  %v7747_v40 = vld [vmem:[#allocation30_spill] sm:$0xff] }
 0x522   :  { %v2417_v59 = vpop.permute.xlu1 %2416  ;;  %v2189_v22 = vadd.f32 %v2157_v45, %v1997_v48  ;;  %v7740_v45 = vld [vmem:[#allocation95_spill] sm:$0xff]  ;;  %v7745_v48 = vld [vmem:[#allocation21_spill] sm:$0xff] }
 0x523   :  { %v2524_v60 = vadd.f32 %v6659_v42, %v2204_v1  ;;  %v1996_v38 = vadd.f32 %v7740_v45, %v1676_v2  ;;  %v7743_v42 = vld [vmem:[#allocation85_spill] sm:$0xff]  ;;  %v7752_v2 = vld [vmem:[#allocation126_spill] sm:$0xff] }
 0x524   :  { %v2509_v49 = vadd.f32 %v2419_v57, %v2189_v22 }
 0x526   :  { %v3061_v7 = vpop.permute.xlu1 %3060  ;;  %v2829_v39 = vadd.f32 %v6695_v44, %v2509_v49  ;;  %v7749_v49 = vld [vmem:[#allocation40_spill] sm:$0xff] }
 0x527   :  { %v3150_v5 = vadd.f32 %v3061_v7, %v2830_v8  ;;  %v1691_v8 = vadd.f32 %v7739_v30, %v1371_v3  ;;  %v3087_v7 = vpop.permute.xlu0 %3086  ;;  %v1035_v62 = vmul.f32 %v7750_v21, %v7749_v49  ;;  %v7753_v3 = vld [vmem:[#allocation132_spill] sm:$0xff]  ;;  %v7754_v30 = vld [vmem:[#allocation26_spill] sm:$0xff]  ;;  %v7767_v21 = vld [vmem:[#allocation121_spill] sm:$0xff] }
 0x529   :  { %3898 = vmatpush3.msra.mxu1 %v3150_v5  ;;  %v7742_v5 = vld [vmem:[#allocation94_spill] sm:$0xff]  ;;  %v2011_v44 = vadd.f32 %v7745_v48, %v1691_v8  ;;  %v1355_v20 = vadd.f32 %v7752_v2, %v1035_v62 }
 0x52a   :  { %v2769_v47 = vpop.permute.xlu1 %2768  ;;  %3899 = vmatprep.subr.mxu1 %v3165_v19  ;;  %v1050_v58 = vmul.f32 %v7743_v42, %v7742_v5  ;;  %v7744_v19 = vld [vmem:[#allocation156_spill] sm:$0xff]  ;;  %v7758_v42 = vld [vmem:[#allocation33_spill] sm:$0xff] }
 0x52b   :  { %v2844_v33 = vadd.f32 %v2769_v47, %v2524_v60  ;;  %v2156_v24 = vmul.f32 %v7744_v19, %v7553_v14  ;;  %v1034_v47 = vmul.f32 %v7747_v40, %v7746_v43  ;;  %v2203_v1 = vadd.f32 %v2171_v34, %v2011_v44  ;;  %v2733_v28 = vpop.permute.xlu0 %2732  ;;  %v7756_v34 = vld [vmem:[#allocation195_spill] sm:$0xff]  ;;  %v7762_v43 = vld [vmem:[#allocation97_spill] sm:$0xff] }
 0x52c   :  { %v1370_v22 = vadd.f32 %v7748_v15, %v1050_v58  ;;  %v1675_v8 = vadd.f32 %v7754_v30, %v1355_v20  ;;  %v7759_v58 = vld [vmem:[#allocation222_spill] sm:$0xff] }
 0x52d   :  { %v3164_v41 = vadd.f32 %v3089_v11, %v2844_v33  ;;  %v2188_v29 = vadd.f32 %v2156_v24, %v1996_v38  ;;  %v7751_v11 = vld [vmem:[#allocation32_spill] sm:$0xff]  ;;  %v2523_v14 = vadd.f32 %v6707_v26, %v2203_v1 }
 0x52e   :  { %v2415_v37 = vpop.permute.xlu1 %2414  ;;  %v1354_v56 = vadd.f32 %v7751_v11, %v1034_v47  ;;  %v1690_v33 = vadd.f32 %v7753_v3, %v1370_v22  ;;  %v7757_v26 = vld [vmem:[#allocation196_spill] sm:$0xff] }
 0x52f   :  { %v2508_v60 = vadd.f32 %v2417_v59, %v2188_v29  ;;  %v2154_v59 = vmul.f32 %v7756_v34, %v7558_v46  ;;  %v2155_v5 = vmul.f32 %v7757_v26, %v7555_v10  ;;  %v7760_v24 = vld [vmem:[#allocation184_spill] sm:$0xff]  ;;  %v7764_v29 = vld [vmem:[#allocation38_spill] sm:$0xff]  ;;  %v7773_v26 = vld [vmem:[#allocation19_spill] sm:$0xff] }
 0x530   :  { %v2010_v48 = vadd.f32 %v7760_v24, %v1690_v33  ;;  %v7765_v46 = vld [vmem:[#allocation170_spill] sm:$0xff]  ;;  %v7769_v33 = vld [vmem:[#allocation29_spill] sm:$0xff] }
 0x531   :  { %v2828_v38 = vadd.f32 %v6734_v32, %v2508_v60  ;;  %v7763_v32 = vld [vmem:[#allocation60_spill] sm:$0xff]  ;;  %v2170_v22 = vmul.f32 %v7765_v46, %v7554_v31  ;;  %v7766_v10 = vld [vmem:[#allocation18_spill] sm:$0xff] }
 0x532   :  { %v3059_v12 = vpop.permute.xlu1 %3058  ;;  %v1995_v47 = vadd.f32 %v7763_v32, %v1675_v8 }
 0x533   :  { %v3149_v57 = vadd.f32 %v3059_v12, %v2829_v39  ;;  %v7755_v12 = vld [vmem:[#allocation64_spill] sm:$0xff] }
 0x534   :  { %v1674_v45 = vadd.f32 %v7755_v12, %v1354_v56  ;;  %v2187_v11 = vadd.f32 %v2155_v5, %v1995_v47  ;;  %v7771_v12 = vld [vmem:[#allocation203_spill] sm:$0xff] }
 0x535   :  { %3900 = vmatpush3.msra.mxu1 %v3149_v57  ;;  %v6812_v57 = vpop.permute.xlu0 %2440  ;;  %v7774_v5 = vld [vmem:[#allocation87_spill] sm:$0xff] }
 0x536   :  { %v2767_v17 = vpop.permute.xlu1 %2766  ;;  %3901 = vmatprep.subr.mxu1 %v3164_v41  ;;  %v1033_v41 = vmul.f32 %v7759_v58, %v7758_v42  ;;  %v1994_v15 = vadd.f32 %v7764_v29, %v1674_v45  ;;  %v2507_v20 = vadd.f32 %v2415_v37, %v2187_v11  ;;  %v2169_v45 = vmul.f32 %v7771_v12, %v7556_v63  ;;  %v7775_v42 = vld [vmem:[#allocation71_spill] sm:$0xff]  ;;  %v7785_v12 = vld [vmem:[#allocation168_spill] sm:$0xff] }
 0x537   :  { %v2843_v39 = vadd.f32 %v2767_v17, %v2523_v14  ;;  %v7761_v17 = vld [vmem:[#allocation91_spill] sm:$0xff]  ;;  %v7768_v14 = vld [vmem:[#allocation150_spill] sm:$0xff]  ;;  %v1048_v58 = vmul.f32 %v7775_v42, %v7774_v5 }
 0x538   :  { %v1049_v40 = vmul.f32 %v7762_v43, %v7761_v17  ;;  %v1353_v62 = vadd.f32 %v7767_v21, %v1033_v41  ;;  %v2186_v56 = vadd.f32 %v2154_v59, %v1994_v15  ;;  %v2827_v37 = vadd.f32 %v6771_v53, %v2507_v20  ;;  %v7779_v47 = vld [vmem:[#allocation151_spill] sm:$0xff]  ;;  %v7781_v21 = vld [vmem:[#allocation130_spill] sm:$0xff] }
 0x539   :  { %v3163_v44 = vadd.f32 %v3087_v7, %v2843_v39  ;;  %v2202_v7 = vadd.f32 %v2170_v22, %v2010_v48  ;;  %v3085_v60 = vpop.permute.xlu0 %3084  ;;  %v7770_v39 = vld [vmem:[#allocation6_spill] sm:$0xff]  ;;  %v1368_v29 = vadd.f32 %v7779_v47, %v1048_v58 }
 0x53a   :  { %v2413_v4 = vpop.permute.xlu1 %2412  ;;  %v1369_v49 = vadd.f32 %v7766_v10, %v1049_v40  ;;  %v1032_v30 = vmul.f32 %v7770_v39, %v7769_v33  ;;  %v7778_v40 = vld [vmem:[#allocation154_spill] sm:$0xff] }
 0x53b   :  { %v2506_v3 = vadd.f32 %v2413_v4, %v2186_v56  ;;  %v2522_v8 = vadd.f32 %v6749_v36, %v2202_v7  ;;  %v7776_v4 = vld [vmem:[#allocation22_spill] sm:$0xff]  ;;  %v2153_v32 = vmul.f32 %v7778_v40, %v7567_v25  ;;  %v7782_v7 = vld [vmem:[#allocation24_spill] sm:$0xff] }
 0x53c   :  { %v1689_v2 = vadd.f32 %v7768_v14, %v1369_v49 }
 0x53d   :  { %v2826_v41 = vadd.f32 %v2733_v28, %v2506_v3  ;;  %v3053_v24 = vpop.permute.xlu0 %3052  ;;  %v7780_v28 = vld [vmem:[#allocation125_spill] sm:$0xff]  ;;  %v7784_v3 = vld [vmem:[#allocation183_spill] sm:$0xff] }
 0x53e   :  { %v3057_v9 = vpop.permute.xlu1 %3056  ;;  %v2009_v59 = vadd.f32 %v7773_v26, %v1689_v2 }
 0x53f   :  { %v3148_v19 = vadd.f32 %v3057_v9, %v2828_v38  ;;  %v7772_v38 = vld [vmem:[#allocation20_spill] sm:$0xff]  ;;  %v3146_v46 = vadd.f32 %v3053_v24, %v2826_v41 }
 0x540   :  { %v1673_v9 = vadd.f32 %v7772_v38, %v1353_v62  ;;  %v2201_v36 = vadd.f32 %v2169_v45, %v2009_v59  ;;  %v1688_v62 = vadd.f32 %v7781_v21, %v1368_v29  ;;  %v2168_v45 = vmul.f32 %v7785_v12, %v7559_v23  ;;  %v7786_v38 = vld [vmem:[#allocation4_spill] sm:$0xff]  ;;  %v3439_v23 = vld [vmem:[%s7048_s1] sm:$0xff] }
 0x541   :  { %3902 = vmatpush3.msra.mxu1 %v3148_v19  ;;  %v1352_v19 = vadd.f32 %v7776_v4, %v1032_v30  ;;  %v3083_v22 = vpop.permute.xlu0 %3082 }
 0x542   :  { %v2765_v1 = vpop.permute.xlu1 %2764  ;;  %3903 = vmatprep.subr.mxu1 %v3163_v44  ;;  %v7777_v44 = vld [vmem:[#allocation123_spill] sm:$0xff]  ;;  %v2521_v15 = vadd.f32 %v6783_v55, %v2201_v36  ;;  %v7783_v55 = vld [vmem:[#allocation194_spill] sm:$0xff]  ;;  %v2008_v33 = vadd.f32 %v7784_v3, %v1688_v62 }
 0x543   :  { %v2842_v34 = vadd.f32 %v2765_v1, %v2522_v8  ;;  %v1993_v17 = vadd.f32 %v7777_v44, %v1673_v9  ;;  %v1672_v53 = vadd.f32 %v7780_v28, %v1352_v19  ;;  %v2152_v2 = vmul.f32 %v7783_v55, %v7573_v51 }
 0x545   :  { %v3162_v63 = vadd.f32 %v3085_v60, %v2842_v34  ;;  %v2185_v10 = vadd.f32 %v2153_v32, %v1993_v17  ;;  %v1992_v25 = vadd.f32 %v7782_v7, %v1672_v53  ;;  %v3051_v20 = vpop.permute.xlu0 %3050 }
 0x546   :  { %v2411_v31 = vpop.permute.xlu1 %2410 }
 0x547   :  { %v2505_v11 = vadd.f32 %v2411_v31, %v2185_v10  ;;  %v2184_v30 = vadd.f32 %v2152_v2, %v1992_v25  ;;  %v2200_v31 = vadd.f32 %v2168_v45, %v2008_v33 }
 0x549   :  { %v2504_v9 = vadd.f32 %v7786_v38, %v2184_v30  ;;  %v2520_v26 = vadd.f32 %v6812_v57, %v2200_v31  ;;  %v3049_v51 = vpop.permute.xlu0 %3048 }
 0x54a   :  { %v3055_v48 = vpop.permute.xlu1 %3054 }
 0x54b   :  { %v3147_v43 = vadd.f32 %v3055_v48, %v2827_v37  ;;  %v3447_v37 = vld [vmem:[%s7047_s7] sm:$0xff] }
 0x54d   :  { %3904 = vmatpush3.msra.mxu1 %v3147_v43 }
 0x54e   :  { %v2763_v1 = vpop.permute.xlu1 %2762  ;;  %3905 = vmatprep.subr.mxu1 %v3162_v63 }
 0x54f   :  { %v2841_v49 = vadd.f32 %v2763_v1, %v2521_v15  ;;  %3906 = vmatpush3.msra.mxu1 %v3146_v46 }
 0x551   :  { %v3161_v56 = vadd.f32 %v3083_v22, %v2841_v49 }
 0x552   :  { %v2731_v60 = vpop.permute.xlu1 %2730 }
 0x553   :  { %v2825_v14 = vadd.f32 %v2731_v60, %v2505_v11  ;;  %3907 = vmatprep.subr.mxu1 %v3161_v56 }
 0x555   :  { %v3145_v39 = vadd.f32 %v3051_v20, %v2825_v14 }
 0x556   :  { %v2761_v8 = vpop.permute.xlu1 %2760 }
 0x557   :  { %3908 = vmatpush3.msra.mxu1 %v3145_v39  ;;  %v2840_v5 = vadd.f32 %v2761_v8, %v2520_v26  ;;  %v3399_v39 = vpop.permute.xlu0 %3398 }
 0x55a   :  { %v2729_v34 = vpop.permute.xlu1 %2728 }
 0x55b   :  { %v2824_v59 = vadd.f32 %v2729_v34, %v2504_v9 }
 0x55d   :  { %v3144_v41 = vadd.f32 %v3049_v51, %v2824_v59 }
 0x55e   :  { %v3081_v42 = vpop.permute.xlu1 %3080 }
 0x55f   :  { %v3160_v58 = vadd.f32 %v3081_v42, %v2840_v5 }
 0x561   :  { %3909 = vmatprep.subr.mxu1 %v3160_v58  ;;  %v3843_v58 = vld [vmem:[%s7049_s8] ss:$0 sm:$0xff] }
 0x562   :  { %3910 = vmatpush3.msra.mxu1 %v3144_v41 }
 0x563   :  { %3820 = vmatmul.mubr.msk.f32.vlgmr.msra.gmra.mxu1 %vm3194_vm4, %v4241_v0  ;;  %3994 = vmatprep.subr.mxu1 %v3447_v37  ;;  %vm45_vm4 = vcmask 261120  }
 0x564   :  { %3821 = vmatprep.mubr.msk.f32.mxu1 %vm3197_vm5, %v4241_v0  ;;  %3995 = vmatpush3.msra.mxu1 %v3447_v37  ;;  %46 = vst.msk [vmem:[#allocation2] sm:$0xff] %vm45_vm4, %v7787_v54  ;;  %47 = vst.msk [vmem:[#allocation2 + $0x8] sm:$0xff] %vm45_vm4, %v7787_v54 }
 0x565   :  { %48 = vst.msk [vmem:[#allocation2 + $0x10] sm:$0xff] %vm45_vm4, %v7787_v54  ;;  %49 = vst.msk [vmem:[#allocation2 + $0x18] sm:$0xff] %vm45_vm4, %v7787_v54 }
 0x566   :  { %50 = vst.msk [vmem:[#allocation2 + $0x20] sm:$0xff] %vm45_vm4, %v7787_v54  ;;  %51 = vst.msk [vmem:[#allocation2 + $0x28] sm:$0xff] %vm45_vm4, %v7787_v54 }
 0x567   :  { %3822 = vmatmul.mubr.msk.f32.gmra.mxu1 %vm3196_vm6, %v4241_v0  ;;  %52 = vst.msk [vmem:[#allocation2 + $0x30] sm:$0xff] %vm45_vm4, %v7787_v54  ;;  %53 = vst.msk [vmem:[#allocation2 + $0x38] sm:$0xff] %vm45_vm4, %v7787_v54 }
 0x568   :  { %3823 = vmatprep.mubr.msk.f32.mxu1 %vm3199_vm7, %v4241_v0 }
 0x56b   :  { %3824 = vmatmul.mubr.msk.f32.gmra.mxu1 %vm3198_vm8, %v4241_v0  ;;  %v3242_v61 = vld [vmem:[#allocation2] sm:$0xff]  ;;  %v3243_v24 = vld [vmem:[#allocation2 + $0x8] sm:$0xff] }
 0x56c   :  { %3825 = vmatprep.mubr.msk.f32.mxu1 %vm3201_vm9, %v4241_v0  ;;  %v3244_v43 = vld [vmem:[#allocation2 + $0x10] sm:$0xff]  ;;  %v3245_v29 = vld [vmem:[#allocation2 + $0x18] sm:$0xff] }
 0x56d   :  { %v3246_v1 = vld [vmem:[#allocation2 + $0x20] sm:$0xff]  ;;  %v3247_v11 = vld [vmem:[#allocation2 + $0x28] sm:$0xff] }
 0x56e   :  { %v3248_v55 = vld [vmem:[#allocation2 + $0x30] sm:$0xff]  ;;  %v3249_v45 = vld [vmem:[#allocation2 + $0x38] sm:$0xff] }
 0x56f   :  { %3826 = vmatmul.mubr.msk.f32.gmra.mxu1 %vm3200_vm10, %v4241_v0 }
 0x570   :  { %3827 = vmatprep.mubr.msk.f32.mxu1 %vm3203_vm11, %v4241_v0 }
 0x573   :  { %3828 = vmatmul.mubr.msk.f32.gmra.mxu1 %vm3202_vm12, %v4241_v0 }
 0x574   :  { %3829 = vmatprep.mubr.msk.f32.mxu1 %vm3205_vm13, %v4241_v0 }
 0x577   :  { %3830 = vmatmul.mubr.msk.f32.gmra.mxu1 %vm3204_vm14, %v4241_v0 }
 0x578   :  { %3831 = vmatprep.mubr.msk.f32.mxu1 %vm3207_vm15, %v4241_v0  ;;  %v3394_v22 = vpop.permute.xlu1 %3393 }
 0x57b   :  { %3832 = vmatmul.mubr.msk.f32.gmra.mxu1 %vm3206_vm1, %v4241_v0 }
 0x57c   :  { %3833 = vmatprep.mubr.msk.f32.mxu1 %vm3209_vm2, %v4241_v0  ;;  %v3404_v25 = vpop.permute.xlu1 %3403 }
 0x57f   :  { %3834 = vmatmul.mubr.msk.f32.gmra.mxu1 %vm3208_vm3, %v4241_v0  ;;  %v3444_v0 = vld [vmem:[%s7048_s1 + $0x28] sm:$0xff] }
 0x580   :  { %3996 = vmatprep.mubr.msk.f32.mxu1 %vm88_vm0, %v3439_v23 }
 0x583   :  { %3997 = vmatmul.mubr.msk.f32.vlgmr.msra.gmra.mxu1 %vm88_vm0, %v3440_v35  ;;  %v3409_v12 = vpop.permute.xlu1 %3408 }
 0x584   :  { %3999 = vmatprep.mubr.msk.f32.mxu1 %vm88_vm0, %v3441_v50 }
 0x587   :  { %4000 = vmatmul.mubr.msk.f32.gmra.mxu1 %vm88_vm0, %v3442_v52 }
 0x588   :  { %4002 = vmatprep.mubr.msk.f32.mxu1 %vm88_vm0, %v3443_v27  ;;  %v3419_v35 = vpop.permute.xlu1 %3418  ;;  %v3414_v27 = vpop.permute.xlu0 %3413 }
 0x58b   :  { %4003 = vmatmul.mubr.msk.f32.gmra.mxu1 %vm88_vm0, %v3444_v0 }
 0x58c   :  { %4005 = vmatprep.mubr.msk.f32.mxu1 %vm88_vm0, %v3445_v13 }
 0x58f   :  { %4006 = vmatmul.mubr.msk.f32.gmra.mxu1 %vm88_vm0, %v3446_v18 }
 0x623   :  { %v3911_v6 = vpop.f32.mrf.mxu1 }
 0x625   :  { %v3912_v16 = vpop.f32.mrf.mxu1 }
 0x626   :  { %v3913_v57 = vadd.f32 %v3912_v16, %v3911_v6 }
 0x627   :  { %v3914_v4 = vpop.f32.mrf.mxu1 }
 0x628   :  { %v3355_v19 = vadd.f32 %v3913_v57, %v3242_v61 }
 0x629   :  { %v3915_v48 = vpop.f32.mrf.mxu1 }
 0x62a   :  { %3364 = vst.msk [vmem:[#allocation2] sm:$0xff] %vm45_vm4, %v3355_v19  ;;  %v3916_v36 = vadd.f32 %v3915_v48, %v3914_v4 }
 0x62b   :  { %v3917_v44 = vpop.f32.mrf.mxu1 }
 0x62c   :  { %v3356_v17 = vadd.f32 %v3916_v36, %v3243_v24 }
 0x62d   :  { %v3918_v63 = vpop.f32.mrf.mxu1 }
 0x62e   :  { %3365 = vst.msk [vmem:[#allocation2 + $0x8] sm:$0xff] %vm45_vm4, %v3356_v17  ;;  %v3919_v40 = vadd.f32 %v3918_v63, %v3917_v44  ;;  %v3429_v63 = vpop.permute.xlu1 %3428 }
 0x62f   :  { %v3920_v32 = vpop.f32.mrf.mxu1 }
 0x630   :  { %v3357_v47 = vadd.f32 %v3919_v40, %v3244_v43 }
 0x631   :  { %v3921_v15 = vpop.f32.mrf.mxu1  ;;  %v3375_v8 = vld [vmem:[#allocation2] sm:$0xff] }
 0x632   :  { %3366 = vst.msk [vmem:[#allocation2 + $0x10] sm:$0xff] %vm45_vm4, %v3357_v47  ;;  %v3922_v46 = vadd.f32 %v3921_v15, %v3920_v32  ;;  %v3431_v59 = vmul.f32 %v3394_v22, %v3375_v8 }
 0x633   :  { %v3923_v28 = vpop.f32.mrf.mxu1 }
 0x634   :  { %v3358_v53 = vadd.f32 %v3922_v46, %v3245_v29  ;;  %v3424_v29 = vpop.permute.xlu0 %3423 }
 0x635   :  { %v3924_v10 = vpop.f32.mrf.mxu1  ;;  %v3376_v33 = vld [vmem:[#allocation2 + $0x8] sm:$0xff] }
 0x636   :  { %3367 = vst.msk [vmem:[#allocation2 + $0x18] sm:$0xff] %vm45_vm4, %v3358_v53  ;;  %v3925_v49 = vadd.f32 %v3924_v10, %v3923_v28  ;;  %v3432_v9 = vmul.f32 %v3399_v39, %v3376_v33 }
 0x637   :  { %v3926_v21 = vpop.f32.mrf.mxu1 }
 0x638   :  { %v3359_v62 = vadd.f32 %v3925_v49, %v3246_v1 }
 0x639   :  { %v3927_v56 = vpop.f32.mrf.mxu1  ;;  %v3377_v51 = vld [vmem:[#allocation2 + $0x10] sm:$0xff] }
 0x63a   :  { %3368 = vst.msk [vmem:[#allocation2 + $0x20] sm:$0xff] %vm45_vm4, %v3359_v62  ;;  %v3928_v7 = vadd.f32 %v3927_v56, %v3926_v21  ;;  %v3433_v0 = vmul.f32 %v3404_v25, %v3377_v51 }
 0x63b   :  { %v3929_v60 = vpop.f32.mrf.mxu1 }
 0x63c   :  { %v3360_v14 = vadd.f32 %v3928_v7, %v3247_v11 }
 0x63d   :  { %v3930_v2 = vpop.f32.mrf.mxu1  ;;  %v3378_v34 = vld [vmem:[#allocation2 + $0x18] sm:$0xff] }
 0x63e   :  { %3369 = vst.msk [vmem:[#allocation2 + $0x28] sm:$0xff] %vm45_vm4, %v3360_v14  ;;  %v3931_v20 = vadd.f32 %v3930_v2, %v3929_v60  ;;  %v3434_v37 = vmul.f32 %v3409_v12, %v3378_v34 }
 0x63f   :  { %v3932_v3 = vpop.f32.mrf.mxu1 }
 0x640   :  { %v3361_v30 = vadd.f32 %v3931_v20, %v3248_v55 }
 0x641   :  { %v3933_v31 = vpop.f32.mrf.mxu1  ;;  %v3379_v6 = vld [vmem:[#allocation2 + $0x20] sm:$0xff] }
 0x642   :  { %3370 = vst.msk [vmem:[#allocation2 + $0x30] sm:$0xff] %vm45_vm4, %v3361_v30  ;;  %v3934_v38 = vadd.f32 %v3933_v31, %v3932_v3  ;;  %v3435_v24 = vmul.f32 %v3414_v27, %v3379_v6 }
 0x643   :  { %v3998_v26 = vpop.f32.mrf.mxu1 }
 0x644   :  { %v3362_v5 = vadd.f32 %v3934_v38, %v3249_v45  ;;  %v3578_v42 = vadd.f32 %v3998_v26, %v3432_v9 }
 0x645   :  { %v3538_v41 = vpop.f32.mrf.mxu1  ;;  %v3380_v50 = vld [vmem:[#allocation2 + $0x28] sm:$0xff] }
 0x646   :  { %3371 = vst.msk [vmem:[#allocation2 + $0x38] sm:$0xff] %vm45_vm4, %v3362_v5  ;;  %v3577_v23 = vadd.f32 %v3538_v41, %v3431_v59  ;;  %v3593_v13 = vadd.f32 %v3843_v58, %v3578_v42  ;;  %v3436_v16 = vmul.f32 %v3419_v35, %v3380_v50 }
 0x647   :  { %v4001_v52 = vpop.f32.mrf.mxu1 }
 0x648   :  { %v3592_v18 = vadd.f32 %v3843_v58, %v3577_v23  ;;  %v3580_v54 = vadd.f32 %v4001_v52, %v3434_v37  ;;  %v3601_v48 = vsel %vm45_vm4, %v3593_v13, 0.0 }
 0x649   :  { %v3548_v61 = vpop.f32.mrf.mxu1  ;;  %v3381_v43 = vld [vmem:[#allocation2 + $0x30] sm:$0xff] }
 0x64a   :  { %v3600_v57 = vsel %vm45_vm4, %v3592_v18, 0.0  ;;  %v3579_v4 = vadd.f32 %v3548_v61, %v3433_v0  ;;  %v3595_v36 = vadd.f32 %v3843_v58, %v3580_v54  ;;  %v3437_v1 = vmul.f32 %v3424_v29, %v3381_v43 }
 0x64b   :  { %v4004_v19 = vpop.f32.mrf.mxu1  ;;  %v3602_v32 = vadd.f32 %v3601_v48, %v3600_v57 }
 0x64c   :  { %v3594_v44 = vadd.f32 %v3843_v58, %v3579_v4  ;;  %v3582_v17 = vadd.f32 %v4004_v19, %v3436_v16  ;;  %v3605_v10 = vsel %vm45_vm4, %v3595_v36, 0.0 }
 0x64d   :  { %v3382_v40 = vld [vmem:[#allocation2 + $0x38] sm:$0xff]  ;;  %v3558_v47 = vpop.f32.mrf.mxu1 }
 0x64e   :  { %v3438_v15 = vmul.f32 %v3429_v63, %v3382_v40  ;;  %v3603_v46 = vsel %vm45_vm4, %v3594_v44, 0.0  ;;  %v3581_v28 = vadd.f32 %v3558_v47, %v3435_v24  ;;  %v3597_v49 = vadd.f32 %v3843_v58, %v3582_v17 }
 0x64f   :  { %v3604_v53 = vadd.f32 %v3603_v46, %v3602_v32  ;;  %v4007_v22 = vpop.f32.mrf.mxu1 }
 0x650   :  { %v3596_v21 = vadd.f32 %v3843_v58, %v3581_v28  ;;  %v3584_v62 = vadd.f32 %v4007_v22, %v3438_v15  ;;  %v3609_v14 = vsel %vm45_vm4, %v3597_v49, 0.0 }
 0x651   :  { %v3606_v11 = vadd.f32 %v3605_v10, %v3604_v53  ;;  %v3568_v56 = vpop.f32.mrf.mxu1  ;;  %v3844_v10 = vld [vmem:[%s7050_s10] ss:$0 sm:$0xff] }
 0x652   :  { %v3607_v7 = vsel %vm45_vm4, %v3596_v21, 0.0  ;;  %v3583_v25 = vadd.f32 %v3568_v56, %v3437_v1  ;;  %v3599_v55 = vadd.f32 %v3843_v58, %v3584_v62 }
 0x653   :  { %v3608_v60 = vadd.f32 %v3607_v7, %v3606_v11 }
 0x654   :  { %v3598_v2 = vadd.f32 %v3843_v58, %v3583_v25  ;;  %v3613_v39 = vsel %vm45_vm4, %v3599_v55, 0.0 }
 0x655   :  { %v3610_v20 = vadd.f32 %v3609_v14, %v3608_v60  ;;  %v3845_v14 = vld [vmem:[%s7051_s11] ss:$0 sm:$0xff] }
 0x656   :  { %v3611_v3 = vsel %vm45_vm4, %v3598_v2, 0.0 }
 0x657   :  { %v3612_v33 = vadd.f32 %v3611_v3, %v3610_v20 }
 0x659   :  { %v3614_v30 = vadd.f32 %v3613_v39, %v3612_v33 }
 0x65b   :  { %v3615_v8 = vrot.slane %v3614_v30, 4 }
 0x65d   :  { %v3616_v12 = vadd.f32 %v3615_v8, %v3614_v30 }
 0x65f   :  { %v3617_v45 = vrot.slane %v3616_v12, 2 }
 0x661   :  { %v3618_v31 = vadd.f32 %v3617_v45, %v3616_v12 }
 0x663   :  { %v3619_v38 = vrot.slane %v3618_v31, 1 }
 0x665   :  { %v3620_v9 = vadd.f32 %v3619_v38, %v3618_v31 }
 0x667   :  { %v3622_v34 = vmul.f32 0.015625, %v3620_v9 }
 0x669   :  { %v3623_v26 = vsub.f32 %v3592_v18, %v3622_v34  ;;  %v3624_v59 = vsub.f32 %v3593_v13, %v3622_v34  ;;  %v3625_v5 = vsub.f32 %v3594_v44, %v3622_v34  ;;  %v3626_v42 = vsub.f32 %v3595_v36, %v3622_v34 }
 0x66a   :  { %v3627_v51 = vsub.f32 %v3596_v21, %v3622_v34  ;;  %v3628_v23 = vsub.f32 %v3597_v49, %v3622_v34  ;;  %v3629_v0 = vsub.f32 %v3598_v2, %v3622_v34  ;;  %v3630_v18 = vsub.f32 %v3599_v55, %v3622_v34 }
 0x66b   :  { %v3631_v58 = vmul.f32 %v3623_v26, %v3623_v26  ;;  %v3632_v41 = vmul.f32 %v3624_v59, %v3624_v59  ;;  %v3633_v37 = vmul.f32 %v3625_v5, %v3625_v5  ;;  %v3634_v35 = vmul.f32 %v3626_v42, %v3626_v42 }
 0x66c   :  { %v3635_v54 = vmul.f32 %v3627_v51, %v3627_v51  ;;  %v3636_v13 = vmul.f32 %v3628_v23, %v3628_v23  ;;  %v3637_v4 = vmul.f32 %v3629_v0, %v3629_v0  ;;  %v3638_v48 = vmul.f32 %v3630_v18, %v3630_v18 }
 0x66d   :  { %v3639_v50 = vsel %vm45_vm4, %v3631_v58, 0.0  ;;  %v3640_v52 = vsel %vm45_vm4, %v3632_v41, 0.0  ;;  %v3642_v6 = vsel %vm45_vm4, %v3633_v37, 0.0  ;;  %v3644_v16 = vsel %vm45_vm4, %v3634_v35, 0.0 }
 0x66e   :  { %v3641_v27 = vadd.f32 %v3640_v52, %v3639_v50  ;;  %v3646_v19 = vsel %vm45_vm4, %v3635_v54, 0.0  ;;  %v3648_v36 = vsel %vm45_vm4, %v3636_v13, 0.0  ;;  %v3650_v17 = vsel %vm45_vm4, %v3637_v4, 0.0 }
 0x66f   :  { %v3652_v63 = vsel %vm45_vm4, %v3638_v48, 0.0 }
 0x670   :  { %v3643_v61 = vadd.f32 %v3642_v6, %v3641_v27 }
 0x672   :  { %v3645_v57 = vadd.f32 %v3644_v16, %v3643_v61 }
 0x674   :  { %v3647_v24 = vadd.f32 %v3646_v19, %v3645_v57 }
 0x676   :  { %v3649_v44 = vadd.f32 %v3648_v36, %v3647_v24 }
 0x678   :  { %v3651_v43 = vadd.f32 %v3650_v17, %v3649_v44 }
 0x67a   :  { %v3653_v40 = vadd.f32 %v3652_v63, %v3651_v43 }
 0x67c   :  { %v3654_v32 = vrot.slane %v3653_v40, 4 }
 0x67e   :  { %v3655_v47 = vadd.f32 %v3654_v32, %v3653_v40 }
 0x680   :  { %v3656_v29 = vrot.slane %v3655_v47, 2 }
 0x682   :  { %v3657_v15 = vadd.f32 %v3656_v29, %v3655_v47 }
 0x684   :  { %v3658_v46 = vrot.slane %v3657_v15, 1 }
 0x686   :  { %v3659_v28 = vadd.f32 %v3658_v46, %v3657_v15 }
 0x688   :  { %v3660_v53 = vmul.f32 0.015625, %v3659_v28 }
 0x68a   :  { %v3661_v22 = vadd.f32 1e-05, %v3660_v53 }
 0x68c   :  { %4227 = vrsqrt.f32 %v3661_v22 }
 0x699   :  { %v4228_v1 = vpop.eup %4227 }
 0x69a   :  { %v3663_v49 = vmul.f32 %v4228_v1, %v3623_v26  ;;  %v3664_v21 = vmul.f32 %v4228_v1, %v3624_v59  ;;  %v3665_v62 = vmul.f32 %v4228_v1, %v3625_v5  ;;  %v3666_v11 = vmul.f32 %v4228_v1, %v3626_v42 }
 0x69b   :  { %v3667_v56 = vmul.f32 %v4228_v1, %v3627_v51  ;;  %v3668_v7 = vmul.f32 %v4228_v1, %v3628_v23  ;;  %v3669_v25 = vmul.f32 %v4228_v1, %v3629_v0  ;;  %v3670_v60 = vmul.f32 %v4228_v1, %v3630_v18 }
 0x69c   :  { %v3678_v55 = vmul.f32 %v3844_v10, %v3663_v49  ;;  %v3679_v2 = vmul.f32 %v3844_v10, %v3664_v21  ;;  %v3680_v20 = vmul.f32 %v3844_v10, %v3665_v62  ;;  %v3681_v3 = vmul.f32 %v3844_v10, %v3666_v11 }
 0x69d   :  { %v3682_v33 = vmul.f32 %v3844_v10, %v3667_v56  ;;  %v3683_v39 = vmul.f32 %v3844_v10, %v3668_v7  ;;  %v3684_v30 = vmul.f32 %v3844_v10, %v3669_v25  ;;  %v3685_v8 = vmul.f32 %v3844_v10, %v3670_v60 }
 0x69e   :  { %v3693_v12 = vadd.f32 %v3845_v14, %v3678_v55  ;;  %v3694_v45 = vadd.f32 %v3845_v14, %v3679_v2  ;;  %v3695_v31 = vadd.f32 %v3845_v14, %v3680_v20  ;;  %v3696_v38 = vadd.f32 %v3845_v14, %v3681_v3 }
 0x69f   :  { %v3697_v9 = vadd.f32 %v3845_v14, %v3682_v33  ;;  %v3698_v34 = vadd.f32 %v3845_v14, %v3683_v39  ;;  %v3699_v26 = vadd.f32 %v3845_v14, %v3684_v30  ;;  %v3700_v59 = vadd.f32 %v3845_v14, %v3685_v8 }
 0x6a0   :  { %vm3701_vm0 = vcmp.ge.f32.partialorder %v3693_v12, 0.0  ;;  %vm3702_vm5 = vcmp.ge.f32.partialorder %v3694_v45, 0.0  ;;  %vm3703_vm6 = vcmp.ge.f32.partialorder %v3695_v31, 0.0  ;;  %vm3704_vm7 = vcmp.ge.f32.partialorder %v3696_v38, 0.0 }
 0x6a1   :  { %vm3705_vm8 = vcmp.ge.f32.partialorder %v3697_v9, 0.0  ;;  %vm3706_vm9 = vcmp.ge.f32.partialorder %v3698_v34, 0.0  ;;  %vm3707_vm10 = vcmp.ge.f32.partialorder %v3699_v26, 0.0  ;;  %vm3708_vm11 = vcmp.ge.f32.partialorder %v3700_v59, 0.0 }
 0x6a2   :  { %v3709_v5 = vmul.f32 0.01, %v3693_v12  ;;  %v3710_v42 = vmul.f32 0.01, %v3694_v45  ;;  %v3711_v51 = vmul.f32 0.01, %v3695_v31 }
 0x6a3   :  { %v3712_v58 = vmul.f32 0.01, %v3696_v38  ;;  %v3713_v41 = vmul.f32 0.01, %v3697_v9  ;;  %v3714_v37 = vmul.f32 0.01, %v3698_v34 }
 0x6a4   :  { %v3715_v23 = vmul.f32 0.01, %v3699_v26  ;;  %v3716_v35 = vmul.f32 0.01, %v3700_v59  ;;  %v3717_v50 = vsel %vm3701_vm0, %v3693_v12, %v3709_v5  ;;  %v3718_v52 = vsel %vm3702_vm5, %v3694_v45, %v3710_v42 }
 0x6a5   :  { %v3719_v27 = vsel %vm3703_vm6, %v3695_v31, %v3711_v51  ;;  %v3720_v0 = vsel %vm3704_vm7, %v3696_v38, %v3712_v58  ;;  %v3721_v54 = vsel %vm3705_vm8, %v3697_v9, %v3713_v41  ;;  %v3722_v6 = vsel %vm3706_vm9, %v3698_v34, %v3714_v37  ;;  %3725 = vst.msk [vmem:[%s7052_s12] sm:$0xff] %vm45_vm4, %v3717_v50 }
 0x6a6   :  { %3726 = vst.msk [vmem:[%s7052_s12 + $0x8] sm:$0xff] %vm45_vm4, %v3718_v52  ;;  %v3723_v61 = vsel %vm3707_vm10, %v3699_v26, %v3715_v23  ;;  %v3724_v18 = vsel %vm3708_vm11, %v3700_v59, %v3716_v35  ;;  %3727 = vst.msk [vmem:[%s7052_s12 + $0x10] sm:$0xff] %vm45_vm4, %v3719_v27 }
 0x6a7   :  { %3728 = vst.msk [vmem:[%s7052_s12 + $0x18] sm:$0xff] %vm45_vm4, %v3720_v0  ;;  %3729 = vst.msk [vmem:[%s7052_s12 + $0x20] sm:$0xff] %vm45_vm4, %v3721_v54 }
 0x6a8   :  { %3730 = vst.msk [vmem:[%s7052_s12 + $0x28] sm:$0xff] %vm45_vm4, %v3722_v6  ;;  %3731 = vst.msk [vmem:[%s7052_s12 + $0x30] sm:$0xff] %vm45_vm4, %v3723_v61 }
 0x6a9   :  { %3732 = vst.msk [vmem:[%s7052_s12 + $0x38] sm:$0xff] %vm45_vm4, %v3724_v18 }

</bundles_post_ra>
